<compile_context>
chip_gen: v7x
topology: tpu7x:2x2x1
jax: 0.10.0
libtpu: 0.0.40
codegen_flags: <defaults>
</compile_context>

<pallas_src>
import functools

import numpy as np

import jax
import jax.numpy as jnp
from jax.experimental import pallas as pl
from jax.experimental.pallas import tpu as pltpu


# Whole-array-in-VMEM block spec (all operands here are tiny; total ~1.5 MiB).
VMEM_SPEC = pl.BlockSpec(memory_space=pltpu.MemorySpace.VMEM)


# ----------------------------------------------------------------------------
# Constant 0/1 selection matrices for in-kernel patch gathering (conv2/conv3).
# S[kh*3+kw, oh*Wo+ow, h*Wi+w] = 1  iff  h == 2*oh+kh-1 and w == 2*ow+kw-1
# (out-of-range -> all-zero row, which implements the zero padding).
# ----------------------------------------------------------------------------
def _make_selection_matrices(hin, win, k=3, stride=2, pad=1):
    hout, wout = hin // stride, win // stride
    s = np.zeros((k * k, hout * wout, hin * win), np.float32)
    for kh in range(k):
        for kw in range(k):
            for oh in range(hout):
                for ow in range(wout):
                    h = oh * stride + kh - pad
                    w = ow * stride + kw - pad
                    if 0 <= h < hin and 0 <= w < win:
                        s[kh * k + kw, oh * wout + ow, h * win + w] = 1.0
    return s


_S2_NP = _make_selection_matrices(16, 16)   # conv2 gather: (9, 64, 256)
_S3_NP = _make_selection_matrices(8, 8)     # conv3 gather: (9, 16, 64)


# ----------------------------------------------------------------------------
# Fused kernel: conv1 + conv2 + conv3 (+ReLU each) + FC heads + sampling.
# ----------------------------------------------------------------------------
def _make_encoder_kernel(batch, training):
    n_sp1 = 256   # 16*16 conv1 output positions per image

    def kernel(*refs):
        if training:
            (a1_ref, w1_ref, b1_ref, s2_ref, w2_ref, b2_ref,
             s3_ref, w3_ref, b3_ref, wm_ref, bm_ref, wv_ref, bv_ref,
             eps_ref, z_ref, zm_ref, zv_ref) = refs
        else:
            (a1_ref, w1_ref, b1_ref, s2_ref, w2_ref, b2_ref,
             s3_ref, w3_ref, b3_ref, wm_ref, bm_ref, wv_ref, bv_ref,
             z_ref, zm_ref, zv_ref) = refs

        f32 = jnp.float32

        # conv1: one GEMM for all batches; rows ordered (b, oh, ow).
        y1 = jnp.maximum(
            jnp.dot(a1_ref[...], w1_ref[...], preferred_element_type=f32)
            + b1_ref[...], 0.0)                                     # (B*256, 32)

        zmean = jnp.zeros((batch, 2), f32)
        zlogv = jnp.zeros((batch, 2), f32)

        for b in range(batch):
            y1b = y1[b * n_sp1:(b + 1) * n_sp1, :]                  # (256, 32)

            # conv2: gather 9 shifted patch views via constant selection
            # matmuls and accumulate 9 small GEMMs (all stays in VMEM).
            acc2 = jnp.zeros((64, 64), f32)
            for kk in range(9):
                g = jnp.dot(s2_ref[kk], y1b,
                            preferred_element_type=f32)             # (64, 32)
                acc2 = acc2 + jnp.dot(g, w2_ref[kk],
                                      preferred_element_type=f32)   # (64, 64)
            y2b = jnp.maximum(acc2 + b2_ref[...], 0.0)               # (64, 64)

            # conv3: same pattern.
            acc3 = jnp.zeros((16, 128), f32)
            for kk in range(9):
                g = jnp.dot(s3_ref[kk], y2b,
                            preferred_element_type=f32)             # (16, 64)
                acc3 = acc3 + jnp.dot(g, w3_ref[kk],
                                      preferred_element_type=f32)   # (16, 128)
            y3b = jnp.maximum(acc3 + b3_ref[...], 0.0)               # (16, 128)

            # FC heads: full contraction of the (16, 128) activation against
            # flatten-permuted head weights (VPU multiply + reduce); the
            # PyTorch NCHW-flatten ordering is already baked into wm/wv.
            zm_b = bm_ref[...]                                       # (1, 2)
            zv_b = bv_ref[...]                                       # (1, 2)
            for k in range(2):
                kmask = (jax.lax.broadcasted_iota(jnp.int32, (1, 2), 1) == k
                         ).astype(f32)
                cm = jnp.sum(y3b * wm_ref[k], keepdims=True)          # (1, 1)
                cv = jnp.sum(y3b * wv_ref[k], keepdims=True)          # (1, 1)
                zm_b = zm_b + cm * kmask
                zv_b = zv_b + cv * kmask

            bmask = (jax.lax.broadcasted_iota(jnp.int32, (batch, 1), 0) == b
                     ).astype(f32)                                   # (B, 1)
            zmean = zmean + bmask * zm_b
            zlogv = zlogv + bmask * zv_b

        if training:
            z = zmean + jnp.exp(0.5 * zlogv) * eps_ref[...]
        else:
            z = zmean      # eval: epsilon == 0  ->  z == z_mean (no exp, no NaN)

        z_ref[...] = z.astype(z_ref.dtype)
        zm_ref[...] = zmean.astype(zm_ref.dtype)
        zv_ref[...] = zlogv.astype(zv_ref.dtype)

    return kernel


# ----------------------------------------------------------------------------
# Public wrapper.
# ----------------------------------------------------------------------------
@functools.partial(jax.jit, static_argnames=("training",))
def encoder_forward(x_nchw, params, key=None, *, training=False):
    """Returns (z, z_mean, z_log_var), matching the PyTorch forward."""
    B = x_nchw.shape[0]

    # ---- tiny XLA glue on the raw input / weights only ----------------------
    # conv1 im2col: (B, 1, 32, 32) -> (B*256, 9), columns ordered (kh, kw).
    x = x_nchw[:, 0]                                            # (B, 32, 32)
    xp = jnp.pad(x, ((0, 0), (1, 1), (1, 1)))
    cols = [xp[:, kh:kh + 32:2, kw:kw + 32:2]
            for kh in range(3) for kw in range(3)]              # 9 x (B,16,16)
    a1 = jnp.stack(cols, axis=-1).reshape(B * 256, 9)

    w1m = params["conv1_w"].reshape(9, 32)
    w2m = params["conv2_w"].reshape(9, 32, 64)
    w3m = params["conv3_w"].reshape(9, 64, 128)
    b1 = params["conv1_b"].reshape(1, 32)
    b2 = params["conv2_b"].reshape(1, 64)
    b3 = params["conv3_b"].reshape(1, 128)

    # Fold the NCHW-flatten permutation into the FC weights:
    # PyTorch row index (c*16 + s)  ->  [head k, spatial s, channel c].
    wm = params["fc1_w"].reshape(128, 16, 2).transpose(2, 1, 0)  # (2, 16, 128)
    wv = params["fc2_w"].reshape(128, 16, 2).transpose(2, 1, 0)  # (2, 16, 128)
    bm = params["fc1_b"].reshape(1, 2)
    bv = params["fc2_b"].reshape(1, 2)

    s2 = jnp.asarray(_S2_NP)                                     # (9, 64, 256)
    s3 = jnp.asarray(_S3_NP)                                     # (9, 16, 64)

    args = [a1, w1m, b1, s2, w2m, b2, s3, w3m, b3, wm, bm, wv, bv]
    if training:
        if key is None:
            key = jax.random.PRNGKey(0)
        args.append(jax.random.normal(key, (B, 2), jnp.float32))  # eps ~ N(0,1)

    out_sds = jax.ShapeDtypeStruct((B, 2), jnp.float32)
    # Gridless single invocation: the whole problem fits in VMEM at small B.
    # For large B, add a grid over the batch dimension with
    # dimension_semantics=("parallel",) to shard across TensorCores (v7x) and
    # keep VMEM bounded.
    z, z_mean, z_log_var = pl.pallas_call(
        _make_encoder_kernel(B, training),
        out_shape=(out_sds, out_sds, out_sds),
        in_specs=[VMEM_SPEC] * len(args),
        out_specs=(VMEM_SPEC, VMEM_SPEC, VMEM_SPEC),
    )(*args)
    return z, z_mean, z_log_var


def init_encoder_params(key):
    """Deterministic synthetic parameters (shapes from Encoder.__init__)."""
    keys = jax.random.split(key, 10)

    def conv_w(k, kh, kw, cin, cout):
        fan_in = kh * kw * cin
        return (jax.random.normal(k, (kh, kw, cin, cout), jnp.float32)
                / jnp.sqrt(fan_in))

    return {
        "conv1_w": conv_w(keys[0], 3, 3, 1, 32),
        "conv1_b": 0.01 * jax.random.normal(keys[1], (32,), jnp.float32),
        "conv2_w": conv_w(keys[2], 3, 3, 32, 64),
        "conv2_b": 0.01 * jax.random.normal(keys[3], (64,), jnp.float32),
        "conv3_w": conv_w(keys[4], 3, 3, 64, 128),
        "conv3_b": 0.01 * jax.random.normal(keys[5], (128,), jnp.float32),
        "fc1_w": jax.random.normal(keys[6], (2048, 2), jnp.float32) / jnp.sqrt(2048.0),
        "fc1_b": 0.01 * jax.random.normal(keys[7], (2,), jnp.float32),
        "fc2_w": jax.random.normal(keys[8], (2048, 2), jnp.float32) / jnp.sqrt(2048.0),
        "fc2_b": 0.01 * jax.random.normal(keys[9], (2,), jnp.float32),
    }


# ----------------------------------------------------------------------------
# Plain-JAX reference (for a sanity check)
# ----------------------------------------------------------------------------
def encoder_reference(x_nchw, params):
    x = x_nchw
    for i in (1, 2, 3):
        w = jnp.transpose(params[f"conv{i}_w"], (3, 2, 0, 1))  # HWIO -> OIHW
        b = params[f"conv{i}_b"]
        x = jax.lax.conv_general_dilated(
            x, w, window_strides=(2, 2), padding=((1, 1), (1, 1)),
            dimension_numbers=("NCHW", "OIHW", "NCHW"))
        x = jax.nn.relu(x + b[None, :, None, None])
    flat = x.reshape(x.shape[0], -1)
    z_mean = flat @ params["fc1_w"] + params["fc1_b"]
    z_log_var = flat @ params["fc2_w"] + params["fc2_b"]
    z = z_mean  # eps = 0 in eval mode
    return z, z_mean, z_log_var


if __name__ == "__main__":
    key = jax.random.PRNGKey(0)
    k_in, k_params = jax.random.split(key)

    # Input implied by fc1=Linear(2048, 2): (B, 1, 32, 32) NCHW.
    x = jax.random.normal(k_in, (2, 1, 32, 32), jnp.float32)
    params = init_encoder_params(k_params)

    z, z_mean, z_log_var = encoder_forward(x, params, training=False)
    jax.block_until_ready((z, z_mean, z_log_var))

    z_r, zm_r, zlv_r = encoder_reference(x, params)
    assert z.shape == (2, 2) and z_mean.shape == (2, 2) and z_log_var.shape == (2, 2)
    assert jnp.allclose(z, z_r, atol=2e-3, rtol=2e-3)
    assert jnp.allclose(z_mean, zm_r, atol=2e-3, rtol=2e-3)
    assert jnp.allclose(z_log_var, zlv_r, atol=2e-3, rtol=2e-3)

    print("KERNEL_OK")
</pallas_src>

<mosaic_0001>
module attributes {stable_mosaic.version = 11 : i64} {
  func.func @kernel(%arg0: memref<512x9xf32, #tpu.memory_space<vmem>>, %arg1: memref<9x32xf32, #tpu.memory_space<vmem>>, %arg2: memref<1x32xf32, #tpu.memory_space<vmem>>, %arg3: memref<9x64x256xf32, #tpu.memory_space<vmem>>, %arg4: memref<9x32x64xf32, #tpu.memory_space<vmem>>, %arg5: memref<1x64xf32, #tpu.memory_space<vmem>>, %arg6: memref<9x16x64xf32, #tpu.memory_space<vmem>>, %arg7: memref<9x64x128xf32, #tpu.memory_space<vmem>>, %arg8: memref<1x128xf32, #tpu.memory_space<vmem>>, %arg9: memref<2x16x128xf32, #tpu.memory_space<vmem>>, %arg10: memref<1x2xf32, #tpu.memory_space<vmem>>, %arg11: memref<2x16x128xf32, #tpu.memory_space<vmem>>, %arg12: memref<1x2xf32, #tpu.memory_space<vmem>>, %arg13: memref<2x2xf32, #tpu.memory_space<vmem>>, %arg14: memref<2x2xf32, #tpu.memory_space<vmem>>, %arg15: memref<2x2xf32, #tpu.memory_space<vmem>>) attributes {dimension_semantics = [], scalar_prefetch = 0 : i64, scratch_operands = 0 : i64, tpu.core_type = #tpu.core_type<tc>} {
    %c0 = arith.constant 0 : index
    %c0_0 = arith.constant 0 : index
    %0 = vector.load %arg0[%c0, %c0_0] : memref<512x9xf32, #tpu.memory_space<vmem>>, vector<512x9xf32>
    %c0_1 = arith.constant 0 : index
    %c0_2 = arith.constant 0 : index
    %1 = vector.load %arg1[%c0_1, %c0_2] : memref<9x32xf32, #tpu.memory_space<vmem>>, vector<9x32xf32>
    %cst = arith.constant dense<0.000000e+00> : vector<512x32xf32>
    %2 = tpu.matmul %0, %1, %cst {dimension_numbers = #tpu.dot_dimension_numbers<[1], [0], [0], [1], [0, 0, 1, 1], [], []>} : vector<512x9xf32>, vector<9x32xf32>, vector<512x32xf32> -> vector<512x32xf32>
    %c0_3 = arith.constant 0 : index
    %c0_4 = arith.constant 0 : index
    %3 = vector.load %arg2[%c0_3, %c0_4] : memref<1x32xf32, #tpu.memory_space<vmem>>, vector<1x32xf32>
    %4 = vector.broadcast %3 : vector<1x32xf32> to vector<512x32xf32>
    %5 = arith.addf %2, %4 : vector<512x32xf32>
    %cst_5 = arith.constant 0.000000e+00 : f32
    %6 = vector.broadcast %cst_5 : f32 to vector<512x32xf32>
    %7 = arith.maximumf %5, %6 : vector<512x32xf32>
    %cst_6 = arith.constant 0.000000e+00 : f32
    %8 = vector.broadcast %cst_6 : f32 to vector<2x2xf32>
    %cst_7 = arith.constant 0.000000e+00 : f32
    %9 = vector.broadcast %cst_7 : f32 to vector<2x2xf32>
    %10 = vector.extract_strided_slice %7 {offsets = [0, 0], sizes = [256, 32], strides = [1, 1]} : vector<512x32xf32> to vector<256x32xf32>
    %cst_8 = arith.constant 0.000000e+00 : f32
    %11 = vector.broadcast %cst_8 : f32 to vector<64x64xf32>
    %c0_9 = arith.constant 0 : index
    %c0_10 = arith.constant 0 : index
    %c0_11 = arith.constant 0 : index
    %12 = vector.load %arg3[%c0_9, %c0_10, %c0_11] : memref<9x64x256xf32, #tpu.memory_space<vmem>>, vector<1x64x256xf32>
    %13 = vector.shape_cast %12 : vector<1x64x256xf32> to vector<64x256xf32>
    %cst_12 = arith.constant dense<0.000000e+00> : vector<64x32xf32>
    %14 = tpu.matmul %13, %10, %cst_12 {dimension_numbers = #tpu.dot_dimension_numbers<[1], [0], [0], [1], [0, 0, 1, 1], [], []>} : vector<64x256xf32>, vector<256x32xf32>, vector<64x32xf32> -> vector<64x32xf32>
    %c0_13 = arith.constant 0 : index
    %c0_14 = arith.constant 0 : index
    %c0_15 = arith.constant 0 : index
    %15 = vector.load %arg4[%c0_13, %c0_14, %c0_15] : memref<9x32x64xf32, #tpu.memory_space<vmem>>, vector<1x32x64xf32>
    %16 = vector.shape_cast %15 : vector<1x32x64xf32> to vector<32x64xf32>
    %cst_16 = arith.constant dense<0.000000e+00> : vector<64x64xf32>
    %17 = tpu.matmul %14, %16, %cst_16 {dimension_numbers = #tpu.dot_dimension_numbers<[1], [0], [0], [1], [0, 0, 1, 1], [], []>} : vector<64x32xf32>, vector<32x64xf32>, vector<64x64xf32> -> vector<64x64xf32>
    %18 = arith.addf %11, %17 : vector<64x64xf32>
    %c1 = arith.constant 1 : index
    %c0_17 = arith.constant 0 : index
    %c0_18 = arith.constant 0 : index
    %19 = vector.load %arg3[%c1, %c0_17, %c0_18] : memref<9x64x256xf32, #tpu.memory_space<vmem>>, vector<1x64x256xf32>
    %20 = vector.shape_cast %19 : vector<1x64x256xf32> to vector<64x256xf32>
    %cst_19 = arith.constant dense<0.000000e+00> : vector<64x32xf32>
    %21 = tpu.matmul %20, %10, %cst_19 {dimension_numbers = #tpu.dot_dimension_numbers<[1], [0], [0], [1], [0, 0, 1, 1], [], []>} : vector<64x256xf32>, vector<256x32xf32>, vector<64x32xf32> -> vector<64x32xf32>
    %c1_20 = arith.constant 1 : index
    %c0_21 = arith.constant 0 : index
    %c0_22 = arith.constant 0 : index
    %22 = vector.load %arg4[%c1_20, %c0_21, %c0_22] : memref<9x32x64xf32, #tpu.memory_space<vmem>>, vector<1x32x64xf32>
    %23 = vector.shape_cast %22 : vector<1x32x64xf32> to vector<32x64xf32>
    %cst_23 = arith.constant dense<0.000000e+00> : vector<64x64xf32>
    %24 = tpu.matmul %21, %23, %cst_23 {dimension_numbers = #tpu.dot_dimension_numbers<[1], [0], [0], [1], [0, 0, 1, 1], [], []>} : vector<64x32xf32>, vector<32x64xf32>, vector<64x64xf32> -> vector<64x64xf32>
    %25 = arith.addf %18, %24 : vector<64x64xf32>
    %c2 = arith.constant 2 : index
    %c0_24 = arith.constant 0 : index
    %c0_25 = arith.constant 0 : index
    %26 = vector.load %arg3[%c2, %c0_24, %c0_25] : memref<9x64x256xf32, #tpu.memory_space<vmem>>, vector<1x64x256xf32>
    %27 = vector.shape_cast %26 : vector<1x64x256xf32> to vector<64x256xf32>
    %cst_26 = arith.constant dense<0.000000e+00> : vector<64x32xf32>
    %28 = tpu.matmul %27, %10, %cst_26 {dimension_numbers = #tpu.dot_dimension_numbers<[1], [0], [0], [1], [0, 0, 1, 1], [], []>} : vector<64x256xf32>, vector<256x32xf32>, vector<64x32xf32> -> vector<64x32xf32>
    %c2_27 = arith.constant 2 : index
    %c0_28 = arith.constant 0 : index
    %c0_29 = arith.constant 0 : index
    %29 = vector.load %arg4[%c2_27, %c0_28, %c0_29] : memref<9x32x64xf32, #tpu.memory_space<vmem>>, vector<1x32x64xf32>
    %30 = vector.shape_cast %29 : vector<1x32x64xf32> to vector<32x64xf32>
    %cst_30 = arith.constant dense<0.000000e+00> : vector<64x64xf32>
    %31 = tpu.matmul %28, %30, %cst_30 {dimension_numbers = #tpu.dot_dimension_numbers<[1], [0], [0], [1], [0, 0, 1, 1], [], []>} : vector<64x32xf32>, vector<32x64xf32>, vector<64x64xf32> -> vector<64x64xf32>
    %32 = arith.addf %25, %31 : vector<64x64xf32>
    %c3 = arith.constant 3 : index
    %c0_31 = arith.constant 0 : index
    %c0_32 = arith.constant 0 : index
    %33 = vector.load %arg3[%c3, %c0_31, %c0_32] : memref<9x64x256xf32, #tpu.memory_space<vmem>>, vector<1x64x256xf32>
    %34 = vector.shape_cast %33 : vector<1x64x256xf32> to vector<64x256xf32>
    %cst_33 = arith.constant dense<0.000000e+00> : vector<64x32xf32>
    %35 = tpu.matmul %34, %10, %cst_33 {dimension_numbers = #tpu.dot_dimension_numbers<[1], [0], [0], [1], [0, 0, 1, 1], [], []>} : vector<64x256xf32>, vector<256x32xf32>, vector<64x32xf32> -> vector<64x32xf32>
    %c3_34 = arith.constant 3 : index
    %c0_35 = arith.constant 0 : index
    %c0_36 = arith.constant 0 : index
    %36 = vector.load %arg4[%c3_34, %c0_35, %c0_36] : memref<9x32x64xf32, #tpu.memory_space<vmem>>, vector<1x32x64xf32>
    %37 = vector.shape_cast %36 : vector<1x32x64xf32> to vector<32x64xf32>
    %cst_37 = arith.constant dense<0.000000e+00> : vector<64x64xf32>
    %38 = tpu.matmul %35, %37, %cst_37 {dimension_numbers = #tpu.dot_dimension_numbers<[1], [0], [0], [1], [0, 0, 1, 1], [], []>} : vector<64x32xf32>, vector<32x64xf32>, vector<64x64xf32> -> vector<64x64xf32>
    %39 = arith.addf %32, %38 : vector<64x64xf32>
    %c4 = arith.constant 4 : index
    %c0_38 = arith.constant 0 : index
    %c0_39 = arith.constant 0 : index
    %40 = vector.load %arg3[%c4, %c0_38, %c0_39] : memref<9x64x256xf32, #tpu.memory_space<vmem>>, vector<1x64x256xf32>
    %41 = vector.shape_cast %40 : vector<1x64x256xf32> to vector<64x256xf32>
    %cst_40 = arith.constant dense<0.000000e+00> : vector<64x32xf32>
    %42 = tpu.matmul %41, %10, %cst_40 {dimension_numbers = #tpu.dot_dimension_numbers<[1], [0], [0], [1], [0, 0, 1, 1], [], []>} : vector<64x256xf32>, vector<256x32xf32>, vector<64x32xf32> -> vector<64x32xf32>
    %c4_41 = arith.constant 4 : index
    %c0_42 = arith.constant 0 : index
    %c0_43 = arith.constant 0 : index
    %43 = vector.load %arg4[%c4_41, %c0_42, %c0_43] : memref<9x32x64xf32, #tpu.memory_space<vmem>>, vector<1x32x64xf32>
    %44 = vector.shape_cast %43 : vector<1x32x64xf32> to vector<32x64xf32>
    %cst_44 = arith.constant dense<0.000000e+00> : vector<64x64xf32>
    %45 = tpu.matmul %42, %44, %cst_44 {dimension_numbers = #tpu.dot_dimension_numbers<[1], [0], [0], [1], [0, 0, 1, 1], [], []>} : vector<64x32xf32>, vector<32x64xf32>, vector<64x64xf32> -> vector<64x64xf32>
    %46 = arith.addf %39, %45 : vector<64x64xf32>
    %c5 = arith.constant 5 : index
    %c0_45 = arith.constant 0 : index
    %c0_46 = arith.constant 0 : index
    %47 = vector.load %arg3[%c5, %c0_45, %c0_46] : memref<9x64x256xf32, #tpu.memory_space<vmem>>, vector<1x64x256xf32>
    %48 = vector.shape_cast %47 : vector<1x64x256xf32> to vector<64x256xf32>
    %cst_47 = arith.constant dense<0.000000e+00> : vector<64x32xf32>
    %49 = tpu.matmul %48, %10, %cst_47 {dimension_numbers = #tpu.dot_dimension_numbers<[1], [0], [0], [1], [0, 0, 1, 1], [], []>} : vector<64x256xf32>, vector<256x32xf32>, vector<64x32xf32> -> vector<64x32xf32>
    %c5_48 = arith.constant 5 : index
    %c0_49 = arith.constant 0 : index
    %c0_50 = arith.constant 0 : index
    %50 = vector.load %arg4[%c5_48, %c0_49, %c0_50] : memref<9x32x64xf32, #tpu.memory_space<vmem>>, vector<1x32x64xf32>
    %51 = vector.shape_cast %50 : vector<1x32x64xf32> to vector<32x64xf32>
    %cst_51 = arith.constant dense<0.000000e+00> : vector<64x64xf32>
    %52 = tpu.matmul %49, %51, %cst_51 {dimension_numbers = #tpu.dot_dimension_numbers<[1], [0], [0], [1], [0, 0, 1, 1], [], []>} : vector<64x32xf32>, vector<32x64xf32>, vector<64x64xf32> -> vector<64x64xf32>
    %53 = arith.addf %46, %52 : vector<64x64xf32>
    %c6 = arith.constant 6 : index
    %c0_52 = arith.constant 0 : index
    %c0_53 = arith.constant 0 : index
    %54 = vector.load %arg3[%c6, %c0_52, %c0_53] : memref<9x64x256xf32, #tpu.memory_space<vmem>>, vector<1x64x256xf32>
    %55 = vector.shape_cast %54 : vector<1x64x256xf32> to vector<64x256xf32>
    %cst_54 = arith.constant dense<0.000000e+00> : vector<64x32xf32>
    %56 = tpu.matmul %55, %10, %cst_54 {dimension_numbers = #tpu.dot_dimension_numbers<[1], [0], [0], [1], [0, 0, 1, 1], [], []>} : vector<64x256xf32>, vector<256x32xf32>, vector<64x32xf32> -> vector<64x32xf32>
    %c6_55 = arith.constant 6 : index
    %c0_56 = arith.constant 0 : index
    %c0_57 = arith.constant 0 : index
    %57 = vector.load %arg4[%c6_55, %c0_56, %c0_57] : memref<9x32x64xf32, #tpu.memory_space<vmem>>, vector<1x32x64xf32>
    %58 = vector.shape_cast %57 : vector<1x32x64xf32> to vector<32x64xf32>
    %cst_58 = arith.constant dense<0.000000e+00> : vector<64x64xf32>
    %59 = tpu.matmul %56, %58, %cst_58 {dimension_numbers = #tpu.dot_dimension_numbers<[1], [0], [0], [1], [0, 0, 1, 1], [], []>} : vector<64x32xf32>, vector<32x64xf32>, vector<64x64xf32> -> vector<64x64xf32>
    %60 = arith.addf %53, %59 : vector<64x64xf32>
    %c7 = arith.constant 7 : index
    %c0_59 = arith.constant 0 : index
    %c0_60 = arith.constant 0 : index
    %61 = vector.load %arg3[%c7, %c0_59, %c0_60] : memref<9x64x256xf32, #tpu.memory_space<vmem>>, vector<1x64x256xf32>
    %62 = vector.shape_cast %61 : vector<1x64x256xf32> to vector<64x256xf32>
    %cst_61 = arith.constant dense<0.000000e+00> : vector<64x32xf32>
    %63 = tpu.matmul %62, %10, %cst_61 {dimension_numbers = #tpu.dot_dimension_numbers<[1], [0], [0], [1], [0, 0, 1, 1], [], []>} : vector<64x256xf32>, vector<256x32xf32>, vector<64x32xf32> -> vector<64x32xf32>
    %c7_62 = arith.constant 7 : index
    %c0_63 = arith.constant 0 : index
    %c0_64 = arith.constant 0 : index
    %64 = vector.load %arg4[%c7_62, %c0_63, %c0_64] : memref<9x32x64xf32, #tpu.memory_space<vmem>>, vector<1x32x64xf32>
    %65 = vector.shape_cast %64 : vector<1x32x64xf32> to vector<32x64xf32>
    %cst_65 = arith.constant dense<0.000000e+00> : vector<64x64xf32>
    %66 = tpu.matmul %63, %65, %cst_65 {dimension_numbers = #tpu.dot_dimension_numbers<[1], [0], [0], [1], [0, 0, 1, 1], [], []>} : vector<64x32xf32>, vector<32x64xf32>, vector<64x64xf32> -> vector<64x64xf32>
    %67 = arith.addf %60, %66 : vector<64x64xf32>
    %c8 = arith.constant 8 : index
    %c0_66 = arith.constant 0 : index
    %c0_67 = arith.constant 0 : index
    %68 = vector.load %arg3[%c8, %c0_66, %c0_67] : memref<9x64x256xf32, #tpu.memory_space<vmem>>, vector<1x64x256xf32>
    %69 = vector.shape_cast %68 : vector<1x64x256xf32> to vector<64x256xf32>
    %cst_68 = arith.constant dense<0.000000e+00> : vector<64x32xf32>
    %70 = tpu.matmul %69, %10, %cst_68 {dimension_numbers = #tpu.dot_dimension_numbers<[1], [0], [0], [1], [0, 0, 1, 1], [], []>} : vector<64x256xf32>, vector<256x32xf32>, vector<64x32xf32> -> vector<64x32xf32>
    %c8_69 = arith.constant 8 : index
    %c0_70 = arith.constant 0 : index
    %c0_71 = arith.constant 0 : index
    %71 = vector.load %arg4[%c8_69, %c0_70, %c0_71] : memref<9x32x64xf32, #tpu.memory_space<vmem>>, vector<1x32x64xf32>
    %72 = vector.shape_cast %71 : vector<1x32x64xf32> to vector<32x64xf32>
    %cst_72 = arith.constant dense<0.000000e+00> : vector<64x64xf32>
    %73 = tpu.matmul %70, %72, %cst_72 {dimension_numbers = #tpu.dot_dimension_numbers<[1], [0], [0], [1], [0, 0, 1, 1], [], []>} : vector<64x32xf32>, vector<32x64xf32>, vector<64x64xf32> -> vector<64x64xf32>
    %74 = arith.addf %67, %73 : vector<64x64xf32>
    %c0_73 = arith.constant 0 : index
    %c0_74 = arith.constant 0 : index
    %75 = vector.load %arg5[%c0_73, %c0_74] : memref<1x64xf32, #tpu.memory_space<vmem>>, vector<1x64xf32>
    %76 = vector.broadcast %75 : vector<1x64xf32> to vector<64x64xf32>
    %77 = arith.addf %74, %76 : vector<64x64xf32>
    %cst_75 = arith.constant 0.000000e+00 : f32
    %78 = vector.broadcast %cst_75 : f32 to vector<64x64xf32>
    %79 = arith.maximumf %77, %78 : vector<64x64xf32>
    %cst_76 = arith.constant 0.000000e+00 : f32
    %80 = vector.broadcast %cst_76 : f32 to vector<16x128xf32>
    %c0_77 = arith.constant 0 : index
    %c0_78 = arith.constant 0 : index
    %c0_79 = arith.constant 0 : index
    %81 = vector.load %arg6[%c0_77, %c0_78, %c0_79] : memref<9x16x64xf32, #tpu.memory_space<vmem>>, vector<1x16x64xf32>
    %82 = vector.shape_cast %81 : vector<1x16x64xf32> to vector<16x64xf32>
    %cst_80 = arith.constant dense<0.000000e+00> : vector<16x64xf32>
    %83 = tpu.matmul %82, %79, %cst_80 {dimension_numbers = #tpu.dot_dimension_numbers<[1], [0], [0], [1], [0, 0, 1, 1], [], []>} : vector<16x64xf32>, vector<64x64xf32>, vector<16x64xf32> -> vector<16x64xf32>
    %c0_81 = arith.constant 0 : index
    %c0_82 = arith.constant 0 : index
    %c0_83 = arith.constant 0 : index
    %84 = vector.load %arg7[%c0_81, %c0_82, %c0_83] : memref<9x64x128xf32, #tpu.memory_space<vmem>>, vector<1x64x128xf32>
    %85 = vector.shape_cast %84 : vector<1x64x128xf32> to vector<64x128xf32>
    %cst_84 = arith.constant dense<0.000000e+00> : vector<16x128xf32>
    %86 = tpu.matmul %83, %85, %cst_84 {dimension_numbers = #tpu.dot_dimension_numbers<[1], [0], [0], [1], [0, 0, 1, 1], [], []>} : vector<16x64xf32>, vector<64x128xf32>, vector<16x128xf32> -> vector<16x128xf32>
    %87 = arith.addf %80, %86 : vector<16x128xf32>
    %c1_85 = arith.constant 1 : index
    %c0_86 = arith.constant 0 : index
    %c0_87 = arith.constant 0 : index
    %88 = vector.load %arg6[%c1_85, %c0_86, %c0_87] : memref<9x16x64xf32, #tpu.memory_space<vmem>>, vector<1x16x64xf32>
    %89 = vector.shape_cast %88 : vector<1x16x64xf32> to vector<16x64xf32>
    %cst_88 = arith.constant dense<0.000000e+00> : vector<16x64xf32>
    %90 = tpu.matmul %89, %79, %cst_88 {dimension_numbers = #tpu.dot_dimension_numbers<[1], [0], [0], [1], [0, 0, 1, 1], [], []>} : vector<16x64xf32>, vector<64x64xf32>, vector<16x64xf32> -> vector<16x64xf32>
    %c1_89 = arith.constant 1 : index
    %c0_90 = arith.constant 0 : index
    %c0_91 = arith.constant 0 : index
    %91 = vector.load %arg7[%c1_89, %c0_90, %c0_91] : memref<9x64x128xf32, #tpu.memory_space<vmem>>, vector<1x64x128xf32>
    %92 = vector.shape_cast %91 : vector<1x64x128xf32> to vector<64x128xf32>
    %cst_92 = arith.constant dense<0.000000e+00> : vector<16x128xf32>
    %93 = tpu.matmul %90, %92, %cst_92 {dimension_numbers = #tpu.dot_dimension_numbers<[1], [0], [0], [1], [0, 0, 1, 1], [], []>} : vector<16x64xf32>, vector<64x128xf32>, vector<16x128xf32> -> vector<16x128xf32>
    %94 = arith.addf %87, %93 : vector<16x128xf32>
    %c2_93 = arith.constant 2 : index
    %c0_94 = arith.constant 0 : index
    %c0_95 = arith.constant 0 : index
    %95 = vector.load %arg6[%c2_93, %c0_94, %c0_95] : memref<9x16x64xf32, #tpu.memory_space<vmem>>, vector<1x16x64xf32>
    %96 = vector.shape_cast %95 : vector<1x16x64xf32> to vector<16x64xf32>
    %cst_96 = arith.constant dense<0.000000e+00> : vector<16x64xf32>
    %97 = tpu.matmul %96, %79, %cst_96 {dimension_numbers = #tpu.dot_dimension_numbers<[1], [0], [0], [1], [0, 0, 1, 1], [], []>} : vector<16x64xf32>, vector<64x64xf32>, vector<16x64xf32> -> vector<16x64xf32>
    %c2_97 = arith.constant 2 : index
    %c0_98 = arith.constant 0 : index
    %c0_99 = arith.constant 0 : index
    %98 = vector.load %arg7[%c2_97, %c0_98, %c0_99] : memref<9x64x128xf32, #tpu.memory_space<vmem>>, vector<1x64x128xf32>
    %99 = vector.shape_cast %98 : vector<1x64x128xf32> to vector<64x128xf32>
    %cst_100 = arith.constant dense<0.000000e+00> : vector<16x128xf32>
    %100 = tpu.matmul %97, %99, %cst_100 {dimension_numbers = #tpu.dot_dimension_numbers<[1], [0], [0], [1], [0, 0, 1, 1], [], []>} : vector<16x64xf32>, vector<64x128xf32>, vector<16x128xf32> -> vector<16x128xf32>
    %101 = arith.addf %94, %100 : vector<16x128xf32>
    %c3_101 = arith.constant 3 : index
    %c0_102 = arith.constant 0 : index
    %c0_103 = arith.constant 0 : index
    %102 = vector.load %arg6[%c3_101, %c0_102, %c0_103] : memref<9x16x64xf32, #tpu.memory_space<vmem>>, vector<1x16x64xf32>
    %103 = vector.shape_cast %102 : vector<1x16x64xf32> to vector<16x64xf32>
    %cst_104 = arith.constant dense<0.000000e+00> : vector<16x64xf32>
    %104 = tpu.matmul %103, %79, %cst_104 {dimension_numbers = #tpu.dot_dimension_numbers<[1], [0], [0], [1], [0, 0, 1, 1], [], []>} : vector<16x64xf32>, vector<64x64xf32>, vector<16x64xf32> -> vector<16x64xf32>
    %c3_105 = arith.constant 3 : index
    %c0_106 = arith.constant 0 : index
    %c0_107 = arith.constant 0 : index
    %105 = vector.load %arg7[%c3_105, %c0_106, %c0_107] : memref<9x64x128xf32, #tpu.memory_space<vmem>>, vector<1x64x128xf32>
    %106 = vector.shape_cast %105 : vector<1x64x128xf32> to vector<64x128xf32>
    %cst_108 = arith.constant dense<0.000000e+00> : vector<16x128xf32>
    %107 = tpu.matmul %104, %106, %cst_108 {dimension_numbers = #tpu.dot_dimension_numbers<[1], [0], [0], [1], [0, 0, 1, 1], [], []>} : vector<16x64xf32>, vector<64x128xf32>, vector<16x128xf32> -> vector<16x128xf32>
    %108 = arith.addf %101, %107 : vector<16x128xf32>
    %c4_109 = arith.constant 4 : index
    %c0_110 = arith.constant 0 : index
    %c0_111 = arith.constant 0 : index
    %109 = vector.load %arg6[%c4_109, %c0_110, %c0_111] : memref<9x16x64xf32, #tpu.memory_space<vmem>>, vector<1x16x64xf32>
    %110 = vector.shape_cast %109 : vector<1x16x64xf32> to vector<16x64xf32>
    %cst_112 = arith.constant dense<0.000000e+00> : vector<16x64xf32>
    %111 = tpu.matmul %110, %79, %cst_112 {dimension_numbers = #tpu.dot_dimension_numbers<[1], [0], [0], [1], [0, 0, 1, 1], [], []>} : vector<16x64xf32>, vector<64x64xf32>, vector<16x64xf32> -> vector<16x64xf32>
    %c4_113 = arith.constant 4 : index
    %c0_114 = arith.constant 0 : index
    %c0_115 = arith.constant 0 : index
    %112 = vector.load %arg7[%c4_113, %c0_114, %c0_115] : memref<9x64x128xf32, #tpu.memory_space<vmem>>, vector<1x64x128xf32>
    %113 = vector.shape_cast %112 : vector<1x64x128xf32> to vector<64x128xf32>
    %cst_116 = arith.constant dense<0.000000e+00> : vector<16x128xf32>
    %114 = tpu.matmul %111, %113, %cst_116 {dimension_numbers = #tpu.dot_dimension_numbers<[1], [0], [0], [1], [0, 0, 1, 1], [], []>} : vector<16x64xf32>, vector<64x128xf32>, vector<16x128xf32> -> vector<16x128xf32>
    %115 = arith.addf %108, %114 : vector<16x128xf32>
    %c5_117 = arith.constant 5 : index
    %c0_118 = arith.constant 0 : index
    %c0_119 = arith.constant 0 : index
    %116 = vector.load %arg6[%c5_117, %c0_118, %c0_119] : memref<9x16x64xf32, #tpu.memory_space<vmem>>, vector<1x16x64xf32>
    %117 = vector.shape_cast %116 : vector<1x16x64xf32> to vector<16x64xf32>
    %cst_120 = arith.constant dense<0.000000e+00> : vector<16x64xf32>
    %118 = tpu.matmul %117, %79, %cst_120 {dimension_numbers = #tpu.dot_dimension_numbers<[1], [0], [0], [1], [0, 0, 1, 1], [], []>} : vector<16x64xf32>, vector<64x64xf32>, vector<16x64xf32> -> vector<16x64xf32>
    %c5_121 = arith.constant 5 : index
    %c0_122 = arith.constant 0 : index
    %c0_123 = arith.constant 0 : index
    %119 = vector.load %arg7[%c5_121, %c0_122, %c0_123] : memref<9x64x128xf32, #tpu.memory_space<vmem>>, vector<1x64x128xf32>
    %120 = vector.shape_cast %119 : vector<1x64x128xf32> to vector<64x128xf32>
    %cst_124 = arith.constant dense<0.000000e+00> : vector<16x128xf32>
    %121 = tpu.matmul %118, %120, %cst_124 {dimension_numbers = #tpu.dot_dimension_numbers<[1], [0], [0], [1], [0, 0, 1, 1], [], []>} : vector<16x64xf32>, vector<64x128xf32>, vector<16x128xf32> -> vector<16x128xf32>
    %122 = arith.addf %115, %121 : vector<16x128xf32>
    %c6_125 = arith.constant 6 : index
    %c0_126 = arith.constant 0 : index
    %c0_127 = arith.constant 0 : index
    %123 = vector.load %arg6[%c6_125, %c0_126, %c0_127] : memref<9x16x64xf32, #tpu.memory_space<vmem>>, vector<1x16x64xf32>
    %124 = vector.shape_cast %123 : vector<1x16x64xf32> to vector<16x64xf32>
    %cst_128 = arith.constant dense<0.000000e+00> : vector<16x64xf32>
    %125 = tpu.matmul %124, %79, %cst_128 {dimension_numbers = #tpu.dot_dimension_numbers<[1], [0], [0], [1], [0, 0, 1, 1], [], []>} : vector<16x64xf32>, vector<64x64xf32>, vector<16x64xf32> -> vector<16x64xf32>
    %c6_129 = arith.constant 6 : index
    %c0_130 = arith.constant 0 : index
    %c0_131 = arith.constant 0 : index
    %126 = vector.load %arg7[%c6_129, %c0_130, %c0_131] : memref<9x64x128xf32, #tpu.memory_space<vmem>>, vector<1x64x128xf32>
    %127 = vector.shape_cast %126 : vector<1x64x128xf32> to vector<64x128xf32>
    %cst_132 = arith.constant dense<0.000000e+00> : vector<16x128xf32>
    %128 = tpu.matmul %125, %127, %cst_132 {dimension_numbers = #tpu.dot_dimension_numbers<[1], [0], [0], [1], [0, 0, 1, 1], [], []>} : vector<16x64xf32>, vector<64x128xf32>, vector<16x128xf32> -> vector<16x128xf32>
    %129 = arith.addf %122, %128 : vector<16x128xf32>
    %c7_133 = arith.constant 7 : index
    %c0_134 = arith.constant 0 : index
    %c0_135 = arith.constant 0 : index
    %130 = vector.load %arg6[%c7_133, %c0_134, %c0_135] : memref<9x16x64xf32, #tpu.memory_space<vmem>>, vector<1x16x64xf32>
    %131 = vector.shape_cast %130 : vector<1x16x64xf32> to vector<16x64xf32>
    %cst_136 = arith.constant dense<0.000000e+00> : vector<16x64xf32>
    %132 = tpu.matmul %131, %79, %cst_136 {dimension_numbers = #tpu.dot_dimension_numbers<[1], [0], [0], [1], [0, 0, 1, 1], [], []>} : vector<16x64xf32>, vector<64x64xf32>, vector<16x64xf32> -> vector<16x64xf32>
    %c7_137 = arith.constant 7 : index
    %c0_138 = arith.constant 0 : index
    %c0_139 = arith.constant 0 : index
    %133 = vector.load %arg7[%c7_137, %c0_138, %c0_139] : memref<9x64x128xf32, #tpu.memory_space<vmem>>, vector<1x64x128xf32>
    %134 = vector.shape_cast %133 : vector<1x64x128xf32> to vector<64x128xf32>
    %cst_140 = arith.constant dense<0.000000e+00> : vector<16x128xf32>
    %135 = tpu.matmul %132, %134, %cst_140 {dimension_numbers = #tpu.dot_dimension_numbers<[1], [0], [0], [1], [0, 0, 1, 1], [], []>} : vector<16x64xf32>, vector<64x128xf32>, vector<16x128xf32> -> vector<16x128xf32>
    %136 = arith.addf %129, %135 : vector<16x128xf32>
    %c8_141 = arith.constant 8 : index
    %c0_142 = arith.constant 0 : index
    %c0_143 = arith.constant 0 : index
    %137 = vector.load %arg6[%c8_141, %c0_142, %c0_143] : memref<9x16x64xf32, #tpu.memory_space<vmem>>, vector<1x16x64xf32>
    %138 = vector.shape_cast %137 : vector<1x16x64xf32> to vector<16x64xf32>
    %cst_144 = arith.constant dense<0.000000e+00> : vector<16x64xf32>
    %139 = tpu.matmul %138, %79, %cst_144 {dimension_numbers = #tpu.dot_dimension_numbers<[1], [0], [0], [1], [0, 0, 1, 1], [], []>} : vector<16x64xf32>, vector<64x64xf32>, vector<16x64xf32> -> vector<16x64xf32>
    %c8_145 = arith.constant 8 : index
    %c0_146 = arith.constant 0 : index
    %c0_147 = arith.constant 0 : index
    %140 = vector.load %arg7[%c8_145, %c0_146, %c0_147] : memref<9x64x128xf32, #tpu.memory_space<vmem>>, vector<1x64x128xf32>
    %141 = vector.shape_cast %140 : vector<1x64x128xf32> to vector<64x128xf32>
    %cst_148 = arith.constant dense<0.000000e+00> : vector<16x128xf32>
    %142 = tpu.matmul %139, %141, %cst_148 {dimension_numbers = #tpu.dot_dimension_numbers<[1], [0], [0], [1], [0, 0, 1, 1], [], []>} : vector<16x64xf32>, vector<64x128xf32>, vector<16x128xf32> -> vector<16x128xf32>
    %143 = arith.addf %136, %142 : vector<16x128xf32>
    %c0_149 = arith.constant 0 : index
    %c0_150 = arith.constant 0 : index
    %144 = vector.load %arg8[%c0_149, %c0_150] : memref<1x128xf32, #tpu.memory_space<vmem>>, vector<1x128xf32>
    %145 = vector.broadcast %144 : vector<1x128xf32> to vector<16x128xf32>
    %146 = arith.addf %143, %145 : vector<16x128xf32>
    %cst_151 = arith.constant 0.000000e+00 : f32
    %147 = vector.broadcast %cst_151 : f32 to vector<16x128xf32>
    %148 = arith.maximumf %146, %147 : vector<16x128xf32>
    %c0_152 = arith.constant 0 : index
    %c0_153 = arith.constant 0 : index
    %149 = vector.load %arg10[%c0_152, %c0_153] : memref<1x2xf32, #tpu.memory_space<vmem>>, vector<1x2xf32>
    %c0_154 = arith.constant 0 : index
    %c0_155 = arith.constant 0 : index
    %150 = vector.load %arg12[%c0_154, %c0_155] : memref<1x2xf32, #tpu.memory_space<vmem>>, vector<1x2xf32>
    %151 = tpu.iota {dimensions = array<i32: 1>} : vector<1x2xi32>
    %c0_i32 = arith.constant 0 : i32
    %152 = vector.broadcast %c0_i32 : i32 to vector<1x2xi32>
    %153 = arith.cmpi eq, %151, %152 : vector<1x2xi32>
    %154 = arith.extui %153 : vector<1x2xi1> to vector<1x2xi32>
    %155 = arith.sitofp %154 : vector<1x2xi32> to vector<1x2xf32>
    %c0_156 = arith.constant 0 : index
    %c0_157 = arith.constant 0 : index
    %c0_158 = arith.constant 0 : index
    %156 = vector.load %arg9[%c0_156, %c0_157, %c0_158] : memref<2x16x128xf32, #tpu.memory_space<vmem>>, vector<1x16x128xf32>
    %157 = vector.shape_cast %156 : vector<1x16x128xf32> to vector<16x128xf32>
    %158 = arith.mulf %148, %157 : vector<16x128xf32>
    %159 = vector.shape_cast %158 : vector<16x128xf32> to vector<1x16x128xf32>
    %cst_159 = arith.constant dense<0.000000e+00> : vector<1xf32>
    %160 = vector.multi_reduction <add>, %159, %cst_159 [1, 2] : vector<1x16x128xf32> to vector<1xf32>
    %161 = vector.shape_cast %160 : vector<1xf32> to vector<1x1x1xf32>
    %162 = vector.extract %161[0, 0, 0] : f32 from vector<1x1x1xf32>
    %163 = vector.broadcast %162 : f32 to vector<1x1xf32>
    %c0_160 = arith.constant 0 : index
    %c0_161 = arith.constant 0 : index
    %c0_162 = arith.constant 0 : index
    %164 = vector.load %arg11[%c0_160, %c0_161, %c0_162] : memref<2x16x128xf32, #tpu.memory_space<vmem>>, vector<1x16x128xf32>
    %165 = vector.shape_cast %164 : vector<1x16x128xf32> to vector<16x128xf32>
    %166 = arith.mulf %148, %165 : vector<16x128xf32>
    %167 = vector.shape_cast %166 : vector<16x128xf32> to vector<1x16x128xf32>
    %cst_163 = arith.constant dense<0.000000e+00> : vector<1xf32>
    %168 = vector.multi_reduction <add>, %167, %cst_163 [1, 2] : vector<1x16x128xf32> to vector<1xf32>
    %169 = vector.shape_cast %168 : vector<1xf32> to vector<1x1x1xf32>
    %170 = vector.extract %169[0, 0, 0] : f32 from vector<1x1x1xf32>
    %171 = vector.broadcast %170 : f32 to vector<1x1xf32>
    %172 = vector.broadcast %163 : vector<1x1xf32> to vector<1x2xf32>
    %173 = arith.mulf %172, %155 : vector<1x2xf32>
    %174 = arith.addf %149, %173 : vector<1x2xf32>
    %175 = vector.broadcast %171 : vector<1x1xf32> to vector<1x2xf32>
    %176 = arith.mulf %175, %155 : vector<1x2xf32>
    %177 = arith.addf %150, %176 : vector<1x2xf32>
    %178 = tpu.iota {dimensions = array<i32: 1>} : vector<1x2xi32>
    %c1_i32 = arith.constant 1 : i32
    %179 = vector.broadcast %c1_i32 : i32 to vector<1x2xi32>
    %180 = arith.cmpi eq, %178, %179 : vector<1x2xi32>
    %181 = arith.extui %180 : vector<1x2xi1> to vector<1x2xi32>
    %182 = arith.sitofp %181 : vector<1x2xi32> to vector<1x2xf32>
    %c1_164 = arith.constant 1 : index
    %c0_165 = arith.constant 0 : index
    %c0_166 = arith.constant 0 : index
    %183 = vector.load %arg9[%c1_164, %c0_165, %c0_166] : memref<2x16x128xf32, #tpu.memory_space<vmem>>, vector<1x16x128xf32>
    %184 = vector.shape_cast %183 : vector<1x16x128xf32> to vector<16x128xf32>
    %185 = arith.mulf %148, %184 : vector<16x128xf32>
    %186 = vector.shape_cast %185 : vector<16x128xf32> to vector<1x16x128xf32>
    %cst_167 = arith.constant dense<0.000000e+00> : vector<1xf32>
    %187 = vector.multi_reduction <add>, %186, %cst_167 [1, 2] : vector<1x16x128xf32> to vector<1xf32>
    %188 = vector.shape_cast %187 : vector<1xf32> to vector<1x1x1xf32>
    %189 = vector.extract %188[0, 0, 0] : f32 from vector<1x1x1xf32>
    %190 = vector.broadcast %189 : f32 to vector<1x1xf32>
    %c1_168 = arith.constant 1 : index
    %c0_169 = arith.constant 0 : index
    %c0_170 = arith.constant 0 : index
    %191 = vector.load %arg11[%c1_168, %c0_169, %c0_170] : memref<2x16x128xf32, #tpu.memory_space<vmem>>, vector<1x16x128xf32>
    %192 = vector.shape_cast %191 : vector<1x16x128xf32> to vector<16x128xf32>
    %193 = arith.mulf %148, %192 : vector<16x128xf32>
    %194 = vector.shape_cast %193 : vector<16x128xf32> to vector<1x16x128xf32>
    %cst_171 = arith.constant dense<0.000000e+00> : vector<1xf32>
    %195 = vector.multi_reduction <add>, %194, %cst_171 [1, 2] : vector<1x16x128xf32> to vector<1xf32>
    %196 = vector.shape_cast %195 : vector<1xf32> to vector<1x1x1xf32>
    %197 = vector.extract %196[0, 0, 0] : f32 from vector<1x1x1xf32>
    %198 = vector.broadcast %197 : f32 to vector<1x1xf32>
    %199 = vector.broadcast %190 : vector<1x1xf32> to vector<1x2xf32>
    %200 = arith.mulf %199, %182 : vector<1x2xf32>
    %201 = arith.addf %174, %200 : vector<1x2xf32>
    %202 = vector.broadcast %198 : vector<1x1xf32> to vector<1x2xf32>
    %203 = arith.mulf %202, %182 : vector<1x2xf32>
    %204 = arith.addf %177, %203 : vector<1x2xf32>
    %205 = tpu.iota {dimensions = array<i32: 0>} : vector<2x1xi32>
    %c0_i32_172 = arith.constant 0 : i32
    %206 = vector.broadcast %c0_i32_172 : i32 to vector<2x1xi32>
    %207 = arith.cmpi eq, %205, %206 : vector<2x1xi32>
    %208 = arith.extui %207 : vector<2x1xi1> to vector<2x1xi32>
    %209 = arith.sitofp %208 : vector<2x1xi32> to vector<2x1xf32>
    %210 = vector.broadcast %209 : vector<2x1xf32> to vector<2x2xf32>
    %211 = vector.broadcast %201 : vector<1x2xf32> to vector<2x2xf32>
    %212 = arith.mulf %210, %211 : vector<2x2xf32>
    %213 = arith.addf %8, %212 : vector<2x2xf32>
    %214 = vector.broadcast %209 : vector<2x1xf32> to vector<2x2xf32>
    %215 = vector.broadcast %204 : vector<1x2xf32> to vector<2x2xf32>
    %216 = arith.mulf %214, %215 : vector<2x2xf32>
    %217 = arith.addf %9, %216 : vector<2x2xf32>
    %218 = vector.extract_strided_slice %7 {offsets = [256, 0], sizes = [256, 32], strides = [1, 1]} : vector<512x32xf32> to vector<256x32xf32>
    %cst_173 = arith.constant 0.000000e+00 : f32
    %219 = vector.broadcast %cst_173 : f32 to vector<64x64xf32>
    %c0_174 = arith.constant 0 : index
    %c0_175 = arith.constant 0 : index
    %c0_176 = arith.constant 0 : index
    %220 = vector.load %arg3[%c0_174, %c0_175, %c0_176] : memref<9x64x256xf32, #tpu.memory_space<vmem>>, vector<1x64x256xf32>
    %221 = vector.shape_cast %220 : vector<1x64x256xf32> to vector<64x256xf32>
    %cst_177 = arith.constant dense<0.000000e+00> : vector<64x32xf32>
    %222 = tpu.matmul %221, %218, %cst_177 {dimension_numbers = #tpu.dot_dimension_numbers<[1], [0], [0], [1], [0, 0, 1, 1], [], []>} : vector<64x256xf32>, vector<256x32xf32>, vector<64x32xf32> -> vector<64x32xf32>
    %c0_178 = arith.constant 0 : index
    %c0_179 = arith.constant 0 : index
    %c0_180 = arith.constant 0 : index
    %223 = vector.load %arg4[%c0_178, %c0_179, %c0_180] : memref<9x32x64xf32, #tpu.memory_space<vmem>>, vector<1x32x64xf32>
    %224 = vector.shape_cast %223 : vector<1x32x64xf32> to vector<32x64xf32>
    %cst_181 = arith.constant dense<0.000000e+00> : vector<64x64xf32>
    %225 = tpu.matmul %222, %224, %cst_181 {dimension_numbers = #tpu.dot_dimension_numbers<[1], [0], [0], [1], [0, 0, 1, 1], [], []>} : vector<64x32xf32>, vector<32x64xf32>, vector<64x64xf32> -> vector<64x64xf32>
    %226 = arith.addf %219, %225 : vector<64x64xf32>
    %c1_182 = arith.constant 1 : index
    %c0_183 = arith.constant 0 : index
    %c0_184 = arith.constant 0 : index
    %227 = vector.load %arg3[%c1_182, %c0_183, %c0_184] : memref<9x64x256xf32, #tpu.memory_space<vmem>>, vector<1x64x256xf32>
    %228 = vector.shape_cast %227 : vector<1x64x256xf32> to vector<64x256xf32>
    %cst_185 = arith.constant dense<0.000000e+00> : vector<64x32xf32>
    %229 = tpu.matmul %228, %218, %cst_185 {dimension_numbers = #tpu.dot_dimension_numbers<[1], [0], [0], [1], [0, 0, 1, 1], [], []>} : vector<64x256xf32>, vector<256x32xf32>, vector<64x32xf32> -> vector<64x32xf32>
    %c1_186 = arith.constant 1 : index
    %c0_187 = arith.constant 0 : index
    %c0_188 = arith.constant 0 : index
    %230 = vector.load %arg4[%c1_186, %c0_187, %c0_188] : memref<9x32x64xf32, #tpu.memory_space<vmem>>, vector<1x32x64xf32>
    %231 = vector.shape_cast %230 : vector<1x32x64xf32> to vector<32x64xf32>
    %cst_189 = arith.constant dense<0.000000e+00> : vector<64x64xf32>
    %232 = tpu.matmul %229, %231, %cst_189 {dimension_numbers = #tpu.dot_dimension_numbers<[1], [0], [0], [1], [0, 0, 1, 1], [], []>} : vector<64x32xf32>, vector<32x64xf32>, vector<64x64xf32> -> vector<64x64xf32>
    %233 = arith.addf %226, %232 : vector<64x64xf32>
    %c2_190 = arith.constant 2 : index
    %c0_191 = arith.constant 0 : index
    %c0_192 = arith.constant 0 : index
    %234 = vector.load %arg3[%c2_190, %c0_191, %c0_192] : memref<9x64x256xf32, #tpu.memory_space<vmem>>, vector<1x64x256xf32>
    %235 = vector.shape_cast %234 : vector<1x64x256xf32> to vector<64x256xf32>
    %cst_193 = arith.constant dense<0.000000e+00> : vector<64x32xf32>
    %236 = tpu.matmul %235, %218, %cst_193 {dimension_numbers = #tpu.dot_dimension_numbers<[1], [0], [0], [1], [0, 0, 1, 1], [], []>} : vector<64x256xf32>, vector<256x32xf32>, vector<64x32xf32> -> vector<64x32xf32>
    %c2_194 = arith.constant 2 : index
    %c0_195 = arith.constant 0 : index
    %c0_196 = arith.constant 0 : index
    %237 = vector.load %arg4[%c2_194, %c0_195, %c0_196] : memref<9x32x64xf32, #tpu.memory_space<vmem>>, vector<1x32x64xf32>
    %238 = vector.shape_cast %237 : vector<1x32x64xf32> to vector<32x64xf32>
    %cst_197 = arith.constant dense<0.000000e+00> : vector<64x64xf32>
    %239 = tpu.matmul %236, %238, %cst_197 {dimension_numbers = #tpu.dot_dimension_numbers<[1], [0], [0], [1], [0, 0, 1, 1], [], []>} : vector<64x32xf32>, vector<32x64xf32>, vector<64x64xf32> -> vector<64x64xf32>
    %240 = arith.addf %233, %239 : vector<64x64xf32>
    %c3_198 = arith.constant 3 : index
    %c0_199 = arith.constant 0 : index
    %c0_200 = arith.constant 0 : index
    %241 = vector.load %arg3[%c3_198, %c0_199, %c0_200] : memref<9x64x256xf32, #tpu.memory_space<vmem>>, vector<1x64x256xf32>
    %242 = vector.shape_cast %241 : vector<1x64x256xf32> to vector<64x256xf32>
    %cst_201 = arith.constant dense<0.000000e+00> : vector<64x32xf32>
    %243 = tpu.matmul %242, %218, %cst_201 {dimension_numbers = #tpu.dot_dimension_numbers<[1], [0], [0], [1], [0, 0, 1, 1], [], []>} : vector<64x256xf32>, vector<256x32xf32>, vector<64x32xf32> -> vector<64x32xf32>
    %c3_202 = arith.constant 3 : index
    %c0_203 = arith.constant 0 : index
    %c0_204 = arith.constant 0 : index
    %244 = vector.load %arg4[%c3_202, %c0_203, %c0_204] : memref<9x32x64xf32, #tpu.memory_space<vmem>>, vector<1x32x64xf32>
    %245 = vector.shape_cast %244 : vector<1x32x64xf32> to vector<32x64xf32>
    %cst_205 = arith.constant dense<0.000000e+00> : vector<64x64xf32>
    %246 = tpu.matmul %243, %245, %cst_205 {dimension_numbers = #tpu.dot_dimension_numbers<[1], [0], [0], [1], [0, 0, 1, 1], [], []>} : vector<64x32xf32>, vector<32x64xf32>, vector<64x64xf32> -> vector<64x64xf32>
    %247 = arith.addf %240, %246 : vector<64x64xf32>
    %c4_206 = arith.constant 4 : index
    %c0_207 = arith.constant 0 : index
    %c0_208 = arith.constant 0 : index
    %248 = vector.load %arg3[%c4_206, %c0_207, %c0_208] : memref<9x64x256xf32, #tpu.memory_space<vmem>>, vector<1x64x256xf32>
    %249 = vector.shape_cast %248 : vector<1x64x256xf32> to vector<64x256xf32>
    %cst_209 = arith.constant dense<0.000000e+00> : vector<64x32xf32>
    %250 = tpu.matmul %249, %218, %cst_209 {dimension_numbers = #tpu.dot_dimension_numbers<[1], [0], [0], [1], [0, 0, 1, 1], [], []>} : vector<64x256xf32>, vector<256x32xf32>, vector<64x32xf32> -> vector<64x32xf32>
    %c4_210 = arith.constant 4 : index
    %c0_211 = arith.constant 0 : index
    %c0_212 = arith.constant 0 : index
    %251 = vector.load %arg4[%c4_210, %c0_211, %c0_212] : memref<9x32x64xf32, #tpu.memory_space<vmem>>, vector<1x32x64xf32>
    %252 = vector.shape_cast %251 : vector<1x32x64xf32> to vector<32x64xf32>
    %cst_213 = arith.constant dense<0.000000e+00> : vector<64x64xf32>
    %253 = tpu.matmul %250, %252, %cst_213 {dimension_numbers = #tpu.dot_dimension_numbers<[1], [0], [0], [1], [0, 0, 1, 1], [], []>} : vector<64x32xf32>, vector<32x64xf32>, vector<64x64xf32> -> vector<64x64xf32>
    %254 = arith.addf %247, %253 : vector<64x64xf32>
    %c5_214 = arith.constant 5 : index
    %c0_215 = arith.constant 0 : index
    %c0_216 = arith.constant 0 : index
    %255 = vector.load %arg3[%c5_214, %c0_215, %c0_216] : memref<9x64x256xf32, #tpu.memory_space<vmem>>, vector<1x64x256xf32>
    %256 = vector.shape_cast %255 : vector<1x64x256xf32> to vector<64x256xf32>
    %cst_217 = arith.constant dense<0.000000e+00> : vector<64x32xf32>
    %257 = tpu.matmul %256, %218, %cst_217 {dimension_numbers = #tpu.dot_dimension_numbers<[1], [0], [0], [1], [0, 0, 1, 1], [], []>} : vector<64x256xf32>, vector<256x32xf32>, vector<64x32xf32> -> vector<64x32xf32>
    %c5_218 = arith.constant 5 : index
    %c0_219 = arith.constant 0 : index
    %c0_220 = arith.constant 0 : index
    %258 = vector.load %arg4[%c5_218, %c0_219, %c0_220] : memref<9x32x64xf32, #tpu.memory_space<vmem>>, vector<1x32x64xf32>
    %259 = vector.shape_cast %258 : vector<1x32x64xf32> to vector<32x64xf32>
    %cst_221 = arith.constant dense<0.000000e+00> : vector<64x64xf32>
    %260 = tpu.matmul %257, %259, %cst_221 {dimension_numbers = #tpu.dot_dimension_numbers<[1], [0], [0], [1], [0, 0, 1, 1], [], []>} : vector<64x32xf32>, vector<32x64xf32>, vector<64x64xf32> -> vector<64x64xf32>
    %261 = arith.addf %254, %260 : vector<64x64xf32>
    %c6_222 = arith.constant 6 : index
    %c0_223 = arith.constant 0 : index
    %c0_224 = arith.constant 0 : index
    %262 = vector.load %arg3[%c6_222, %c0_223, %c0_224] : memref<9x64x256xf32, #tpu.memory_space<vmem>>, vector<1x64x256xf32>
    %263 = vector.shape_cast %262 : vector<1x64x256xf32> to vector<64x256xf32>
    %cst_225 = arith.constant dense<0.000000e+00> : vector<64x32xf32>
    %264 = tpu.matmul %263, %218, %cst_225 {dimension_numbers = #tpu.dot_dimension_numbers<[1], [0], [0], [1], [0, 0, 1, 1], [], []>} : vector<64x256xf32>, vector<256x32xf32>, vector<64x32xf32> -> vector<64x32xf32>
    %c6_226 = arith.constant 6 : index
    %c0_227 = arith.constant 0 : index
    %c0_228 = arith.constant 0 : index
    %265 = vector.load %arg4[%c6_226, %c0_227, %c0_228] : memref<9x32x64xf32, #tpu.memory_space<vmem>>, vector<1x32x64xf32>
    %266 = vector.shape_cast %265 : vector<1x32x64xf32> to vector<32x64xf32>
    %cst_229 = arith.constant dense<0.000000e+00> : vector<64x64xf32>
    %267 = tpu.matmul %264, %266, %cst_229 {dimension_numbers = #tpu.dot_dimension_numbers<[1], [0], [0], [1], [0, 0, 1, 1], [], []>} : vector<64x32xf32>, vector<32x64xf32>, vector<64x64xf32> -> vector<64x64xf32>
    %268 = arith.addf %261, %267 : vector<64x64xf32>
    %c7_230 = arith.constant 7 : index
    %c0_231 = arith.constant 0 : index
    %c0_232 = arith.constant 0 : index
    %269 = vector.load %arg3[%c7_230, %c0_231, %c0_232] : memref<9x64x256xf32, #tpu.memory_space<vmem>>, vector<1x64x256xf32>
    %270 = vector.shape_cast %269 : vector<1x64x256xf32> to vector<64x256xf32>
    %cst_233 = arith.constant dense<0.000000e+00> : vector<64x32xf32>
    %271 = tpu.matmul %270, %218, %cst_233 {dimension_numbers = #tpu.dot_dimension_numbers<[1], [0], [0], [1], [0, 0, 1, 1], [], []>} : vector<64x256xf32>, vector<256x32xf32>, vector<64x32xf32> -> vector<64x32xf32>
    %c7_234 = arith.constant 7 : index
    %c0_235 = arith.constant 0 : index
    %c0_236 = arith.constant 0 : index
    %272 = vector.load %arg4[%c7_234, %c0_235, %c0_236] : memref<9x32x64xf32, #tpu.memory_space<vmem>>, vector<1x32x64xf32>
    %273 = vector.shape_cast %272 : vector<1x32x64xf32> to vector<32x64xf32>
    %cst_237 = arith.constant dense<0.000000e+00> : vector<64x64xf32>
    %274 = tpu.matmul %271, %273, %cst_237 {dimension_numbers = #tpu.dot_dimension_numbers<[1], [0], [0], [1], [0, 0, 1, 1], [], []>} : vector<64x32xf32>, vector<32x64xf32>, vector<64x64xf32> -> vector<64x64xf32>
    %275 = arith.addf %268, %274 : vector<64x64xf32>
    %c8_238 = arith.constant 8 : index
    %c0_239 = arith.constant 0 : index
    %c0_240 = arith.constant 0 : index
    %276 = vector.load %arg3[%c8_238, %c0_239, %c0_240] : memref<9x64x256xf32, #tpu.memory_space<vmem>>, vector<1x64x256xf32>
    %277 = vector.shape_cast %276 : vector<1x64x256xf32> to vector<64x256xf32>
    %cst_241 = arith.constant dense<0.000000e+00> : vector<64x32xf32>
    %278 = tpu.matmul %277, %218, %cst_241 {dimension_numbers = #tpu.dot_dimension_numbers<[1], [0], [0], [1], [0, 0, 1, 1], [], []>} : vector<64x256xf32>, vector<256x32xf32>, vector<64x32xf32> -> vector<64x32xf32>
    %c8_242 = arith.constant 8 : index
    %c0_243 = arith.constant 0 : index
    %c0_244 = arith.constant 0 : index
    %279 = vector.load %arg4[%c8_242, %c0_243, %c0_244] : memref<9x32x64xf32, #tpu.memory_space<vmem>>, vector<1x32x64xf32>
    %280 = vector.shape_cast %279 : vector<1x32x64xf32> to vector<32x64xf32>
    %cst_245 = arith.constant dense<0.000000e+00> : vector<64x64xf32>
    %281 = tpu.matmul %278, %280, %cst_245 {dimension_numbers = #tpu.dot_dimension_numbers<[1], [0], [0], [1], [0, 0, 1, 1], [], []>} : vector<64x32xf32>, vector<32x64xf32>, vector<64x64xf32> -> vector<64x64xf32>
    %282 = arith.addf %275, %281 : vector<64x64xf32>
    %c0_246 = arith.constant 0 : index
    %c0_247 = arith.constant 0 : index
    %283 = vector.load %arg5[%c0_246, %c0_247] : memref<1x64xf32, #tpu.memory_space<vmem>>, vector<1x64xf32>
    %284 = vector.broadcast %283 : vector<1x64xf32> to vector<64x64xf32>
    %285 = arith.addf %282, %284 : vector<64x64xf32>
    %cst_248 = arith.constant 0.000000e+00 : f32
    %286 = vector.broadcast %cst_248 : f32 to vector<64x64xf32>
    %287 = arith.maximumf %285, %286 : vector<64x64xf32>
    %cst_249 = arith.constant 0.000000e+00 : f32
    %288 = vector.broadcast %cst_249 : f32 to vector<16x128xf32>
    %c0_250 = arith.constant 0 : index
    %c0_251 = arith.constant 0 : index
    %c0_252 = arith.constant 0 : index
    %289 = vector.load %arg6[%c0_250, %c0_251, %c0_252] : memref<9x16x64xf32, #tpu.memory_space<vmem>>, vector<1x16x64xf32>
    %290 = vector.shape_cast %289 : vector<1x16x64xf32> to vector<16x64xf32>
    %cst_253 = arith.constant dense<0.000000e+00> : vector<16x64xf32>
    %291 = tpu.matmul %290, %287, %cst_253 {dimension_numbers = #tpu.dot_dimension_numbers<[1], [0], [0], [1], [0, 0, 1, 1], [], []>} : vector<16x64xf32>, vector<64x64xf32>, vector<16x64xf32> -> vector<16x64xf32>
    %c0_254 = arith.constant 0 : index
    %c0_255 = arith.constant 0 : index
    %c0_256 = arith.constant 0 : index
    %292 = vector.load %arg7[%c0_254, %c0_255, %c0_256] : memref<9x64x128xf32, #tpu.memory_space<vmem>>, vector<1x64x128xf32>
    %293 = vector.shape_cast %292 : vector<1x64x128xf32> to vector<64x128xf32>
    %cst_257 = arith.constant dense<0.000000e+00> : vector<16x128xf32>
    %294 = tpu.matmul %291, %293, %cst_257 {dimension_numbers = #tpu.dot_dimension_numbers<[1], [0], [0], [1], [0, 0, 1, 1], [], []>} : vector<16x64xf32>, vector<64x128xf32>, vector<16x128xf32> -> vector<16x128xf32>
    %295 = arith.addf %288, %294 : vector<16x128xf32>
    %c1_258 = arith.constant 1 : index
    %c0_259 = arith.constant 0 : index
    %c0_260 = arith.constant 0 : index
    %296 = vector.load %arg6[%c1_258, %c0_259, %c0_260] : memref<9x16x64xf32, #tpu.memory_space<vmem>>, vector<1x16x64xf32>
    %297 = vector.shape_cast %296 : vector<1x16x64xf32> to vector<16x64xf32>
    %cst_261 = arith.constant dense<0.000000e+00> : vector<16x64xf32>
    %298 = tpu.matmul %297, %287, %cst_261 {dimension_numbers = #tpu.dot_dimension_numbers<[1], [0], [0], [1], [0, 0, 1, 1], [], []>} : vector<16x64xf32>, vector<64x64xf32>, vector<16x64xf32> -> vector<16x64xf32>
    %c1_262 = arith.constant 1 : index
    %c0_263 = arith.constant 0 : index
    %c0_264 = arith.constant 0 : index
    %299 = vector.load %arg7[%c1_262, %c0_263, %c0_264] : memref<9x64x128xf32, #tpu.memory_space<vmem>>, vector<1x64x128xf32>
    %300 = vector.shape_cast %299 : vector<1x64x128xf32> to vector<64x128xf32>
    %cst_265 = arith.constant dense<0.000000e+00> : vector<16x128xf32>
    %301 = tpu.matmul %298, %300, %cst_265 {dimension_numbers = #tpu.dot_dimension_numbers<[1], [0], [0], [1], [0, 0, 1, 1], [], []>} : vector<16x64xf32>, vector<64x128xf32>, vector<16x128xf32> -> vector<16x128xf32>
    %302 = arith.addf %295, %301 : vector<16x128xf32>
    %c2_266 = arith.constant 2 : index
    %c0_267 = arith.constant 0 : index
    %c0_268 = arith.constant 0 : index
    %303 = vector.load %arg6[%c2_266, %c0_267, %c0_268] : memref<9x16x64xf32, #tpu.memory_space<vmem>>, vector<1x16x64xf32>
    %304 = vector.shape_cast %303 : vector<1x16x64xf32> to vector<16x64xf32>
    %cst_269 = arith.constant dense<0.000000e+00> : vector<16x64xf32>
    %305 = tpu.matmul %304, %287, %cst_269 {dimension_numbers = #tpu.dot_dimension_numbers<[1], [0], [0], [1], [0, 0, 1, 1], [], []>} : vector<16x64xf32>, vector<64x64xf32>, vector<16x64xf32> -> vector<16x64xf32>
    %c2_270 = arith.constant 2 : index
    %c0_271 = arith.constant 0 : index
    %c0_272 = arith.constant 0 : index
    %306 = vector.load %arg7[%c2_270, %c0_271, %c0_272] : memref<9x64x128xf32, #tpu.memory_space<vmem>>, vector<1x64x128xf32>
    %307 = vector.shape_cast %306 : vector<1x64x128xf32> to vector<64x128xf32>
    %cst_273 = arith.constant dense<0.000000e+00> : vector<16x128xf32>
    %308 = tpu.matmul %305, %307, %cst_273 {dimension_numbers = #tpu.dot_dimension_numbers<[1], [0], [0], [1], [0, 0, 1, 1], [], []>} : vector<16x64xf32>, vector<64x128xf32>, vector<16x128xf32> -> vector<16x128xf32>
    %309 = arith.addf %302, %308 : vector<16x128xf32>
    %c3_274 = arith.constant 3 : index
    %c0_275 = arith.constant 0 : index
    %c0_276 = arith.constant 0 : index
    %310 = vector.load %arg6[%c3_274, %c0_275, %c0_276] : memref<9x16x64xf32, #tpu.memory_space<vmem>>, vector<1x16x64xf32>
    %311 = vector.shape_cast %310 : vector<1x16x64xf32> to vector<16x64xf32>
    %cst_277 = arith.constant dense<0.000000e+00> : vector<16x64xf32>
    %312 = tpu.matmul %311, %287, %cst_277 {dimension_numbers = #tpu.dot_dimension_numbers<[1], [0], [0], [1], [0, 0, 1, 1], [], []>} : vector<16x64xf32>, vector<64x64xf32>, vector<16x64xf32> -> vector<16x64xf32>
    %c3_278 = arith.constant 3 : index
    %c0_279 = arith.constant 0 : index
    %c0_280 = arith.constant 0 : index
    %313 = vector.load %arg7[%c3_278, %c0_279, %c0_280] : memref<9x64x128xf32, #tpu.memory_space<vmem>>, vector<1x64x128xf32>
    %314 = vector.shape_cast %313 : vector<1x64x128xf32> to vector<64x128xf32>
    %cst_281 = arith.constant dense<0.000000e+00> : vector<16x128xf32>
    %315 = tpu.matmul %312, %314, %cst_281 {dimension_numbers = #tpu.dot_dimension_numbers<[1], [0], [0], [1], [0, 0, 1, 1], [], []>} : vector<16x64xf32>, vector<64x128xf32>, vector<16x128xf32> -> vector<16x128xf32>
    %316 = arith.addf %309, %315 : vector<16x128xf32>
    %c4_282 = arith.constant 4 : index
    %c0_283 = arith.constant 0 : index
    %c0_284 = arith.constant 0 : index
    %317 = vector.load %arg6[%c4_282, %c0_283, %c0_284] : memref<9x16x64xf32, #tpu.memory_space<vmem>>, vector<1x16x64xf32>
    %318 = vector.shape_cast %317 : vector<1x16x64xf32> to vector<16x64xf32>
    %cst_285 = arith.constant dense<0.000000e+00> : vector<16x64xf32>
    %319 = tpu.matmul %318, %287, %cst_285 {dimension_numbers = #tpu.dot_dimension_numbers<[1], [0], [0], [1], [0, 0, 1, 1], [], []>} : vector<16x64xf32>, vector<64x64xf32>, vector<16x64xf32> -> vector<16x64xf32>
    %c4_286 = arith.constant 4 : index
    %c0_287 = arith.constant 0 : index
    %c0_288 = arith.constant 0 : index
    %320 = vector.load %arg7[%c4_286, %c0_287, %c0_288] : memref<9x64x128xf32, #tpu.memory_space<vmem>>, vector<1x64x128xf32>
    %321 = vector.shape_cast %320 : vector<1x64x128xf32> to vector<64x128xf32>
    %cst_289 = arith.constant dense<0.000000e+00> : vector<16x128xf32>
    %322 = tpu.matmul %319, %321, %cst_289 {dimension_numbers = #tpu.dot_dimension_numbers<[1], [0], [0], [1], [0, 0, 1, 1], [], []>} : vector<16x64xf32>, vector<64x128xf32>, vector<16x128xf32> -> vector<16x128xf32>
    %323 = arith.addf %316, %322 : vector<16x128xf32>
    %c5_290 = arith.constant 5 : index
    %c0_291 = arith.constant 0 : index
    %c0_292 = arith.constant 0 : index
    %324 = vector.load %arg6[%c5_290, %c0_291, %c0_292] : memref<9x16x64xf32, #tpu.memory_space<vmem>>, vector<1x16x64xf32>
    %325 = vector.shape_cast %324 : vector<1x16x64xf32> to vector<16x64xf32>
    %cst_293 = arith.constant dense<0.000000e+00> : vector<16x64xf32>
    %326 = tpu.matmul %325, %287, %cst_293 {dimension_numbers = #tpu.dot_dimension_numbers<[1], [0], [0], [1], [0, 0, 1, 1], [], []>} : vector<16x64xf32>, vector<64x64xf32>, vector<16x64xf32> -> vector<16x64xf32>
    %c5_294 = arith.constant 5 : index
    %c0_295 = arith.constant 0 : index
    %c0_296 = arith.constant 0 : index
    %327 = vector.load %arg7[%c5_294, %c0_295, %c0_296] : memref<9x64x128xf32, #tpu.memory_space<vmem>>, vector<1x64x128xf32>
    %328 = vector.shape_cast %327 : vector<1x64x128xf32> to vector<64x128xf32>
    %cst_297 = arith.constant dense<0.000000e+00> : vector<16x128xf32>
    %329 = tpu.matmul %326, %328, %cst_297 {dimension_numbers = #tpu.dot_dimension_numbers<[1], [0], [0], [1], [0, 0, 1, 1], [], []>} : vector<16x64xf32>, vector<64x128xf32>, vector<16x128xf32> -> vector<16x128xf32>
    %330 = arith.addf %323, %329 : vector<16x128xf32>
    %c6_298 = arith.constant 6 : index
    %c0_299 = arith.constant 0 : index
    %c0_300 = arith.constant 0 : index
    %331 = vector.load %arg6[%c6_298, %c0_299, %c0_300] : memref<9x16x64xf32, #tpu.memory_space<vmem>>, vector<1x16x64xf32>
    %332 = vector.shape_cast %331 : vector<1x16x64xf32> to vector<16x64xf32>
    %cst_301 = arith.constant dense<0.000000e+00> : vector<16x64xf32>
    %333 = tpu.matmul %332, %287, %cst_301 {dimension_numbers = #tpu.dot_dimension_numbers<[1], [0], [0], [1], [0, 0, 1, 1], [], []>} : vector<16x64xf32>, vector<64x64xf32>, vector<16x64xf32> -> vector<16x64xf32>
    %c6_302 = arith.constant 6 : index
    %c0_303 = arith.constant 0 : index
    %c0_304 = arith.constant 0 : index
    %334 = vector.load %arg7[%c6_302, %c0_303, %c0_304] : memref<9x64x128xf32, #tpu.memory_space<vmem>>, vector<1x64x128xf32>
    %335 = vector.shape_cast %334 : vector<1x64x128xf32> to vector<64x128xf32>
    %cst_305 = arith.constant dense<0.000000e+00> : vector<16x128xf32>
    %336 = tpu.matmul %333, %335, %cst_305 {dimension_numbers = #tpu.dot_dimension_numbers<[1], [0], [0], [1], [0, 0, 1, 1], [], []>} : vector<16x64xf32>, vector<64x128xf32>, vector<16x128xf32> -> vector<16x128xf32>
    %337 = arith.addf %330, %336 : vector<16x128xf32>
    %c7_306 = arith.constant 7 : index
    %c0_307 = arith.constant 0 : index
    %c0_308 = arith.constant 0 : index
    %338 = vector.load %arg6[%c7_306, %c0_307, %c0_308] : memref<9x16x64xf32, #tpu.memory_space<vmem>>, vector<1x16x64xf32>
    %339 = vector.shape_cast %338 : vector<1x16x64xf32> to vector<16x64xf32>
    %cst_309 = arith.constant dense<0.000000e+00> : vector<16x64xf32>
    %340 = tpu.matmul %339, %287, %cst_309 {dimension_numbers = #tpu.dot_dimension_numbers<[1], [0], [0], [1], [0, 0, 1, 1], [], []>} : vector<16x64xf32>, vector<64x64xf32>, vector<16x64xf32> -> vector<16x64xf32>
    %c7_310 = arith.constant 7 : index
    %c0_311 = arith.constant 0 : index
    %c0_312 = arith.constant 0 : index
    %341 = vector.load %arg7[%c7_310, %c0_311, %c0_312] : memref<9x64x128xf32, #tpu.memory_space<vmem>>, vector<1x64x128xf32>
    %342 = vector.shape_cast %341 : vector<1x64x128xf32> to vector<64x128xf32>
    %cst_313 = arith.constant dense<0.000000e+00> : vector<16x128xf32>
    %343 = tpu.matmul %340, %342, %cst_313 {dimension_numbers = #tpu.dot_dimension_numbers<[1], [0], [0], [1], [0, 0, 1, 1], [], []>} : vector<16x64xf32>, vector<64x128xf32>, vector<16x128xf32> -> vector<16x128xf32>
    %344 = arith.addf %337, %343 : vector<16x128xf32>
    %c8_314 = arith.constant 8 : index
    %c0_315 = arith.constant 0 : index
    %c0_316 = arith.constant 0 : index
    %345 = vector.load %arg6[%c8_314, %c0_315, %c0_316] : memref<9x16x64xf32, #tpu.memory_space<vmem>>, vector<1x16x64xf32>
    %346 = vector.shape_cast %345 : vector<1x16x64xf32> to vector<16x64xf32>
    %cst_317 = arith.constant dense<0.000000e+00> : vector<16x64xf32>
    %347 = tpu.matmul %346, %287, %cst_317 {dimension_numbers = #tpu.dot_dimension_numbers<[1], [0], [0], [1], [0, 0, 1, 1], [], []>} : vector<16x64xf32>, vector<64x64xf32>, vector<16x64xf32> -> vector<16x64xf32>
    %c8_318 = arith.constant 8 : index
    %c0_319 = arith.constant 0 : index
    %c0_320 = arith.constant 0 : index
    %348 = vector.load %arg7[%c8_318, %c0_319, %c0_320] : memref<9x64x128xf32, #tpu.memory_space<vmem>>, vector<1x64x128xf32>
    %349 = vector.shape_cast %348 : vector<1x64x128xf32> to vector<64x128xf32>
    %cst_321 = arith.constant dense<0.000000e+00> : vector<16x128xf32>
    %350 = tpu.matmul %347, %349, %cst_321 {dimension_numbers = #tpu.dot_dimension_numbers<[1], [0], [0], [1], [0, 0, 1, 1], [], []>} : vector<16x64xf32>, vector<64x128xf32>, vector<16x128xf32> -> vector<16x128xf32>
    %351 = arith.addf %344, %350 : vector<16x128xf32>
    %c0_322 = arith.constant 0 : index
    %c0_323 = arith.constant 0 : index
    %352 = vector.load %arg8[%c0_322, %c0_323] : memref<1x128xf32, #tpu.memory_space<vmem>>, vector<1x128xf32>
    %353 = vector.broadcast %352 : vector<1x128xf32> to vector<16x128xf32>
    %354 = arith.addf %351, %353 : vector<16x128xf32>
    %cst_324 = arith.constant 0.000000e+00 : f32
    %355 = vector.broadcast %cst_324 : f32 to vector<16x128xf32>
    %356 = arith.maximumf %354, %355 : vector<16x128xf32>
    %c0_325 = arith.constant 0 : index
    %c0_326 = arith.constant 0 : index
    %357 = vector.load %arg10[%c0_325, %c0_326] : memref<1x2xf32, #tpu.memory_space<vmem>>, vector<1x2xf32>
    %c0_327 = arith.constant 0 : index
    %c0_328 = arith.constant 0 : index
    %358 = vector.load %arg12[%c0_327, %c0_328] : memref<1x2xf32, #tpu.memory_space<vmem>>, vector<1x2xf32>
    %359 = tpu.iota {dimensions = array<i32: 1>} : vector<1x2xi32>
    %c0_i32_329 = arith.constant 0 : i32
    %360 = vector.broadcast %c0_i32_329 : i32 to vector<1x2xi32>
    %361 = arith.cmpi eq, %359, %360 : vector<1x2xi32>
    %362 = arith.extui %361 : vector<1x2xi1> to vector<1x2xi32>
    %363 = arith.sitofp %362 : vector<1x2xi32> to vector<1x2xf32>
    %c0_330 = arith.constant 0 : index
    %c0_331 = arith.constant 0 : index
    %c0_332 = arith.constant 0 : index
    %364 = vector.load %arg9[%c0_330, %c0_331, %c0_332] : memref<2x16x128xf32, #tpu.memory_space<vmem>>, vector<1x16x128xf32>
    %365 = vector.shape_cast %364 : vector<1x16x128xf32> to vector<16x128xf32>
    %366 = arith.mulf %356, %365 : vector<16x128xf32>
    %367 = vector.shape_cast %366 : vector<16x128xf32> to vector<1x16x128xf32>
    %cst_333 = arith.constant dense<0.000000e+00> : vector<1xf32>
    %368 = vector.multi_reduction <add>, %367, %cst_333 [1, 2] : vector<1x16x128xf32> to vector<1xf32>
    %369 = vector.shape_cast %368 : vector<1xf32> to vector<1x1x1xf32>
    %370 = vector.extract %369[0, 0, 0] : f32 from vector<1x1x1xf32>
    %371 = vector.broadcast %370 : f32 to vector<1x1xf32>
    %c0_334 = arith.constant 0 : index
    %c0_335 = arith.constant 0 : index
    %c0_336 = arith.constant 0 : index
    %372 = vector.load %arg11[%c0_334, %c0_335, %c0_336] : memref<2x16x128xf32, #tpu.memory_space<vmem>>, vector<1x16x128xf32>
    %373 = vector.shape_cast %372 : vector<1x16x128xf32> to vector<16x128xf32>
    %374 = arith.mulf %356, %373 : vector<16x128xf32>
    %375 = vector.shape_cast %374 : vector<16x128xf32> to vector<1x16x128xf32>
    %cst_337 = arith.constant dense<0.000000e+00> : vector<1xf32>
    %376 = vector.multi_reduction <add>, %375, %cst_337 [1, 2] : vector<1x16x128xf32> to vector<1xf32>
    %377 = vector.shape_cast %376 : vector<1xf32> to vector<1x1x1xf32>
    %378 = vector.extract %377[0, 0, 0] : f32 from vector<1x1x1xf32>
    %379 = vector.broadcast %378 : f32 to vector<1x1xf32>
    %380 = vector.broadcast %371 : vector<1x1xf32> to vector<1x2xf32>
    %381 = arith.mulf %380, %363 : vector<1x2xf32>
    %382 = arith.addf %357, %381 : vector<1x2xf32>
    %383 = vector.broadcast %379 : vector<1x1xf32> to vector<1x2xf32>
    %384 = arith.mulf %383, %363 : vector<1x2xf32>
    %385 = arith.addf %358, %384 : vector<1x2xf32>
    %386 = tpu.iota {dimensions = array<i32: 1>} : vector<1x2xi32>
    %c1_i32_338 = arith.constant 1 : i32
    %387 = vector.broadcast %c1_i32_338 : i32 to vector<1x2xi32>
    %388 = arith.cmpi eq, %386, %387 : vector<1x2xi32>
    %389 = arith.extui %388 : vector<1x2xi1> to vector<1x2xi32>
    %390 = arith.sitofp %389 : vector<1x2xi32> to vector<1x2xf32>
    %c1_339 = arith.constant 1 : index
    %c0_340 = arith.constant 0 : index
    %c0_341 = arith.constant 0 : index
    %391 = vector.load %arg9[%c1_339, %c0_340, %c0_341] : memref<2x16x128xf32, #tpu.memory_space<vmem>>, vector<1x16x128xf32>
    %392 = vector.shape_cast %391 : vector<1x16x128xf32> to vector<16x128xf32>
    %393 = arith.mulf %356, %392 : vector<16x128xf32>
    %394 = vector.shape_cast %393 : vector<16x128xf32> to vector<1x16x128xf32>
    %cst_342 = arith.constant dense<0.000000e+00> : vector<1xf32>
    %395 = vector.multi_reduction <add>, %394, %cst_342 [1, 2] : vector<1x16x128xf32> to vector<1xf32>
    %396 = vector.shape_cast %395 : vector<1xf32> to vector<1x1x1xf32>
    %397 = vector.extract %396[0, 0, 0] : f32 from vector<1x1x1xf32>
    %398 = vector.broadcast %397 : f32 to vector<1x1xf32>
    %c1_343 = arith.constant 1 : index
    %c0_344 = arith.constant 0 : index
    %c0_345 = arith.constant 0 : index
    %399 = vector.load %arg11[%c1_343, %c0_344, %c0_345] : memref<2x16x128xf32, #tpu.memory_space<vmem>>, vector<1x16x128xf32>
    %400 = vector.shape_cast %399 : vector<1x16x128xf32> to vector<16x128xf32>
    %401 = arith.mulf %356, %400 : vector<16x128xf32>
    %402 = vector.shape_cast %401 : vector<16x128xf32> to vector<1x16x128xf32>
    %cst_346 = arith.constant dense<0.000000e+00> : vector<1xf32>
    %403 = vector.multi_reduction <add>, %402, %cst_346 [1, 2] : vector<1x16x128xf32> to vector<1xf32>
    %404 = vector.shape_cast %403 : vector<1xf32> to vector<1x1x1xf32>
    %405 = vector.extract %404[0, 0, 0] : f32 from vector<1x1x1xf32>
    %406 = vector.broadcast %405 : f32 to vector<1x1xf32>
    %407 = vector.broadcast %398 : vector<1x1xf32> to vector<1x2xf32>
    %408 = arith.mulf %407, %390 : vector<1x2xf32>
    %409 = arith.addf %382, %408 : vector<1x2xf32>
    %410 = vector.broadcast %406 : vector<1x1xf32> to vector<1x2xf32>
    %411 = arith.mulf %410, %390 : vector<1x2xf32>
    %412 = arith.addf %385, %411 : vector<1x2xf32>
    %413 = tpu.iota {dimensions = array<i32: 0>} : vector<2x1xi32>
    %c1_i32_347 = arith.constant 1 : i32
    %414 = vector.broadcast %c1_i32_347 : i32 to vector<2x1xi32>
    %415 = arith.cmpi eq, %413, %414 : vector<2x1xi32>
    %416 = arith.extui %415 : vector<2x1xi1> to vector<2x1xi32>
    %417 = arith.sitofp %416 : vector<2x1xi32> to vector<2x1xf32>
    %418 = vector.broadcast %417 : vector<2x1xf32> to vector<2x2xf32>
    %419 = vector.broadcast %409 : vector<1x2xf32> to vector<2x2xf32>
    %420 = arith.mulf %418, %419 : vector<2x2xf32>
    %421 = arith.addf %213, %420 : vector<2x2xf32>
    %422 = vector.broadcast %417 : vector<2x1xf32> to vector<2x2xf32>
    %423 = vector.broadcast %412 : vector<1x2xf32> to vector<2x2xf32>
    %424 = arith.mulf %422, %423 : vector<2x2xf32>
    %425 = arith.addf %217, %424 : vector<2x2xf32>
    %c0_348 = arith.constant 0 : index
    %c0_349 = arith.constant 0 : index
    %426 = vector.load %arg13[%c0_348, %c0_349] : memref<2x2xf32, #tpu.memory_space<vmem>>, vector<2x2xf32>
    tpu.vector_store %arg13[%c0_348, %c0_349], %421 {strides = array<i32>} : memref<2x2xf32, #tpu.memory_space<vmem>>, vector<2x2xf32>,
    %c0_350 = arith.constant 0 : index
    %c0_351 = arith.constant 0 : index
    %427 = vector.load %arg14[%c0_350, %c0_351] : memref<2x2xf32, #tpu.memory_space<vmem>>, vector<2x2xf32>
    tpu.vector_store %arg14[%c0_350, %c0_351], %421 {strides = array<i32>} : memref<2x2xf32, #tpu.memory_space<vmem>>, vector<2x2xf32>,
    %c0_352 = arith.constant 0 : index
    %c0_353 = arith.constant 0 : index
    %428 = vector.load %arg15[%c0_352, %c0_353] : memref<2x2xf32, #tpu.memory_space<vmem>>, vector<2x2xf32>
    tpu.vector_store %arg15[%c0_352, %c0_353], %425 {strides = array<i32>} : memref<2x2xf32, #tpu.memory_space<vmem>>, vector<2x2xf32>,
    return
  }
}

</mosaic_0001>

<bundles_post_ra>
// kernel: encoder_forward.1
= control target key start
LH: loop header
LB: loop body
LE: loop exit
PB: predicated region body
PF: predicated region fallthrough
CT: control target
= control target key end

     0   :  { %21 = vsyncpa [#allocation3], 0  ;;  %vm315_vm0 = vcmask 1040384   ;;  %vm13616_vm1 = vmmov 1   ;;  %vm122_vm3 = vcmask 72704   ;;  %s16763_s0 = inlined_call_operand.vmem [shape: f32[512,9], index: 0, kind: input, shape index: {}]   ;;  %s16764_s1 = inlined_call_operand.vmem [shape: f32[9,32], index: 1, kind: input, shape index: {}]   ;;  %s16765_s2 = inlined_call_operand.vmem [shape: f32[1,32], index: 2, kind: input, shape index: {}]   ;;  %s16766_s3 = inlined_call_operand.vmem [shape: f32[9,64,256], index: 3, kind: input, shape index: {}]   ;;  %s16767_s4 = inlined_call_operand.vmem [shape: f32[9,32,64], index: 4, kind: input, shape index: {}]   ;;  %s16768_s5 = inlined_call_operand.vmem [shape: f32[1,64], index: 5, kind: input, shape index: {}]   ;;  %s16769_s6 = inlined_call_operand.vmem [shape: f32[9,16,64], index: 6, kind: input, shape index: {}]   ;;  %s16770_s7 = inlined_call_operand.vmem [shape: f32[9,64,128], index: 7, kind: input, shape index: {}]   ;;  %s16771_s8 = inlined_call_operand.vmem [shape: f32[1,128], index: 8, kind: input, shape index: {}]   ;;  %s16772_s9 = inlined_call_operand.vmem [shape: f32[2,16,128], index: 9, kind: input, shape index: {}]   ;;  %s16773_s10 = inlined_call_operand.vmem [shape: f32[1,2], index: 10, kind: input, shape index: {}]   ;;  %s16774_s11 = inlined_call_operand.vmem [shape: f32[2,16,128], index: 11, kind: input, shape index: {}]   ;;  %s16775_s12 = inlined_call_operand.vmem [shape: f32[1,2], index: 12, kind: input, shape index: {}]   ;;  %s16776_s13 = inlined_call_operand.hbm [shape: f32[2,2], index: 13, kind: output, shape index: {0}]   ;;  %s16777_s14 = inlined_call_operand.hbm [shape: f32[2,2], index: 14, kind: output, shape index: {1}]   ;;  %s16778_s15 = inlined_call_operand.hbm [shape: f32[2,2], index: 15, kind: output, shape index: {2}]  }
   0x1   :  { %v113_v0 = vld [vmem:[%s16764_s1] sm:$0xff]  ;;  %v114_v1 = vld [vmem:[%s16764_s1 + $0x8] sm:$0x1]  ;;  %vm11892_vm2 = vmpackc.low %vm315_vm0, %vm13616_vm1 }
   0x2   :  { %v49_v2 = vld [vmem:[%s16763_s0] sm:$0xff]  ;;  %v11891_v3 = vpack.c.bf16 %v114_v1, %v113_v0  ;;  %v50_v4 = vld [vmem:[%s16763_s0 + $0x8] sm:$0xff]  ;;  %v51_v5 = vld [vmem:[%s16763_s0 + $0x10] sm:$0xff] }
   0x3   :  { %10751 = vmatprep.mubr.msk.f32.mxu0 %vm122_vm3, %v49_v2  ;;  %v52_v6 = vld [vmem:[%s16763_s0 + $0x18] sm:$0xff]  ;;  %v53_v7 = vld [vmem:[%s16763_s0 + $0x20] sm:$0xff] }
   0x4   :  { %11893 = vmatprep.subr.msk.bf16.mxu0 %vm11892_vm2, %v11891_v3 }
   0x5   :  { %11896 = vmatpush3.bf16.msk.msra.mxu0 %vm11892_vm2, %v11891_v3 }
   0x8   :  { %10752 = vmatmul.mubr.msk.f32.vlgmr.msra.gmra.mrb[0].mxu0 %vm122_vm3, %v50_v4 }
   0x9   :  { %10754 = vmatprep.mubr.msk.f32.mxu0 %vm122_vm3, %v51_v5 }
   0xc   :  { %10755 = vmatmul.mubr.msk.f32.gmra.mrb[2].mxu0 %vm122_vm3, %v52_v6 }
   0xd   :  { %22 = vsyncpa [#allocation5], 0  ;;  %10757 = vmatprep.mubr.msk.f32.mxu0 %vm122_vm3, %v53_v7  ;;  %v54_v8 = vld [vmem:[%s16763_s0 + $0x28] sm:$0xff]  ;;  %v55_v9 = vld [vmem:[%s16763_s0 + $0x30] sm:$0xff]  ;;  %vm1020_vm4 = vcmask 261120   ;;  %vm3152_vm5 = vcmask 523264  }
   0xe   :  { %v56_v10 = vld [vmem:[%s16763_s0 + $0x38] sm:$0xff]  ;;  %v57_v11 = vld [vmem:[%s16763_s0 + $0x40] sm:$0xff]  ;;  %v58_v12 = vld [vmem:[%s16763_s0 + $0x48] sm:$0xff]  ;;  %s13619_s20 = smov [#allocation2]   ;;  %vm8520_vm10 = vcmask 9216   ;;  %s13620_s22 = smov [#allocation6]  }
   0xf   :  { %v59_v13 = vld [vmem:[%s16763_s0 + $0x50] sm:$0xff]  ;;  %v60_v14 = vld [vmem:[%s16763_s0 + $0x58] sm:$0xff]  ;;  %v61_v15 = vld [vmem:[%s16763_s0 + $0x60] sm:$0xff]  ;;  %s8530_s21 = sshll.u32 %s13619_s20, 4  ;;  %s16710_s21 = int_to_ptr.vmem [resolvable:$true] %s8530_s21 }
  0x10   :  { %10758 = vmatmul.mubr.msk.f32.gmra.mrb[4].mxu0 %vm122_vm3, %v54_v8  ;;  %v62_v16 = vld [vmem:[%s16763_s0 + $0x68] sm:$0xff]  ;;  %v63_v17 = vld [vmem:[%s16763_s0 + $0x70] sm:$0xff]  ;;  %v64_v18 = vld [vmem:[%s16763_s0 + $0x78] sm:$0xff] }
  0x11   :  { %10760 = vmatprep.mubr.msk.f32.mxu0 %vm122_vm3, %v55_v9  ;;  %v65_v19 = vld [vmem:[%s16763_s0 + $0x80] sm:$0xff]  ;;  %v66_v20 = vld [vmem:[%s16763_s0 + $0x88] sm:$0xff]  ;;  %v67_v21 = vld [vmem:[%s16763_s0 + $0x90] sm:$0xff] }
  0x12   :  { %v68_v22 = vld [vmem:[%s16763_s0 + $0x98] sm:$0xff]  ;;  %v69_v23 = vld [vmem:[%s16763_s0 + $0xa0] sm:$0xff]  ;;  %v70_v24 = vld [vmem:[%s16763_s0 + $0xa8] sm:$0xff] }
  0x13   :  { %v71_v25 = vld [vmem:[%s16763_s0 + $0xb0] sm:$0xff]  ;;  %v72_v26 = vld [vmem:[%s16763_s0 + $0xb8] sm:$0xff]  ;;  %v73_v27 = vld [vmem:[%s16763_s0 + $0xc0] sm:$0xff] }
  0x14   :  { %10761 = vmatmul.mubr.msk.f32.gmra.mrb[6].mxu0 %vm122_vm3, %v56_v10  ;;  %v74_v28 = vld [vmem:[%s16763_s0 + $0xc8] sm:$0xff]  ;;  %v75_v29 = vld [vmem:[%s16763_s0 + $0xd0] sm:$0xff]  ;;  %v76_v30 = vld [vmem:[%s16763_s0 + $0xd8] sm:$0xff] }
  0x15   :  { %10763 = vmatprep.mubr.msk.f32.mxu0 %vm122_vm3, %v57_v11  ;;  %v77_v31 = vld [vmem:[%s16763_s0 + $0xe0] sm:$0xff]  ;;  %v78_v32 = vld [vmem:[%s16763_s0 + $0xe8] sm:$0xff]  ;;  %v79_v33 = vld [vmem:[%s16763_s0 + $0xf0] sm:$0xff] }
  0x16   :  { %v80_v34 = vld [vmem:[%s16763_s0 + $0xf8] sm:$0xff]  ;;  %v81_v35 = vld [vmem:[%s16763_s0 + $0x100] sm:$0xff]  ;;  %v82_v36 = vld [vmem:[%s16763_s0 + $0x108] sm:$0xff] }
  0x17   :  { %v83_v37 = vld [vmem:[%s16763_s0 + $0x110] sm:$0xff]  ;;  %v84_v38 = vld [vmem:[%s16763_s0 + $0x118] sm:$0xff]  ;;  %v85_v39 = vld [vmem:[%s16763_s0 + $0x120] sm:$0xff] }
  0x18   :  { %10764 = vmatmul.mubr.msk.f32.gmra.mrb[8].mxu0 %vm122_vm3, %v58_v12  ;;  %v86_v40 = vld [vmem:[%s16763_s0 + $0x128] sm:$0xff]  ;;  %v87_v41 = vld [vmem:[%s16763_s0 + $0x130] sm:$0xff]  ;;  %v88_v42 = vld [vmem:[%s16763_s0 + $0x138] sm:$0xff] }
  0x19   :  { %10766 = vmatprep.mubr.msk.f32.mxu0 %vm122_vm3, %v59_v13  ;;  %v89_v43 = vld [vmem:[%s16763_s0 + $0x140] sm:$0xff]  ;;  %v90_v44 = vld [vmem:[%s16763_s0 + $0x148] sm:$0xff]  ;;  %v91_v45 = vld [vmem:[%s16763_s0 + $0x150] sm:$0xff] }
  0x1a   :  { %v92_v46 = vld [vmem:[%s16763_s0 + $0x158] sm:$0xff]  ;;  %v93_v47 = vld [vmem:[%s16763_s0 + $0x160] sm:$0xff]  ;;  %v94_v48 = vld [vmem:[%s16763_s0 + $0x168] sm:$0xff] }
  0x1b   :  { %v95_v49 = vld [vmem:[%s16763_s0 + $0x170] sm:$0xff]  ;;  %v96_v50 = vld [vmem:[%s16763_s0 + $0x178] sm:$0xff]  ;;  %v97_v51 = vld [vmem:[%s16763_s0 + $0x180] sm:$0xff] }
  0x1c   :  { %10767 = vmatmul.mubr.msk.f32.gmra.mrb[10].mxu0 %vm122_vm3, %v60_v14  ;;  %v98_v52 = vld [vmem:[%s16763_s0 + $0x188] sm:$0xff]  ;;  %v99_v53 = vld [vmem:[%s16763_s0 + $0x190] sm:$0xff]  ;;  %v100_v54 = vld [vmem:[%s16763_s0 + $0x198] sm:$0xff] }
  0x1d   :  { %10769 = vmatprep.mubr.msk.f32.mxu0 %vm122_vm3, %v61_v15  ;;  %v101_v55 = vld [vmem:[%s16763_s0 + $0x1a0] sm:$0xff]  ;;  %v102_v56 = vld [vmem:[%s16763_s0 + $0x1a8] sm:$0xff]  ;;  %v103_v57 = vld [vmem:[%s16763_s0 + $0x1b0] sm:$0xff] }
  0x1e   :  { %v104_v58 = vld [vmem:[%s16763_s0 + $0x1b8] sm:$0xff]  ;;  %v105_v59 = vld [vmem:[%s16763_s0 + $0x1c0] sm:$0xff]  ;;  %v106_v60 = vld [vmem:[%s16763_s0 + $0x1c8] sm:$0xff] }
  0x1f   :  { %v107_v61 = vld [vmem:[%s16763_s0 + $0x1d0] sm:$0xff]  ;;  %v108_v62 = vld [vmem:[%s16763_s0 + $0x1d8] sm:$0xff]  ;;  %v109_v63 = vld [vmem:[%s16763_s0 + $0x1e0] sm:$0xff] }
  0x20   :  { %10770 = vmatmul.mubr.msk.f32.gmra.mrb[12].mxu0 %vm122_vm3, %v62_v16  ;;  %v110_v0 = vld [vmem:[%s16763_s0 + $0x1e8] sm:$0xff]  ;;  %v111_v1 = vld [vmem:[%s16763_s0 + $0x1f0] sm:$0xff]  ;;  %v112_v2 = vld [vmem:[%s16763_s0 + $0x1f8] sm:$0xff] }
  0x21   :  { %10772 = vmatprep.mubr.msk.f32.mxu0 %vm122_vm3, %v63_v17  ;;  %v769_v3 = vld [vmem:[%s16766_s3 + $0x8] sm:$0xff]  ;;  %v13972_v5 = vld [vmem:[%s16765_s2] ss:$0 sm:$0xff] }
  0x22   :  { %848 = vmatprep.mubr.f32.mxu1 %v769_v3  ;;  %v8668_v4 = vld [vmem:[%s16766_s3 + $0x108] sm:$0xff] }
  0x24   :  { %10773 = vmatmul.mubr.msk.f32.gmra.mrb[14].mxu0 %vm122_vm3, %v64_v18 }
  0x25   :  { %10775 = vmatprep.mubr.msk.f32.mxu0 %vm122_vm3, %v65_v19 }
  0x28   :  { %10776 = vmatmul.mubr.msk.f32.gmra.mrb[16].mxu0 %vm122_vm3, %v66_v20 }
  0x29   :  { %10778 = vmatprep.mubr.msk.f32.mxu0 %vm122_vm3, %v67_v21 }
  0x2c   :  { %10779 = vmatmul.mubr.msk.f32.gmra.mrb[18].mxu0 %vm122_vm3, %v68_v22 }
  0x2d   :  { %10781 = vmatprep.mubr.msk.f32.mxu0 %vm122_vm3, %v69_v23 }
  0x30   :  { %10782 = vmatmul.mubr.msk.f32.gmra.mrb[20].mxu0 %vm122_vm3, %v70_v24 }
  0x31   :  { %10784 = vmatprep.mubr.msk.f32.mxu0 %vm122_vm3, %v71_v25 }
  0x34   :  { %10785 = vmatmul.mubr.msk.f32.gmra.mrb[22].mxu0 %vm122_vm3, %v72_v26 }
  0x35   :  { %10787 = vmatprep.mubr.msk.f32.mxu0 %vm122_vm3, %v73_v27 }
  0x38   :  { %10788 = vmatmul.mubr.msk.f32.gmra.mrb[24].mxu0 %vm122_vm3, %v74_v28 }
  0x39   :  { %10790 = vmatprep.mubr.msk.f32.mxu0 %vm122_vm3, %v75_v29 }
  0x3c   :  { %10791 = vmatmul.mubr.msk.f32.gmra.mrb[26].mxu0 %vm122_vm3, %v76_v30 }
  0x3d   :  { %10793 = vmatprep.mubr.msk.f32.mxu0 %vm122_vm3, %v77_v31 }
  0x40   :  { %10794 = vmatmul.mubr.msk.f32.gmra.mrb[28].mxu0 %vm122_vm3, %v78_v32 }
  0x41   :  { %10796 = vmatprep.mubr.msk.f32.mxu0 %vm122_vm3, %v79_v33 }
  0x44   :  { %10797 = vmatmul.mubr.msk.f32.gmra.mrb[30].mxu0 %vm122_vm3, %v80_v34 }
  0x45   :  { %10799 = vmatprep.mubr.msk.f32.mxu0 %vm122_vm3, %v81_v35 }
  0x48   :  { %10800 = vmatmul.mubr.msk.f32.gmra.mrb[32].mxu0 %vm122_vm3, %v82_v36 }
  0x49   :  { %10802 = vmatprep.mubr.msk.f32.mxu0 %vm122_vm3, %v83_v37 }
  0x4c   :  { %10803 = vmatmul.mubr.msk.f32.gmra.mrb[34].mxu0 %vm122_vm3, %v84_v38 }
  0x4d   :  { %10805 = vmatprep.mubr.msk.f32.mxu0 %vm122_vm3, %v85_v39 }
  0x50   :  { %10806 = vmatmul.mubr.msk.f32.gmra.mrb[36].mxu0 %vm122_vm3, %v86_v40 }
  0x51   :  { %10808 = vmatprep.mubr.msk.f32.mxu0 %vm122_vm3, %v87_v41 }
  0x54   :  { %10809 = vmatmul.mubr.msk.f32.gmra.mrb[38].mxu0 %vm122_vm3, %v88_v42 }
  0x55   :  { %10811 = vmatprep.mubr.msk.f32.mxu0 %vm122_vm3, %v89_v43 }
  0x58   :  { %10812 = vmatmul.mubr.msk.f32.gmra.mrb[40].mxu0 %vm122_vm3, %v90_v44 }
  0x59   :  { %10814 = vmatprep.mubr.msk.f32.mxu0 %vm122_vm3, %v91_v45 }
  0x5c   :  { %10815 = vmatmul.mubr.msk.f32.gmra.mrb[42].mxu0 %vm122_vm3, %v92_v46 }
  0x5d   :  { %10817 = vmatprep.mubr.msk.f32.mxu0 %vm122_vm3, %v93_v47 }
  0x60   :  { %10818 = vmatmul.mubr.msk.f32.gmra.mrb[44].mxu0 %vm122_vm3, %v94_v48 }
  0x61   :  { %10820 = vmatprep.mubr.msk.f32.mxu0 %vm122_vm3, %v95_v49 }
  0x64   :  { %10821 = vmatmul.mubr.msk.f32.gmra.mrb[46].mxu0 %vm122_vm3, %v96_v50 }
  0x65   :  { %10823 = vmatprep.mubr.msk.f32.mxu0 %vm122_vm3, %v97_v51 }
  0x68   :  { %10824 = vmatmul.mubr.msk.f32.gmra.mrb[48].mxu0 %vm122_vm3, %v98_v52 }
  0x69   :  { %10826 = vmatprep.mubr.msk.f32.mxu0 %vm122_vm3, %v99_v53 }
  0x6c   :  { %10827 = vmatmul.mubr.msk.f32.gmra.mrb[50].mxu0 %vm122_vm3, %v100_v54 }
  0x6d   :  { %10829 = vmatprep.mubr.msk.f32.mxu0 %vm122_vm3, %v101_v55 }
  0x70   :  { %10830 = vmatmul.mubr.msk.f32.gmra.mrb[52].mxu0 %vm122_vm3, %v102_v56 }
  0x71   :  { %10832 = vmatprep.mubr.msk.f32.mxu0 %vm122_vm3, %v103_v57 }
  0x74   :  { %10833 = vmatmul.mubr.msk.f32.gmra.mrb[54].mxu0 %vm122_vm3, %v104_v58 }
  0x75   :  { %10835 = vmatprep.mubr.msk.f32.mxu0 %vm122_vm3, %v105_v59 }
  0x78   :  { %10836 = vmatmul.mubr.msk.f32.gmra.mrb[56].mxu0 %vm122_vm3, %v106_v60 }
  0x79   :  { %10838 = vmatprep.mubr.msk.f32.mxu0 %vm122_vm3, %v107_v61 }
  0x7c   :  { %10839 = vmatmul.mubr.msk.f32.gmra.mrb[58].mxu0 %vm122_vm3, %v108_v62 }
  0x7d   :  { %10841 = vmatprep.mubr.msk.f32.mxu0 %vm122_vm3, %v109_v63 }
  0x80   :  { %10842 = vmatmul.mubr.msk.f32.gmra.mrb[60].mxu0 %vm122_vm3, %v110_v0 }
  0x81   :  { %10844 = vmatprep.mubr.msk.f32.mxu0 %vm122_vm3, %v111_v1 }
  0x84   :  { %10845 = vmatmul.mubr.msk.f32.gmra.mrb[62].mxu0 %vm122_vm3, %v112_v2 }
  0x85   :  { %1360 = vmatprep.mubr.f32.mxu0 %v8668_v4 }
  0xdb   :  { %v10753_v6 = vpop.f32.mrb[0].mxu0 }
  0xdc   :  { %v391_v7 = vadd.f32 %v10753_v6, %v13972_v5  ;;  %v385_v8 = vpop.f32.mrb[1].mxu0 }
  0xdd   :  { %v386_v9 = vadd.f32 %v13972_v5, %v385_v8 }
  0xde   :  { %v705_v10 = vmax.f32 %v391_v7, 0.0 }
  0xdf   :  { %v704_v11 = vmax.f32 %v386_v9, 0.0  ;;  %v10756_v12 = vpop.f32.mrb[2].mxu0 }
  0xe0   :  { %v401_v13 = vadd.f32 %v10756_v12, %v13972_v5  ;;  %v395_v14 = vpop.f32.mrb[3].mxu0 }
  0xe1   :  { %v13977_v15 = vpack.c.bf16 %v705_v10, %v704_v11  ;;  %v396_v16 = vadd.f32 %v13972_v5, %v395_v14 }
  0xe2   :  { %v707_v17 = vmax.f32 %v401_v13, 0.0 }
  0xe3   :  { %v706_v18 = vmax.f32 %v396_v16, 0.0  ;;  %v10759_v19 = vpop.f32.mrb[4].mxu0 }
  0xe4   :  { %v411_v20 = vadd.f32 %v10759_v19, %v13972_v5  ;;  %v405_v21 = vpop.f32.mrb[5].mxu0 }
  0xe5   :  { %v13981_v22 = vpack.c.bf16 %v707_v17, %v706_v18  ;;  %v406_v23 = vadd.f32 %v13972_v5, %v405_v21 }
  0xe6   :  { %v709_v24 = vmax.f32 %v411_v20, 0.0 }
  0xe7   :  { %v708_v25 = vmax.f32 %v406_v23, 0.0  ;;  %v10762_v26 = vpop.f32.mrb[6].mxu0 }
  0xe8   :  { %v421_v27 = vadd.f32 %v10762_v26, %v13972_v5  ;;  %v415_v28 = vpop.f32.mrb[7].mxu0 }
  0xe9   :  { %v13985_v29 = vpack.c.bf16 %v709_v24, %v708_v25  ;;  %v416_v30 = vadd.f32 %v13972_v5, %v415_v28 }
  0xea   :  { %v711_v31 = vmax.f32 %v421_v27, 0.0 }
  0xeb   :  { %v710_v32 = vmax.f32 %v416_v30, 0.0  ;;  %v10765_v33 = vpop.f32.mrb[8].mxu0 }
  0xec   :  { %v431_v34 = vadd.f32 %v10765_v33, %v13972_v5  ;;  %v425_v35 = vpop.f32.mrb[9].mxu0 }
  0xed   :  { %v13989_v36 = vpack.c.bf16 %v711_v31, %v710_v32  ;;  %v426_v37 = vadd.f32 %v13972_v5, %v425_v35 }
  0xee   :  { %v713_v38 = vmax.f32 %v431_v34, 0.0 }
  0xef   :  { %v712_v39 = vmax.f32 %v426_v37, 0.0  ;;  %v10768_v40 = vpop.f32.mrb[10].mxu0 }
  0xf0   :  { %v441_v41 = vadd.f32 %v10768_v40, %v13972_v5  ;;  %v435_v42 = vpop.f32.mrb[11].mxu0 }
  0xf1   :  { %v13993_v43 = vpack.c.bf16 %v713_v38, %v712_v39  ;;  %v436_v44 = vadd.f32 %v13972_v5, %v435_v42 }
  0xf2   :  { %v715_v45 = vmax.f32 %v441_v41, 0.0 }
  0xf3   :  { %v714_v46 = vmax.f32 %v436_v44, 0.0  ;;  %v10771_v47 = vpop.f32.mrb[12].mxu0 }
  0xf4   :  { %v451_v48 = vadd.f32 %v10771_v47, %v13972_v5  ;;  %v445_v49 = vpop.f32.mrb[13].mxu0 }
  0xf5   :  { %v13997_v50 = vpack.c.bf16 %v715_v45, %v714_v46  ;;  %v446_v51 = vadd.f32 %v13972_v5, %v445_v49 }
  0xf6   :  { %v717_v52 = vmax.f32 %v451_v48, 0.0 }
  0xf7   :  { %v716_v53 = vmax.f32 %v446_v51, 0.0  ;;  %v10774_v54 = vpop.f32.mrb[14].mxu0 }
  0xf8   :  { %v461_v55 = vadd.f32 %v10774_v54, %v13972_v5  ;;  %v455_v56 = vpop.f32.mrb[15].mxu0 }
  0xf9   :  { %v14001_v57 = vpack.c.bf16 %v717_v52, %v716_v53  ;;  %v456_v58 = vadd.f32 %v13972_v5, %v455_v56 }
  0xfa   :  { %v719_v59 = vmax.f32 %v461_v55, 0.0 }
  0xfb   :  { %v718_v60 = vmax.f32 %v456_v58, 0.0  ;;  %v10777_v61 = vpop.f32.mrb[16].mxu0 }
  0xfc   :  { %v471_v62 = vadd.f32 %v10777_v61, %v13972_v5  ;;  %v465_v63 = vpop.f32.mrb[17].mxu0 }
  0xfd   :  { %v14005_v0 = vpack.c.bf16 %v719_v59, %v718_v60  ;;  %v466_v1 = vadd.f32 %v13972_v5, %v465_v63  ;;  %v8667_v63 = vld [vmem:[%s16766_s3 + $0x100] sm:$0xff] }
  0xfe   :  { %v721_v2 = vmax.f32 %v471_v62, 0.0  ;;  %v768_v62 = vld [vmem:[%s16766_s3] sm:$0xff] }
  0xff   :  { %v720_v3 = vmax.f32 %v466_v1, 0.0  ;;  %v10780_v4 = vpop.f32.mrb[18].mxu0  ;;  %v771_v1 = vld [vmem:[%s16766_s3 + $0x18] sm:$0xff] }
 0x100   :  { %v481_v6 = vadd.f32 %v10780_v4, %v13972_v5  ;;  %v475_v7 = vpop.f32.mrb[19].mxu0  ;;  %v8669_v4 = vld [vmem:[%s16766_s3 + $0x110] sm:$0xff] }
 0x101   :  { %v14009_v8 = vpack.c.bf16 %v721_v2, %v720_v3  ;;  %v476_v9 = vadd.f32 %v13972_v5, %v475_v7  ;;  %v8670_v2 = vld [vmem:[%s16766_s3 + $0x118] sm:$0xff]  ;;  %v770_v3 = vld [vmem:[%s16766_s3 + $0x10] sm:$0xff]  ;;  %v8672_v7 = vld [vmem:[%s16766_s3 + $0x128] sm:$0xff] }
 0x102   :  { %v723_v10 = vmax.f32 %v481_v6, 0.0  ;;  %v773_v6 = vld [vmem:[%s16766_s3 + $0x28] sm:$0xff] }
 0x103   :  { %v722_v11 = vmax.f32 %v476_v9, 0.0  ;;  %v10783_v12 = vpop.f32.mrb[20].mxu0  ;;  %11898 = vmatprep.subr.bf16.mxu1 %v14009_v8  ;;  %11978 = vmatprep.subr.bf16.mxu0 %v14009_v8  ;;  %v772_v9 = vld [vmem:[%s16766_s3 + $0x20] sm:$0xff] }
 0x104   :  { %v491_v13 = vadd.f32 %v10783_v12, %v13972_v5  ;;  %v485_v14 = vpop.f32.mrb[21].mxu0  ;;  %11900 = vmatpush3.bf16.msra.mxu1 %v13977_v15  ;;  %11980 = vmatpush3.bf16.msra.mxu0 %v13977_v15  ;;  %v8674_v12 = vld [vmem:[%s16766_s3 + $0x138] sm:$0xff] }
 0x105   :  { %v14017_v16 = vpack.c.bf16 %v723_v10, %v722_v11  ;;  %v486_v17 = vadd.f32 %v13972_v5, %v485_v14  ;;  %v8671_v10 = vld [vmem:[%s16766_s3 + $0x120] sm:$0xff]  ;;  %v775_v11 = vld [vmem:[%s16766_s3 + $0x38] sm:$0xff]  ;;  %v8673_v14 = vld [vmem:[%s16766_s3 + $0x130] sm:$0xff] }
 0x106   :  { %v725_v18 = vmax.f32 %v491_v13, 0.0  ;;  %v774_v13 = vld [vmem:[%s16766_s3 + $0x30] sm:$0xff] }
 0x107   :  { %v724_v19 = vmax.f32 %v486_v17, 0.0  ;;  %v10786_v20 = vpop.f32.mrb[22].mxu0  ;;  %11902 = vmatprep.subr.bf16.mxu1 %v14017_v16  ;;  %11982 = vmatprep.subr.bf16.mxu0 %v14017_v16  ;;  %v777_v17 = vld [vmem:[%s16766_s3 + $0x48] sm:$0xff] }
 0x108   :  { %v501_v21 = vadd.f32 %v10786_v20, %v13972_v5  ;;  %v495_v23 = vpop.f32.mrb[23].mxu0  ;;  %11904 = vmatpush3.bf16.msra.mxu1 %v13981_v22  ;;  %11984 = vmatpush3.bf16.msra.mxu0 %v13981_v22  ;;  %v8675_v20 = vld [vmem:[%s16766_s3 + $0x140] sm:$0xff] }
 0x109   :  { %v14025_v24 = vpack.c.bf16 %v725_v18, %v724_v19  ;;  %v496_v25 = vadd.f32 %v13972_v5, %v495_v23  ;;  %v8676_v18 = vld [vmem:[%s16766_s3 + $0x148] sm:$0xff]  ;;  %v776_v19 = vld [vmem:[%s16766_s3 + $0x40] sm:$0xff]  ;;  %v8678_v23 = vld [vmem:[%s16766_s3 + $0x158] sm:$0xff] }
 0x10a   :  { %v727_v26 = vmax.f32 %v501_v21, 0.0  ;;  %v779_v21 = vld [vmem:[%s16766_s3 + $0x58] sm:$0xff] }
 0x10b   :  { %v726_v27 = vmax.f32 %v496_v25, 0.0  ;;  %v10789_v28 = vpop.f32.mrb[24].mxu0  ;;  %11906 = vmatprep.subr.bf16.mxu1 %v14025_v24  ;;  %11986 = vmatprep.subr.bf16.mxu0 %v14025_v24  ;;  %v778_v25 = vld [vmem:[%s16766_s3 + $0x50] sm:$0xff] }
 0x10c   :  { %v511_v30 = vadd.f32 %v10789_v28, %v13972_v5  ;;  %v505_v31 = vpop.f32.mrb[25].mxu0  ;;  %11908 = vmatpush3.bf16.msra.mxu1 %v13985_v29  ;;  %11988 = vmatpush3.bf16.msra.mxu0 %v13985_v29  ;;  %v8680_v28 = vld [vmem:[%s16766_s3 + $0x168] sm:$0xff] }
 0x10d   :  { %v14033_v32 = vpack.c.bf16 %v727_v26, %v726_v27  ;;  %v506_v33 = vadd.f32 %v13972_v5, %v505_v31  ;;  %v8677_v26 = vld [vmem:[%s16766_s3 + $0x150] sm:$0xff]  ;;  %v781_v27 = vld [vmem:[%s16766_s3 + $0x68] sm:$0xff]  ;;  %v8679_v31 = vld [vmem:[%s16766_s3 + $0x160] sm:$0xff] }
 0x10e   :  { %v729_v34 = vmax.f32 %v511_v30, 0.0  ;;  %v780_v30 = vld [vmem:[%s16766_s3 + $0x60] sm:$0xff] }
 0x10f   :  { %v728_v35 = vmax.f32 %v506_v33, 0.0  ;;  %v10792_v37 = vpop.f32.mrb[26].mxu0  ;;  %11910 = vmatprep.subr.bf16.mxu1 %v14033_v32  ;;  %11990 = vmatprep.subr.bf16.mxu0 %v14033_v32  ;;  %v783_v33 = vld [vmem:[%s16766_s3 + $0x78] sm:$0xff] }
 0x110   :  { %v521_v38 = vadd.f32 %v10792_v37, %v13972_v5  ;;  %v515_v39 = vpop.f32.mrb[27].mxu0  ;;  %11912 = vmatpush3.bf16.msra.mxu1 %v13989_v36  ;;  %11992 = vmatpush3.bf16.msra.mxu0 %v13989_v36  ;;  %v8681_v37 = vld [vmem:[%s16766_s3 + $0x170] sm:$0xff] }
 0x111   :  { %v14041_v40 = vpack.c.bf16 %v729_v34, %v728_v35  ;;  %v516_v41 = vadd.f32 %v13972_v5, %v515_v39  ;;  %v8682_v34 = vld [vmem:[%s16766_s3 + $0x178] sm:$0xff]  ;;  %v782_v35 = vld [vmem:[%s16766_s3 + $0x70] sm:$0xff]  ;;  %v8724_v39 = vld [vmem:[%s16766_s3 + $0x208] sm:$0xff] }
 0x112   :  { %v731_v42 = vmax.f32 %v521_v38, 0.0  ;;  %v8632_v38 = vld [vmem:[%s16766_s3 + $0x88] sm:$0xff] }
 0x113   :  { %v730_v44 = vmax.f32 %v516_v41, 0.0  ;;  %v10795_v45 = vpop.f32.mrb[28].mxu0  ;;  %11914 = vmatprep.subr.bf16.mxu1 %v14041_v40  ;;  %11994 = vmatprep.subr.bf16.mxu0 %v14041_v40  ;;  %v8631_v41 = vld [vmem:[%s16766_s3 + $0x80] sm:$0xff] }
 0x114   :  { %v531_v46 = vadd.f32 %v10795_v45, %v13972_v5  ;;  %v525_v47 = vpop.f32.mrb[29].mxu0  ;;  %11916 = vmatpush3.bf16.msra.mxu1 %v13993_v43  ;;  %11996 = vmatpush3.bf16.msra.mxu0 %v13993_v43  ;;  %v8726_v45 = vld [vmem:[%s16766_s3 + $0x218] sm:$0xff] }
 0x115   :  { %v14049_v48 = vpack.c.bf16 %v731_v42, %v730_v44  ;;  %v526_v49 = vadd.f32 %v13972_v5, %v525_v47  ;;  %v8723_v42 = vld [vmem:[%s16766_s3 + $0x200] sm:$0xff]  ;;  %v8634_v44 = vld [vmem:[%s16766_s3 + $0x98] sm:$0xff]  ;;  %v8725_v47 = vld [vmem:[%s16766_s3 + $0x210] sm:$0xff] }
 0x116   :  { %v733_v51 = vmax.f32 %v531_v46, 0.0  ;;  %v8633_v46 = vld [vmem:[%s16766_s3 + $0x90] sm:$0xff] }
 0x117   :  { %v732_v52 = vmax.f32 %v526_v49, 0.0  ;;  %v10798_v53 = vpop.f32.mrb[30].mxu0  ;;  %11918 = vmatprep.subr.bf16.mxu1 %v14049_v48  ;;  %11998 = vmatprep.subr.bf16.mxu0 %v14049_v48  ;;  %v8636_v49 = vld [vmem:[%s16766_s3 + $0xa8] sm:$0xff] }
 0x118   :  { %v541_v54 = vadd.f32 %v10798_v53, %v13972_v5  ;;  %v535_v55 = vpop.f32.mrb[31].mxu0  ;;  %11920 = vmatpush3.bf16.msra.mxu1 %v13997_v50  ;;  %12000 = vmatpush3.bf16.msra.mxu0 %v13997_v50  ;;  %v8727_v53 = vld [vmem:[%s16766_s3 + $0x220] sm:$0xff] }
 0x119   :  { %v14057_v56 = vpack.c.bf16 %v733_v51, %v732_v52  ;;  %v536_v58 = vadd.f32 %v13972_v5, %v535_v55  ;;  %v8728_v51 = vld [vmem:[%s16766_s3 + $0x228] sm:$0xff]  ;;  %v8635_v52 = vld [vmem:[%s16766_s3 + $0xa0] sm:$0xff]  ;;  %v8730_v55 = vld [vmem:[%s16766_s3 + $0x238] sm:$0xff] }
 0x11a   :  { %v735_v59 = vmax.f32 %v541_v54, 0.0  ;;  %v8638_v54 = vld [vmem:[%s16766_s3 + $0xb8] sm:$0xff] }
 0x11b   :  { %v734_v60 = vmax.f32 %v536_v58, 0.0  ;;  %11922 = vmatprep.subr.bf16.mxu1 %v14057_v56  ;;  %12002 = vmatprep.subr.bf16.mxu0 %v14057_v56  ;;  %v8637_v58 = vld [vmem:[%s16766_s3 + $0xb0] sm:$0xff] }
 0x11c   :  { %11924 = vmatpush3.bf16.msra.mxu1 %v14001_v57  ;;  %12004 = vmatpush3.bf16.msra.mxu0 %v14001_v57 }
 0x11d   :  { %v14064_v61 = vpack.c.bf16 %v735_v59, %v734_v60  ;;  %v8729_v59 = vld [vmem:[%s16766_s3 + $0x230] sm:$0xff]  ;;  %v8640_v60 = vld [vmem:[%s16766_s3 + $0xc8] sm:$0xff] }
 0x11f   :  { %11926 = vmatprep.subr.bf16.mxu1 %v14064_v61  ;;  %12006 = vmatprep.subr.bf16.mxu0 %v14064_v61 }
 0x120   :  { %11928 = vmatpush3.bf16.msra.mxu1 %v14005_v0  ;;  %12008 = vmatpush3.bf16.msra.mxu0 %v14005_v0 }
 0x121   :  { %11930 = vmatprep.subr.bf16.mxu1 %v14009_v8  ;;  %12058 = vmatprep.subr.bf16.mxu0 %v14009_v8 }
 0x123   :  { %849 = vmatmul.mubr.f32.vlgmr.msra.gmra.mrb[0].mxu1 %v768_v62  ;;  %1361 = vmatmul.mubr.f32.vlgmr.msra.gmra.mrb[64].mxu0 %v8667_v63  ;;  %v8732_v62 = vld [vmem:[%s16766_s3 + $0x248] sm:$0xff]  ;;  %v8639_v63 = vld [vmem:[%s16766_s3 + $0xc0] sm:$0xff] }
 0x124   :  { %11932 = vmatpush3.bf16.msra.mxu1 %v13977_v15  ;;  %12060 = vmatpush3.bf16.msra.mxu0 %v13977_v15 }
 0x125   :  { %11934 = vmatprep.subr.bf16.mxu1 %v14017_v16  ;;  %12062 = vmatprep.subr.bf16.mxu0 %v14017_v16 }
 0x126   :  { %853 = vmatprep.mubr.f32.mxu1 %v771_v1  ;;  %1365 = vmatprep.mubr.f32.mxu0 %v8670_v2  ;;  %v8731_v1 = vld [vmem:[%s16766_s3 + $0x240] sm:$0xff]  ;;  %v8642_v2 = vld [vmem:[%s16766_s3 + $0xd8] sm:$0xff] }
 0x127   :  { %854 = vmatmul.mubr.f32.gmra.mrb[2].mxu1 %v770_v3  ;;  %1366 = vmatmul.mubr.f32.gmra.mrb[66].mxu0 %v8669_v4  ;;  %v8734_v3 = vld [vmem:[%s16766_s3 + $0x258] sm:$0xff]  ;;  %v8641_v4 = vld [vmem:[%s16766_s3 + $0xd0] sm:$0xff] }
 0x128   :  { %11936 = vmatpush3.bf16.msra.mxu1 %v13981_v22  ;;  %12064 = vmatpush3.bf16.msra.mxu0 %v13981_v22 }
 0x129   :  { %11938 = vmatprep.subr.bf16.mxu1 %v14025_v24  ;;  %12066 = vmatprep.subr.bf16.mxu0 %v14025_v24 }
 0x12a   :  { %858 = vmatprep.mubr.f32.mxu1 %v773_v6  ;;  %1370 = vmatprep.mubr.f32.mxu0 %v8672_v7  ;;  %v8733_v6 = vld [vmem:[%s16766_s3 + $0x250] sm:$0xff]  ;;  %v8644_v7 = vld [vmem:[%s16766_s3 + $0xe8] sm:$0xff] }
 0x12b   :  { %859 = vmatmul.mubr.f32.gmra.mrb[4].mxu1 %v772_v9  ;;  %1371 = vmatmul.mubr.f32.gmra.mrb[68].mxu0 %v8671_v10  ;;  %v8736_v9 = vld [vmem:[%s16766_s3 + $0x268] sm:$0xff]  ;;  %v8643_v10 = vld [vmem:[%s16766_s3 + $0xe0] sm:$0xff] }
 0x12c   :  { %11940 = vmatpush3.bf16.msra.mxu1 %v13985_v29  ;;  %12068 = vmatpush3.bf16.msra.mxu0 %v13985_v29 }
 0x12d   :  { %11942 = vmatprep.subr.bf16.mxu1 %v14033_v32  ;;  %12070 = vmatprep.subr.bf16.mxu0 %v14033_v32 }
 0x12e   :  { %863 = vmatprep.mubr.f32.mxu1 %v775_v11  ;;  %1375 = vmatprep.mubr.f32.mxu0 %v8674_v12  ;;  %v8735_v11 = vld [vmem:[%s16766_s3 + $0x260] sm:$0xff]  ;;  %v8646_v12 = vld [vmem:[%s16766_s3 + $0xf8] sm:$0xff] }
 0x12f   :  { %864 = vmatmul.mubr.f32.gmra.mrb[6].mxu1 %v774_v13  ;;  %1376 = vmatmul.mubr.f32.gmra.mrb[70].mxu0 %v8673_v14  ;;  %v8738_v13 = vld [vmem:[%s16766_s3 + $0x278] sm:$0xff]  ;;  %v8645_v14 = vld [vmem:[%s16766_s3 + $0xf0] sm:$0xff] }
 0x130   :  { %11944 = vmatpush3.bf16.msra.mxu1 %v13989_v36  ;;  %12072 = vmatpush3.bf16.msra.mxu0 %v13989_v36 }
 0x131   :  { %11946 = vmatprep.subr.bf16.mxu1 %v14041_v40  ;;  %12074 = vmatprep.subr.bf16.mxu0 %v14041_v40 }
 0x132   :  { %868 = vmatprep.mubr.f32.mxu1 %v777_v17  ;;  %1380 = vmatprep.mubr.f32.mxu0 %v8676_v18  ;;  %v8737_v17 = vld [vmem:[%s16766_s3 + $0x270] sm:$0xff]  ;;  %v8752_v18 = vld [vmem:[%s16766_s3 + $0x288] sm:$0xff] }
 0x133   :  { %869 = vmatmul.mubr.f32.gmra.mrb[8].mxu1 %v776_v19  ;;  %1381 = vmatmul.mubr.f32.gmra.mrb[72].mxu0 %v8675_v20  ;;  %v8751_v19 = vld [vmem:[%s16766_s3 + $0x280] sm:$0xff]  ;;  %v8754_v20 = vld [vmem:[%s16766_s3 + $0x298] sm:$0xff] }
 0x134   :  { %11948 = vmatpush3.bf16.msra.mxu1 %v13993_v43  ;;  %12076 = vmatpush3.bf16.msra.mxu0 %v13993_v43 }
 0x135   :  { %11950 = vmatprep.subr.bf16.mxu1 %v14049_v48  ;;  %12078 = vmatprep.subr.bf16.mxu0 %v14049_v48 }
 0x136   :  { %873 = vmatprep.mubr.f32.mxu1 %v779_v21  ;;  %1385 = vmatprep.mubr.f32.mxu0 %v8678_v23  ;;  %v8753_v21 = vld [vmem:[%s16766_s3 + $0x290] sm:$0xff]  ;;  %v8756_v23 = vld [vmem:[%s16766_s3 + $0x2a8] sm:$0xff] }
 0x137   :  { %874 = vmatmul.mubr.f32.gmra.mrb[10].mxu1 %v778_v25  ;;  %1386 = vmatmul.mubr.f32.gmra.mrb[74].mxu0 %v8677_v26  ;;  %v8755_v25 = vld [vmem:[%s16766_s3 + $0x2a0] sm:$0xff]  ;;  %v8758_v26 = vld [vmem:[%s16766_s3 + $0x2b8] sm:$0xff] }
 0x138   :  { %11952 = vmatpush3.bf16.msra.mxu1 %v13997_v50  ;;  %12080 = vmatpush3.bf16.msra.mxu0 %v13997_v50 }
 0x139   :  { %11954 = vmatprep.subr.bf16.mxu1 %v14057_v56  ;;  %12082 = vmatprep.subr.bf16.mxu0 %v14057_v56 }
 0x13a   :  { %878 = vmatprep.mubr.f32.mxu1 %v781_v27  ;;  %1390 = vmatprep.mubr.f32.mxu0 %v8680_v28  ;;  %v8757_v27 = vld [vmem:[%s16766_s3 + $0x2b0] sm:$0xff]  ;;  %v8760_v28 = vld [vmem:[%s16766_s3 + $0x2c8] sm:$0xff] }
 0x13b   :  { %879 = vmatmul.mubr.f32.gmra.mrb[12].mxu1 %v780_v30  ;;  %1391 = vmatmul.mubr.f32.gmra.mrb[76].mxu0 %v8679_v31  ;;  %v8759_v30 = vld [vmem:[%s16766_s3 + $0x2c0] sm:$0xff]  ;;  %v8762_v31 = vld [vmem:[%s16766_s3 + $0x2d8] sm:$0xff] }
 0x13c   :  { %11956 = vmatpush3.bf16.msra.mxu1 %v14001_v57  ;;  %12084 = vmatpush3.bf16.msra.mxu0 %v14001_v57 }
 0x13d   :  { %11958 = vmatprep.subr.bf16.mxu1 %v14064_v61  ;;  %12086 = vmatprep.subr.bf16.mxu0 %v14064_v61 }
 0x13e   :  { %883 = vmatprep.mubr.f32.mxu1 %v783_v33  ;;  %1395 = vmatprep.mubr.f32.mxu0 %v8682_v34  ;;  %v8761_v33 = vld [vmem:[%s16766_s3 + $0x2d0] sm:$0xff]  ;;  %v8764_v34 = vld [vmem:[%s16766_s3 + $0x2e8] sm:$0xff] }
 0x13f   :  { %884 = vmatmul.mubr.f32.gmra.mrb[14].mxu1 %v782_v35  ;;  %1396 = vmatmul.mubr.f32.gmra.mrb[78].mxu0 %v8681_v37  ;;  %v8763_v35 = vld [vmem:[%s16766_s3 + $0x2e0] sm:$0xff]  ;;  %v8766_v37 = vld [vmem:[%s16766_s3 + $0x2f8] sm:$0xff] }
 0x140   :  { %11960 = vmatpush3.bf16.msra.mxu1 %v14005_v0  ;;  %12088 = vmatpush3.bf16.msra.mxu0 %v14005_v0 }
 0x141   :  { %12098 = vmatprep.subr.bf16.mxu0 %v14009_v8  ;;  %974 = vmatprep.mubr.f32.mxu1 %v8632_v38  ;;  %v8765_v38 = vld [vmem:[%s16766_s3 + $0x2f0] sm:$0xff] }
 0x142   :  { %1888 = vmatprep.mubr.f32.mxu0 %v8724_v39  ;;  %v8780_v39 = vld [vmem:[%s16766_s3 + $0x308] sm:$0xff] }
 0x143   :  { %975 = vmatmul.mubr.f32.vlgmr.msra.gmra.mrb[16].mxu1 %v8631_v41  ;;  %1889 = vmatmul.mubr.f32.vlgmr.msra.gmra.mrb[80].mxu0 %v8723_v42  ;;  %v8779_v41 = vld [vmem:[%s16766_s3 + $0x300] sm:$0xff]  ;;  %v10801_v42 = vpop.f32.mrb[32].mxu0 }
 0x144   :  { %12100 = vmatpush3.bf16.msra.mxu0 %v13977_v15  ;;  %979 = vmatprep.mubr.f32.mxu1 %v8634_v44  ;;  %v551_v44 = vadd.f32 %v10801_v42, %v13972_v5 }
 0x145   :  { %12102 = vmatprep.subr.bf16.mxu0 %v14017_v16  ;;  %1893 = vmatprep.mubr.f32.mxu0 %v8726_v45  ;;  %v545_v45 = vpop.f32.mrb[33].mxu0 }
 0x147   :  { %980 = vmatmul.mubr.f32.gmra.mrb[18].mxu1 %v8633_v46  ;;  %1894 = vmatmul.mubr.f32.gmra.mrb[82].mxu0 %v8725_v47  ;;  %v737_v46 = vmax.f32 %v551_v44, 0.0  ;;  %v546_v47 = vadd.f32 %v13972_v5, %v545_v45 }
 0x148   :  { %12104 = vmatpush3.bf16.msra.mxu0 %v13981_v22  ;;  %984 = vmatprep.mubr.f32.mxu1 %v8636_v49  ;;  %v10804_v49 = vpop.f32.mrb[34].mxu0 }
 0x149   :  { %12106 = vmatprep.subr.bf16.mxu0 %v14025_v24  ;;  %1898 = vmatprep.mubr.f32.mxu0 %v8728_v51  ;;  %v736_v51 = vmax.f32 %v546_v47, 0.0 }
 0x14b   :  { %985 = vmatmul.mubr.f32.gmra.mrb[20].mxu1 %v8635_v52  ;;  %1899 = vmatmul.mubr.f32.gmra.mrb[84].mxu0 %v8727_v53  ;;  %v561_v52 = vadd.f32 %v10804_v49, %v13972_v5  ;;  %v555_v53 = vpop.f32.mrb[35].mxu0 }
 0x14c   :  { %12108 = vmatpush3.bf16.msra.mxu0 %v13985_v29  ;;  %989 = vmatprep.mubr.f32.mxu1 %v8638_v54  ;;  %v14380_v54 = vpack.c.bf16 %v737_v46, %v736_v51 }
 0x14d   :  { %12110 = vmatprep.subr.bf16.mxu0 %v14033_v32  ;;  %1903 = vmatprep.mubr.f32.mxu0 %v8730_v55  ;;  %v739_v55 = vmax.f32 %v561_v52, 0.0 }
 0x14e   :  { %16864 = vst [vmem:[#allocation9_spill] sm:$0xff] %v14380_v54 }
 0x14f   :  { %990 = vmatmul.mubr.f32.gmra.mrb[22].mxu1 %v8637_v58  ;;  %1904 = vmatmul.mubr.f32.gmra.mrb[86].mxu0 %v8729_v59  ;;  %v556_v58 = vadd.f32 %v13972_v5, %v555_v53  ;;  %v10807_v59 = vpop.f32.mrb[36].mxu0 }
 0x150   :  { %12112 = vmatpush3.bf16.msra.mxu0 %v13989_v36  ;;  %994 = vmatprep.mubr.f32.mxu1 %v8640_v60 }
 0x151   :  { %12114 = vmatprep.subr.bf16.mxu0 %v14041_v40  ;;  %1908 = vmatprep.mubr.f32.mxu0 %v8732_v62  ;;  %v738_v60 = vmax.f32 %v556_v58, 0.0  ;;  %v571_v62 = vadd.f32 %v10807_v59, %v13972_v5 }
 0x153   :  { %995 = vmatmul.mubr.f32.gmra.mrb[24].mxu1 %v8639_v63  ;;  %1909 = vmatmul.mubr.f32.gmra.mrb[88].mxu0 %v8731_v1  ;;  %v565_v63 = vpop.f32.mrb[37].mxu0  ;;  %v14386_v1 = vpack.c.bf16 %v739_v55, %v738_v60 }
 0x154   :  { %12116 = vmatpush3.bf16.msra.mxu0 %v13993_v43  ;;  %999 = vmatprep.mubr.f32.mxu1 %v8642_v2  ;;  %v741_v2 = vmax.f32 %v571_v62, 0.0 }
 0x155   :  { %12118 = vmatprep.subr.bf16.mxu0 %v14049_v48  ;;  %1913 = vmatprep.mubr.f32.mxu0 %v8734_v3  ;;  %16865 = vst [vmem:[#allocation10_spill] sm:$0xff] %v14386_v1  ;;  %v566_v3 = vadd.f32 %v13972_v5, %v565_v63 }
 0x157   :  { %1000 = vmatmul.mubr.f32.gmra.mrb[26].mxu1 %v8641_v4  ;;  %1914 = vmatmul.mubr.f32.gmra.mrb[90].mxu0 %v8733_v6  ;;  %v10810_v4 = vpop.f32.mrb[38].mxu0  ;;  %v740_v6 = vmax.f32 %v566_v3, 0.0 }
 0x158   :  { %12120 = vmatpush3.bf16.msra.mxu0 %v13997_v50  ;;  %1004 = vmatprep.mubr.f32.mxu1 %v8644_v7  ;;  %v581_v7 = vadd.f32 %v10810_v4, %v13972_v5 }
 0x159   :  { %12122 = vmatprep.subr.bf16.mxu0 %v14057_v56  ;;  %1918 = vmatprep.mubr.f32.mxu0 %v8736_v9  ;;  %v575_v9 = vpop.f32.mrb[39].mxu0 }
 0x15b   :  { %1005 = vmatmul.mubr.f32.gmra.mrb[28].mxu1 %v8643_v10  ;;  %1919 = vmatmul.mubr.f32.gmra.mrb[92].mxu0 %v8735_v11  ;;  %v14392_v10 = vpack.c.bf16 %v741_v2, %v740_v6  ;;  %v743_v11 = vmax.f32 %v581_v7, 0.0 }
 0x15c   :  { %12124 = vmatpush3.bf16.msra.mxu0 %v14001_v57  ;;  %1009 = vmatprep.mubr.f32.mxu1 %v8646_v12  ;;  %v576_v12 = vadd.f32 %v13972_v5, %v575_v9 }
 0x15d   :  { %12126 = vmatprep.subr.bf16.mxu0 %v14064_v61  ;;  %1923 = vmatprep.mubr.f32.mxu0 %v8738_v13  ;;  %16866 = vst [vmem:[#allocation11_spill] sm:$0xff] %v14392_v10  ;;  %v8647_v13 = vld [vmem:[%s16767_s4 + $0x20] sm:$0xff] }
 0x15f   :  { %1010 = vmatmul.mubr.f32.gmra.mrb[30].mxu1 %v8645_v14  ;;  %1924 = vmatmul.mubr.f32.gmra.mrb[94].mxu0 %v8737_v17  ;;  %v8648_v14 = vld [vmem:[%s16767_s4 + $0x28] sm:$0xff]  ;;  %v10813_v17 = vpop.f32.mrb[40].mxu0 }
 0x160   :  { %12128 = vmatpush3.bf16.msra.mxu0 %v14005_v0  ;;  %2152 = vmatprep.mubr.f32.mxu0 %v8752_v18  ;;  %v742_v18 = vmax.f32 %v576_v12, 0.0 }
 0x161   :  { %12138 = vmatprep.subr.bf16.mxu0 %v14009_v8 }
 0x163   :  { %2153 = vmatmul.mubr.f32.vlgmr.msra.gmra.mrb[96].mxu0 %v8751_v19  ;;  %v14403_v19 = vpack.c.bf16 %v8648_v14, %v8647_v13 }
 0x164   :  { %12140 = vmatpush3.bf16.msra.mxu0 %v13977_v15  ;;  %2157 = vmatprep.mubr.f32.mxu0 %v8754_v20  ;;  %v591_v20 = vadd.f32 %v10813_v17, %v13972_v5 }
 0x165   :  { %12142 = vmatprep.subr.bf16.mxu0 %v14017_v16  ;;  %16867 = vst [vmem:[#allocation12_spill] sm:$0xff] %v14403_v19  ;;  %11962 = vmatprep.subr.bf16.mxu1 %v14403_v19 }
 0x166   :  { %11964 = vmatpush3.bf16.msra.mxu1 %v14403_v19  ;;  %v8793_v19 = vld [vmem:[%s16766_s3 + $0x370] sm:$0xff] }
 0x167   :  { %2158 = vmatmul.mubr.f32.gmra.mrb[98].mxu0 %v8753_v21  ;;  %v585_v21 = vpop.f32.mrb[41].mxu0 }
 0x168   :  { %12144 = vmatpush3.bf16.msra.mxu0 %v13981_v22  ;;  %2162 = vmatprep.mubr.f32.mxu0 %v8756_v23  ;;  %v14406_v23 = vpack.c.bf16 %v743_v11, %v742_v18 }
 0x169   :  { %12146 = vmatprep.subr.bf16.mxu0 %v14025_v24 }
 0x16a   :  { %16868 = vst [vmem:[#allocation13_spill] sm:$0xff] %v14406_v23 }
 0x16b   :  { %2163 = vmatmul.mubr.f32.gmra.mrb[100].mxu0 %v8755_v25  ;;  %v745_v25 = vmax.f32 %v591_v20, 0.0 }
 0x16c   :  { %12148 = vmatpush3.bf16.msra.mxu0 %v13985_v29  ;;  %2167 = vmatprep.mubr.f32.mxu0 %v8758_v26  ;;  %v586_v26 = vadd.f32 %v13972_v5, %v585_v21 }
 0x16d   :  { %12150 = vmatprep.subr.bf16.mxu0 %v14033_v32 }
 0x16f   :  { %2168 = vmatmul.mubr.f32.gmra.mrb[102].mxu0 %v8757_v27  ;;  %v744_v27 = vmax.f32 %v586_v26, 0.0 }
 0x170   :  { %12152 = vmatpush3.bf16.msra.mxu0 %v13989_v36  ;;  %2172 = vmatprep.mubr.f32.mxu0 %v8760_v28  ;;  %v10816_v28 = vpop.f32.mrb[42].mxu0 }
 0x171   :  { %12154 = vmatprep.subr.bf16.mxu0 %v14041_v40 }
 0x173   :  { %2173 = vmatmul.mubr.f32.gmra.mrb[104].mxu0 %v8759_v30  ;;  %v601_v30 = vadd.f32 %v10816_v28, %v13972_v5 }
 0x174   :  { %12156 = vmatpush3.bf16.msra.mxu0 %v13993_v43  ;;  %2177 = vmatprep.mubr.f32.mxu0 %v8762_v31  ;;  %v595_v31 = vpop.f32.mrb[43].mxu0 }
 0x175   :  { %12158 = vmatprep.subr.bf16.mxu0 %v14049_v48  ;;  %v10819_v42 = vpop.f32.mrb[44].mxu0 }
 0x176   :  { %v605_v44 = vpop.f32.mrb[45].mxu0  ;;  %v611_v46 = vadd.f32 %v10819_v42, %v13972_v5 }
 0x177   :  { %2178 = vmatmul.mubr.f32.gmra.mrb[106].mxu0 %v8761_v33  ;;  %v14414_v33 = vpack.c.bf16 %v745_v25, %v744_v27  ;;  %v606_v47 = vadd.f32 %v13972_v5, %v605_v44  ;;  %v10822_v52 = vpop.f32.mrb[46].mxu0 }
 0x178   :  { %12160 = vmatpush3.bf16.msra.mxu0 %v13997_v50  ;;  %2182 = vmatprep.mubr.f32.mxu0 %v8764_v34  ;;  %v596_v34 = vadd.f32 %v13972_v5, %v595_v31  ;;  %v749_v49 = vmax.f32 %v611_v46, 0.0  ;;  %v615_v53 = vpop.f32.mrb[47].mxu0  ;;  %v621_v58 = vadd.f32 %v10822_v52, %v13972_v5 }
 0x179   :  { %12162 = vmatprep.subr.bf16.mxu0 %v14057_v56  ;;  %16869 = vst [vmem:[#allocation14_spill] sm:$0xff] %v14414_v33  ;;  %v748_v51 = vmax.f32 %v606_v47, 0.0  ;;  %v616_v59 = vadd.f32 %v13972_v5, %v615_v53  ;;  %v10825_v63 = vpop.f32.mrb[48].mxu0 }
 0x17a   :  { %v751_v60 = vmax.f32 %v621_v58, 0.0  ;;  %v625_v2 = vpop.f32.mrb[49].mxu0  ;;  %v631_v4 = vadd.f32 %v10825_v63, %v13972_v5 }
 0x17b   :  { %2183 = vmatmul.mubr.f32.gmra.mrb[108].mxu0 %v8763_v35  ;;  %v8649_v35 = vld [vmem:[%s16767_s4 + $0x30] sm:$0xff]  ;;  %v14435_v55 = vpack.c.bf16 %v749_v49, %v748_v51  ;;  %v750_v62 = vmax.f32 %v616_v59, 0.0  ;;  %v626_v6 = vadd.f32 %v13972_v5, %v625_v2  ;;  %v10828_v11 = vpop.f32.mrb[50].mxu0 }
 0x17c   :  { %12164 = vmatpush3.bf16.msra.mxu0 %v14001_v57  ;;  %2187 = vmatprep.mubr.f32.mxu0 %v8766_v37  ;;  %v8650_v37 = vld [vmem:[%s16767_s4 + $0x38] sm:$0xff]  ;;  %v753_v7 = vmax.f32 %v631_v4, 0.0  ;;  %v635_v12 = vpop.f32.mrb[51].mxu0  ;;  %v641_v14 = vadd.f32 %v10828_v11, %v13972_v5 }
 0x17d   :  { %12166 = vmatprep.subr.bf16.mxu0 %v14064_v61  ;;  %16872 = vst [vmem:[#allocation17_spill] sm:$0xff] %v14435_v55  ;;  %v14440_v3 = vpack.c.bf16 %v751_v60, %v750_v62  ;;  %v752_v9 = vmax.f32 %v626_v6, 0.0  ;;  %v636_v17 = vadd.f32 %v13972_v5, %v635_v12  ;;  %v10831_v21 = vpop.f32.mrb[52].mxu0 }
 0x17e   :  { %v755_v18 = vmax.f32 %v641_v14, 0.0  ;;  %v645_v25 = vpop.f32.mrb[53].mxu0  ;;  %v651_v27 = vadd.f32 %v10831_v21, %v13972_v5 }
 0x17f   :  { %2188 = vmatmul.mubr.f32.gmra.mrb[110].mxu0 %v8765_v38  ;;  %v747_v38 = vmax.f32 %v601_v30, 0.0  ;;  %16873 = vst [vmem:[#allocation18_spill] sm:$0xff] %v14440_v3  ;;  %v14444_v13 = vpack.c.bf16 %v753_v7, %v752_v9  ;;  %v754_v20 = vmax.f32 %v636_v17, 0.0  ;;  %v646_v28 = vadd.f32 %v13972_v5, %v645_v25 }
 0x180   :  { %12168 = vmatpush3.bf16.msra.mxu0 %v14005_v0  ;;  %2416 = vmatprep.mubr.f32.mxu0 %v8780_v39  ;;  %v14424_v39 = vpack.c.bf16 %v8650_v37, %v8649_v35  ;;  %v757_v30 = vmax.f32 %v651_v27, 0.0  ;;  %v889_v35 = vld [vmem:[%s16767_s4] sm:$0xff]  ;;  %v890_v37 = vld [vmem:[%s16767_s4 + $0x8] sm:$0xff] }
 0x181   :  { %12178 = vmatprep.subr.bf16.mxu0 %v14009_v8  ;;  %v14448_v26 = vpack.c.bf16 %v755_v18, %v754_v20  ;;  %v756_v31 = vmax.f32 %v646_v28, 0.0 }
 0x182   :  { %16870 = vst [vmem:[#allocation15_spill] sm:$0xff] %v14424_v39  ;;  %11966 = vmatprep.subr.bf16.mxu1 %v14424_v39 }
 0x183   :  { %2417 = vmatmul.mubr.f32.vlgmr.msra.gmra.mrb[112].mxu0 %v8779_v41  ;;  %v746_v41 = vmax.f32 %v596_v34, 0.0  ;;  %11968 = vmatpush3.bf16.msra.mxu1 %v14424_v39  ;;  %16874 = vst [vmem:[#allocation19_spill] sm:$0xff] %v14448_v26  ;;  %v10834_v34 = vpop.f32.mrb[54].mxu0 }
 0x184   :  { %12180 = vmatpush3.bf16.msra.mxu0 %v13977_v15  ;;  %v661_v42 = vadd.f32 %v10834_v34, %v13972_v5  ;;  %v655_v44 = vpop.f32.mrb[55].mxu0 }
 0x185   :  { %12182 = vmatprep.subr.bf16.mxu0 %v14017_v16  ;;  %v14428_v45 = vpack.c.bf16 %v747_v38, %v746_v41  ;;  %v14458_v38 = vpack.c.bf16 %v890_v37, %v889_v35  ;;  %v14460_v41 = vpack.c.bf16 %v757_v30, %v756_v31  ;;  %v656_v46 = vadd.f32 %v13972_v5, %v655_v44  ;;  %v10837_v51 = vpop.f32.mrb[56].mxu0 }
 0x186   :  { %v759_v47 = vmax.f32 %v661_v42, 0.0  ;;  %v665_v52 = vpop.f32.mrb[57].mxu0  ;;  %v671_v58 = vadd.f32 %v10837_v51, %v13972_v5 }
 0x187   :  { %16871 = vst [vmem:[#allocation16_spill] sm:$0xff] %v14428_v45  ;;  %16875 = vst [vmem:[#allocation20_spill] sm:$0xff] %v14458_v38  ;;  %11970 = vmatprep.subr.bf16.mxu1 %v14458_v38  ;;  %v758_v49 = vmax.f32 %v656_v46, 0.0  ;;  %v666_v59 = vadd.f32 %v13972_v5, %v665_v52  ;;  %v10840_v63 = vpop.f32.mrb[58].mxu0 }
 0x188   :  { %12184 = vmatpush3.bf16.msra.mxu0 %v13981_v22  ;;  %16876 = vst [vmem:[#allocation21_spill] sm:$0xff] %v14460_v41  ;;  %v761_v60 = vmax.f32 %v671_v58, 0.0  ;;  %v675_v2 = vpop.f32.mrb[59].mxu0  ;;  %v681_v6 = vadd.f32 %v10840_v63, %v13972_v5 }
 0x189   :  { %12186 = vmatprep.subr.bf16.mxu0 %v14025_v24  ;;  %v14465_v53 = vpack.c.bf16 %v759_v47, %v758_v49  ;;  %v760_v62 = vmax.f32 %v666_v59, 0.0  ;;  %v676_v7 = vadd.f32 %v13972_v5, %v675_v2  ;;  %v10843_v12 = vpop.f32.mrb[60].mxu0 }
 0x18a   :  { %v763_v9 = vmax.f32 %v681_v6, 0.0  ;;  %v685_v14 = vpop.f32.mrb[61].mxu0  ;;  %v691_v18 = vadd.f32 %v10843_v12, %v13972_v5 }
 0x18b   :  { %16877 = vst [vmem:[#allocation22_spill] sm:$0xff] %v14465_v53  ;;  %v14469_v4 = vpack.c.bf16 %v761_v60, %v760_v62  ;;  %v762_v11 = vmax.f32 %v676_v7, 0.0  ;;  %v686_v20 = vadd.f32 %v13972_v5, %v685_v14  ;;  %v10846_v27 = vpop.f32.mrb[62].mxu0 }
 0x18c   :  { %12188 = vmatpush3.bf16.msra.mxu0 %v13985_v29  ;;  %v765_v21 = vmax.f32 %v691_v18, 0.0  ;;  %v695_v28 = vpop.f32.mrb[63].mxu0  ;;  %v701_v31 = vadd.f32 %v10846_v27, %v13972_v5 }
 0x18d   :  { %12190 = vmatprep.subr.bf16.mxu0 %v14033_v32  ;;  %16878 = vst [vmem:[#allocation23_spill] sm:$0xff] %v14469_v4  ;;  %v14473_v17 = vpack.c.bf16 %v763_v9, %v762_v11  ;;  %v764_v25 = vmax.f32 %v686_v20, 0.0  ;;  %v696_v34 = vadd.f32 %v13972_v5, %v695_v28 }
 0x18e   :  { %v767_v35 = vmax.f32 %v701_v31, 0.0 }
 0x18f   :  { %16879 = vst [vmem:[#allocation24_spill] sm:$0xff] %v14473_v17  ;;  %v14477_v30 = vpack.c.bf16 %v765_v21, %v764_v25  ;;  %v766_v37 = vmax.f32 %v696_v34, 0.0  ;;  %v8782_v34 = vld [vmem:[%s16766_s3 + $0x318] sm:$0xff] }
 0x190   :  { %12192 = vmatpush3.bf16.msra.mxu0 %v13989_v36  ;;  %2421 = vmatprep.mubr.f32.mxu0 %v8782_v34 }
 0x191   :  { %12194 = vmatprep.subr.bf16.mxu0 %v14041_v40  ;;  %16880 = vst [vmem:[#allocation25_spill] sm:$0xff] %v14477_v30  ;;  %v14481_v42 = vpack.c.bf16 %v767_v35, %v766_v37  ;;  %v8781_v35 = vld [vmem:[%s16766_s3 + $0x310] sm:$0xff]  ;;  %v8784_v37 = vld [vmem:[%s16766_s3 + $0x328] sm:$0xff] }
 0x192   :  { %2422 = vmatmul.mubr.f32.gmra.mrb[114].mxu0 %v8781_v35 }
 0x193   :  { %16881 = vst [vmem:[#allocation26_spill] sm:$0xff] %v14481_v42  ;;  %2426 = vmatprep.mubr.f32.mxu0 %v8784_v37  ;;  %v8787_v37 = vld [vmem:[%s16766_s3 + $0x340] sm:$0xff] }
 0x194   :  { %12196 = vmatpush3.bf16.msra.mxu0 %v13993_v43 }
 0x195   :  { %12198 = vmatprep.subr.bf16.mxu0 %v14049_v48 }
 0x198   :  { %12200 = vmatpush3.bf16.msra.mxu0 %v13997_v50 }
 0x199   :  { %12202 = vmatprep.subr.bf16.mxu0 %v14057_v56 }
 0x19c   :  { %12204 = vmatpush3.bf16.msra.mxu0 %v14001_v57 }
 0x19d   :  { %12206 = vmatprep.subr.bf16.mxu0 %v14064_v61 }
 0x1a0   :  { %12208 = vmatpush3.bf16.msra.mxu0 %v14005_v0 }
 0x1f6   :  { %v9195_v44 = vpop.f32.mrb[0].mxu1  ;;  %v9331_v46 = vpop.f32.mrb[64].mxu0 }
 0x1f7   :  { %v9196_v47 = vpop.f32.mrb[1].mxu1  ;;  %v9332_v49 = vpop.f32.mrb[65].mxu0 }
 0x1f8   :  { %v14483_v51 = vadd.f32 %v9196_v47, %v9195_v44  ;;  %v14485_v52 = vadd.f32 %v9332_v49, %v9331_v46 }
 0x1fa   :  { %v9198_v58 = vpop.f32.mrb[2].mxu1  ;;  %v9334_v59 = vpop.f32.mrb[66].mxu0 }
 0x1fb   :  { %v9199_v60 = vpop.f32.mrb[3].mxu1  ;;  %v9335_v62 = vpop.f32.mrb[67].mxu0 }
 0x1fc   :  { %v14487_v63 = vadd.f32 %v9199_v60, %v9198_v58  ;;  %v14489_v2 = vadd.f32 %v9335_v62, %v9334_v59  ;;  %v8783_v58 = vld [vmem:[%s16766_s3 + $0x320] sm:$0xff]  ;;  %v8786_v62 = vld [vmem:[%s16766_s3 + $0x338] sm:$0xff] }
 0x1fd   :  { %2427 = vmatmul.mubr.f32.gmra.mrb[116].mxu0 %v8783_v58  ;;  %v8790_v58 = vld [vmem:[%s16766_s3 + $0x358] sm:$0xff] }
 0x1fe   :  { %v9201_v5 = vpop.f32.mrb[4].mxu1  ;;  %v9337_v6 = vpop.f32.mrb[68].mxu0  ;;  %2431 = vmatprep.mubr.f32.mxu0 %v8786_v62 }
 0x1ff   :  { %v9202_v7 = vpop.f32.mrb[5].mxu1  ;;  %v9338_v9 = vpop.f32.mrb[69].mxu0 }
 0x200   :  { %v14491_v11 = vadd.f32 %v9202_v7, %v9201_v5  ;;  %v14493_v12 = vadd.f32 %v9338_v9, %v9337_v6 }
 0x202   :  { %v9204_v14 = vpop.f32.mrb[6].mxu1  ;;  %v9340_v18 = vpop.f32.mrb[70].mxu0 }
 0x203   :  { %v9205_v20 = vpop.f32.mrb[7].mxu1  ;;  %v9341_v21 = vpop.f32.mrb[71].mxu0 }
 0x204   :  { %v14495_v25 = vadd.f32 %v9205_v20, %v9204_v14  ;;  %v14497_v27 = vadd.f32 %v9341_v21, %v9340_v18  ;;  %v8785_v14 = vld [vmem:[%s16766_s3 + $0x330] sm:$0xff]  ;;  %v8788_v21 = vld [vmem:[%s16766_s3 + $0x348] sm:$0xff] }
 0x205   :  { %2432 = vmatmul.mubr.f32.gmra.mrb[118].mxu0 %v8785_v14 }
 0x206   :  { %v9207_v28 = vpop.f32.mrb[8].mxu1  ;;  %v9343_v31 = vpop.f32.mrb[72].mxu0  ;;  %2436 = vmatprep.mubr.f32.mxu0 %v8788_v21 }
 0x207   :  { %v9208_v44 = vpop.f32.mrb[9].mxu1  ;;  %v9344_v46 = vpop.f32.mrb[73].mxu0 }
 0x208   :  { %v14508_v47 = vadd.f32 %v9208_v44, %v9207_v28  ;;  %v14510_v49 = vadd.f32 %v9344_v46, %v9343_v31 }
 0x209   :  { %2437 = vmatmul.mubr.f32.gmra.mrb[120].mxu0 %v8787_v37  ;;  %v891_v37 = vld [vmem:[%s16767_s4 + $0x10] sm:$0xff] }
 0x20a   :  { %v9210_v59 = vpop.f32.mrb[10].mxu1  ;;  %v9346_v60 = vpop.f32.mrb[74].mxu0  ;;  %2441 = vmatprep.mubr.f32.mxu0 %v8790_v58  ;;  %v8791_v58 = vld [vmem:[%s16766_s3 + $0x360] sm:$0xff] }
 0x20b   :  { %v9211_v5 = vpop.f32.mrb[11].mxu1  ;;  %v9347_v6 = vpop.f32.mrb[75].mxu0 }
 0x20c   :  { %v14518_v7 = vadd.f32 %v9211_v5, %v9210_v59  ;;  %v14520_v9 = vadd.f32 %v9347_v6, %v9346_v60  ;;  %v8789_v6 = vld [vmem:[%s16766_s3 + $0x350] sm:$0xff] }
 0x20d   :  { %2442 = vmatmul.mubr.f32.gmra.mrb[122].mxu0 %v8789_v6 }
 0x20e   :  { %v9213_v18 = vpop.f32.mrb[12].mxu1  ;;  %v9349_v20 = vpop.f32.mrb[76].mxu0 }
 0x20f   :  { %v9214_v28 = vpop.f32.mrb[13].mxu1  ;;  %v9350_v31 = vpop.f32.mrb[77].mxu0 }
 0x210   :  { %v14528_v34 = vadd.f32 %v9214_v28, %v9213_v18  ;;  %v14530_v35 = vadd.f32 %v9350_v31, %v9349_v20  ;;  %v8792_v18 = vld [vmem:[%s16766_s3 + $0x368] sm:$0xff] }
 0x211   :  { %2446 = vmatprep.mubr.f32.mxu0 %v8792_v18  ;;  %v8683_v18 = vld [vmem:[%s16767_s4 + $0x40] sm:$0xff] }
 0x212   :  { %v9216_v44 = vpop.f32.mrb[14].mxu1  ;;  %v9352_v46 = vpop.f32.mrb[78].mxu0  ;;  %2447 = vmatmul.mubr.f32.gmra.mrb[124].mxu0 %v8791_v58 }
 0x213   :  { %v9217_v59 = vpop.f32.mrb[15].mxu1  ;;  %v9353_v60 = vpop.f32.mrb[79].mxu0 }
 0x214   :  { %v14538_v62 = vadd.f32 %v9217_v59, %v9216_v44  ;;  %v14540_v5 = vadd.f32 %v9353_v60, %v9352_v46  ;;  %v892_v46 = vld [vmem:[%s16767_s4 + $0x18] sm:$0xff] }
 0x215   :  { %v8794_v60 = vld [vmem:[%s16766_s3 + $0x378] sm:$0xff] }
 0x216   :  { %v9251_v14 = vpop.f32.mrb[16].mxu1  ;;  %v9467_v20 = vpop.f32.mrb[80].mxu0  ;;  %2451 = vmatprep.mubr.f32.mxu0 %v8794_v60 }
 0x217   :  { %v9252_v21 = vpop.f32.mrb[17].mxu1  ;;  %v9468_v28 = vpop.f32.mrb[81].mxu0  ;;  %2452 = vmatmul.mubr.f32.gmra.mrb[126].mxu0 %v8793_v19 }
 0x218   :  { %v9253_v31 = vadd.f32 %v9252_v21, %v9251_v14  ;;  %v14548_v44 = vadd.f32 %v9468_v28, %v9467_v20  ;;  %v14563_v28 = vpack.c.bf16 %v892_v46, %v891_v37  ;;  %v8808_v37 = vld [vmem:[%s16766_s3 + $0x388] sm:$0xff] }
 0x219   :  { %2680 = vmatprep.mubr.f32.mxu0 %v8808_v37  ;;  %v8809_v37 = vld [vmem:[%s16766_s3 + $0x390] sm:$0xff] }
 0x21a   :  { %v9254_v59 = vpop.f32.mrb[18].mxu1  ;;  %10855 = vmatprep.mubr.msk.f32.mxu1 %vm1020_vm4, %v9253_v31  ;;  %v9470_v6 = vpop.f32.mrb[82].mxu0  ;;  %16882 = vst [vmem:[#allocation27_spill] sm:$0xff] %v14563_v28  ;;  %v8684_v31 = vld [vmem:[%s16767_s4 + $0x48] sm:$0xff] }
 0x21b   :  { %v9255_v14 = vpop.f32.mrb[19].mxu1  ;;  %v9471_v20 = vpop.f32.mrb[83].mxu0  ;;  %v14582_v60 = vpack.c.bf16 %v8684_v31, %v8683_v18 }
 0x21c   :  { %v9256_v21 = vadd.f32 %v9255_v14, %v9254_v59  ;;  %v14565_v39 = vadd.f32 %v9471_v20, %v9470_v6  ;;  %v8807_v20 = vld [vmem:[%s16766_s3 + $0x380] sm:$0xff] }
 0x21d   :  { %16883 = vst [vmem:[#allocation28_spill] sm:$0xff] %v14582_v60  ;;  %2681 = vmatmul.mubr.f32.vlgmr.msra.gmra.mrb[128].mxu0 %v8807_v20 }
 0x21e   :  { %v9257_v3 = vpop.f32.mrb[20].mxu1  ;;  %10856 = vmatmul.mubr.msk.f32.vlgmr.msra.gmra.mrb[32].mxu1 %vm1020_vm4, %v9256_v21  ;;  %v9473_v46 = vpop.f32.mrb[84].mxu0 }
 0x21f   :  { %v9258_v58 = vpop.f32.mrb[21].mxu1  ;;  %11972 = vmatpush3.bf16.msra.mxu1 %v14458_v38  ;;  %v9474_v59 = vpop.f32.mrb[85].mxu0  ;;  %v8810_v38 = vld [vmem:[%s16766_s3 + $0x398] sm:$0xff] }
 0x220   :  { %v9259_v6 = vadd.f32 %v9258_v58, %v9257_v3  ;;  %11974 = vmatprep.subr.bf16.mxu1 %v14563_v28  ;;  %v14584_v14 = vadd.f32 %v9474_v59, %v9473_v46  ;;  %2685 = vmatprep.mubr.f32.mxu0 %v8810_v38  ;;  %v8812_v59 = vld [vmem:[%s16766_s3 + $0x3a8] sm:$0xff]  ;;  %v8811_v38 = vld [vmem:[%s16766_s3 + $0x3a0] sm:$0xff] }
 0x221   :  { %2686 = vmatmul.mubr.f32.gmra.mrb[130].mxu0 %v8809_v37 }
 0x222   :  { %v9260_v21 = vpop.f32.mrb[22].mxu1  ;;  %10858 = vmatprep.mubr.msk.f32.mxu1 %vm1020_vm4, %v9259_v6  ;;  %v9476_v3 = vpop.f32.mrb[86].mxu0  ;;  %2690 = vmatprep.mubr.f32.mxu0 %v8812_v59 }
 0x223   :  { %v9261_v58 = vpop.f32.mrb[23].mxu1  ;;  %11976 = vmatpush3.bf16.msra.mxu1 %v14563_v28  ;;  %v9477_v18 = vpop.f32.mrb[87].mxu0 }
 0x224   :  { %v9262_v19 = vadd.f32 %v9261_v58, %v9260_v21  ;;  %12010 = vmatprep.subr.bf16.mxu1 %v14582_v60  ;;  %v14595_v31 = vadd.f32 %v9477_v18, %v9476_v3  ;;  %v8814_v18 = vld [vmem:[%s16766_s3 + $0x3b8] sm:$0xff] }
 0x225   :  { %2691 = vmatmul.mubr.f32.gmra.mrb[132].mxu0 %v8811_v38  ;;  %v8818_v38 = vld [vmem:[%s16766_s3 + $0x3d8] sm:$0xff] }
 0x226   :  { %v9263_v46 = vpop.f32.mrb[24].mxu1  ;;  %10859 = vmatmul.mubr.msk.f32.gmra.mrb[34].mxu1 %vm1020_vm4, %v9262_v19  ;;  %v9479_v6 = vpop.f32.mrb[88].mxu0  ;;  %2695 = vmatprep.mubr.f32.mxu0 %v8814_v18  ;;  %v8685_v18 = vld [vmem:[%s16767_s4 + $0x50] sm:$0xff] }
 0x227   :  { %v9264_v28 = vpop.f32.mrb[25].mxu1  ;;  %v9480_v21 = vpop.f32.mrb[89].mxu0 }
 0x228   :  { %v9265_v58 = vadd.f32 %v9264_v28, %v9263_v46  ;;  %v14604_v20 = vadd.f32 %v9480_v21, %v9479_v6  ;;  %v8813_v28 = vld [vmem:[%s16766_s3 + $0x3b0] sm:$0xff]  ;;  %v8816_v46 = vld [vmem:[%s16766_s3 + $0x3c8] sm:$0xff]  ;;  %v8815_v21 = vld [vmem:[%s16766_s3 + $0x3c0] sm:$0xff] }
 0x229   :  { %2696 = vmatmul.mubr.f32.gmra.mrb[134].mxu0 %v8813_v28  ;;  %v8817_v28 = vld [vmem:[%s16766_s3 + $0x3d0] sm:$0xff] }
 0x22a   :  { %v9266_v3 = vpop.f32.mrb[26].mxu1  ;;  %10861 = vmatprep.mubr.msk.f32.mxu1 %vm1020_vm4, %v9265_v58  ;;  %2700 = vmatprep.mubr.f32.mxu0 %v8816_v46 }
 0x22b   :  { %v9267_v19 = vpop.f32.mrb[27].mxu1 }
 0x22c   :  { %v9268_v42 = vadd.f32 %v9267_v19, %v9266_v3  ;;  %v8686_v19 = vld [vmem:[%s16767_s4 + $0x58] sm:$0xff] }
 0x22d   :  { %2701 = vmatmul.mubr.f32.gmra.mrb[136].mxu0 %v8815_v21  ;;  %v14642_v46 = vpack.c.bf16 %v8686_v19, %v8685_v18  ;;  %v8708_v21 = vld [vmem:[%s16766_s3 + $0x1e8] sm:$0xff]  ;;  %v8713_v19 = vld [vmem:[%s16767_s4 + $0x70] sm:$0xff] }
 0x22e   :  { %v9269_v37 = vpop.f32.mrb[28].mxu1  ;;  %10862 = vmatmul.mubr.msk.f32.gmra.mrb[36].mxu1 %vm1020_vm4, %v9268_v42  ;;  %2705 = vmatprep.mubr.f32.mxu0 %v8818_v38  ;;  %v8710_v38 = vld [vmem:[%s16766_s3 + $0x1f8] sm:$0xff] }
 0x22f   :  { %v9270_v59 = vpop.f32.mrb[29].mxu1  ;;  %16884 = vst [vmem:[#allocation29_spill] sm:$0xff] %v14642_v46 }
 0x230   :  { %v9271_v6 = vadd.f32 %v9270_v59, %v9269_v37  ;;  %v8820_v37 = vld [vmem:[%s16766_s3 + $0x3e8] sm:$0xff]  ;;  %v8819_v59 = vld [vmem:[%s16766_s3 + $0x3e0] sm:$0xff] }
 0x231   :  { %2706 = vmatmul.mubr.f32.gmra.mrb[138].mxu0 %v8817_v28  ;;  %v8714_v28 = vld [vmem:[%s16767_s4 + $0x78] sm:$0xff] }
 0x232   :  { %v9272_v58 = vpop.f32.mrb[30].mxu1  ;;  %10864 = vmatprep.mubr.msk.f32.mxu1 %vm1020_vm4, %v9271_v6  ;;  %2710 = vmatprep.mubr.f32.mxu0 %v8820_v37  ;;  %v8822_v6 = vld [vmem:[%s16766_s3 + $0x3f8] sm:$0xff] }
 0x233   :  { %v9273_v42 = vpop.f32.mrb[31].mxu1 }
 0x234   :  { %v9274_v3 = vadd.f32 %v9273_v42, %v9272_v58  ;;  %v8707_v58 = vld [vmem:[%s16766_s3 + $0x1e0] sm:$0xff]  ;;  %v8709_v42 = vld [vmem:[%s16766_s3 + $0x1f0] sm:$0xff] }
 0x235   :  { %2711 = vmatmul.mubr.f32.gmra.mrb[140].mxu0 %v8819_v59  ;;  %v14768_v59 = vpack.c.bf16 %v8714_v28, %v8713_v19 }
 0x236   :  { %10865 = vmatmul.mubr.msk.f32.gmra.mrb[38].mxu1 %vm1020_vm4, %v9274_v3  ;;  %2715 = vmatprep.mubr.f32.mxu0 %v8822_v6  ;;  %v9482_v3 = vpop.f32.mrb[90].mxu0 }
 0x237   :  { %10875 = vmatprep.mubr.msk.f32.mxu1 %vm1020_vm4, %v14483_v51  ;;  %v8821_v51 = vld [vmem:[%s16766_s3 + $0x3f0] sm:$0xff]  ;;  %v9483_v18 = vpop.f32.mrb[91].mxu0  ;;  %16886 = vst [vmem:[#allocation31_spill] sm:$0xff] %v14768_v59 }
 0x238   :  { %v14766_v37 = vadd.f32 %v9483_v18, %v9482_v3  ;;  %v9485_v6 = vpop.f32.mrb[92].mxu0 }
 0x239   :  { %2716 = vmatmul.mubr.f32.gmra.mrb[142].mxu0 %v8821_v51  ;;  %v9486_v51 = vpop.f32.mrb[93].mxu0 }
 0x23a   :  { %10876 = vmatmul.mubr.msk.f32.vlgmr.msra.gmra.mrb[32].mxu1 %vm1020_vm4, %v14487_v63  ;;  %v8711_v63 = vld [vmem:[%s16767_s4 + $0x60] sm:$0xff] }
 0x23b   :  { %12012 = vmatpush3.bf16.msra.mxu1 %v14582_v60  ;;  %10878 = vmatprep.mubr.msk.f32.mxu1 %vm1020_vm4, %v14491_v11 }
 0x23c   :  { %12014 = vmatprep.subr.bf16.mxu1 %v14642_v46 }
 0x23e   :  { %10879 = vmatmul.mubr.msk.f32.gmra.mrb[34].mxu1 %vm1020_vm4, %v14495_v25  ;;  %v8698_v25 = vld [vmem:[%s16766_s3 + $0x198] sm:$0xff] }
 0x23f   :  { %12016 = vmatpush3.bf16.msra.mxu1 %v14642_v46  ;;  %10881 = vmatprep.mubr.msk.f32.mxu1 %vm1020_vm4, %v14508_v47  ;;  %v8700_v47 = vld [vmem:[%s16766_s3 + $0x1a8] sm:$0xff] }
 0x240   :  { %12018 = vmatprep.subr.bf16.mxu1 %v14009_v8 }
 0x242   :  { %10882 = vmatmul.mubr.msk.f32.gmra.mrb[36].mxu1 %vm1020_vm4, %v14518_v7  ;;  %v8702_v7 = vld [vmem:[%s16766_s3 + $0x1b8] sm:$0xff] }
 0x243   :  { %10884 = vmatprep.mubr.msk.f32.mxu1 %vm1020_vm4, %v14528_v34  ;;  %v8704_v34 = vld [vmem:[%s16766_s3 + $0x1c8] sm:$0xff] }
 0x246   :  { %10885 = vmatmul.mubr.msk.f32.gmra.mrb[38].mxu1 %vm1020_vm4, %v14538_v62  ;;  %v8706_v62 = vld [vmem:[%s16766_s3 + $0x1d8] sm:$0xff] }
 0x247   :  { %10895 = vmatprep.mubr.msk.f32.mxu1 %vm1020_vm4, %v14485_v52  ;;  %v8696_v52 = vld [vmem:[%s16766_s3 + $0x188] sm:$0xff] }
 0x24a   :  { %10896 = vmatmul.mubr.msk.f32.vlgmr.msra.gmra.mrb[32].mxu1 %vm1020_vm4, %v14489_v2  ;;  %v8712_v2 = vld [vmem:[%s16767_s4 + $0x68] sm:$0xff] }
 0x24b   :  { %12020 = vmatpush3.bf16.msra.mxu1 %v13977_v15  ;;  %10898 = vmatprep.mubr.msk.f32.mxu1 %vm1020_vm4, %v14493_v12  ;;  %v14710_v11 = vpack.c.bf16 %v8712_v2, %v8711_v63  ;;  %v8695_v12 = vld [vmem:[%s16766_s3 + $0x180] sm:$0xff]  ;;  %v9488_v63 = vpop.f32.mrb[94].mxu0 }
 0x24c   :  { %12022 = vmatprep.subr.bf16.mxu1 %v14017_v16  ;;  %v9489_v2 = vpop.f32.mrb[95].mxu0 }
 0x24d   :  { %16885 = vst [vmem:[#allocation30_spill] sm:$0xff] %v14710_v11 }
 0x24e   :  { %10899 = vmatmul.mubr.msk.f32.gmra.mrb[34].mxu1 %vm1020_vm4, %v14497_v27  ;;  %v8697_v27 = vld [vmem:[%s16766_s3 + $0x190] sm:$0xff] }
 0x24f   :  { %12024 = vmatpush3.bf16.msra.mxu1 %v13981_v22  ;;  %10901 = vmatprep.mubr.msk.f32.mxu1 %vm1020_vm4, %v14510_v49  ;;  %v8699_v49 = vld [vmem:[%s16766_s3 + $0x1a0] sm:$0xff] }
 0x250   :  { %12026 = vmatprep.subr.bf16.mxu1 %v14025_v24 }
 0x252   :  { %10902 = vmatmul.mubr.msk.f32.gmra.mrb[36].mxu1 %vm1020_vm4, %v14520_v9  ;;  %v8701_v9 = vld [vmem:[%s16766_s3 + $0x1b0] sm:$0xff] }
 0x253   :  { %12028 = vmatpush3.bf16.msra.mxu1 %v13985_v29  ;;  %10904 = vmatprep.mubr.msk.f32.mxu1 %vm1020_vm4, %v14530_v35  ;;  %v8703_v35 = vld [vmem:[%s16766_s3 + $0x1c0] sm:$0xff] }
 0x254   :  { %12030 = vmatprep.subr.bf16.mxu1 %v14033_v32 }
 0x256   :  { %10905 = vmatmul.mubr.msk.f32.gmra.mrb[38].mxu1 %vm1020_vm4, %v14540_v5  ;;  %v8705_v5 = vld [vmem:[%s16766_s3 + $0x1d0] sm:$0xff] }
 0x257   :  { %12032 = vmatpush3.bf16.msra.mxu1 %v13989_v36  ;;  %1624 = vmatprep.mubr.f32.mxu1 %v8696_v52  ;;  %v14772_v52 = vadd.f32 %v9486_v51, %v9485_v6 }
 0x258   :  { %12034 = vmatprep.subr.bf16.mxu1 %v14041_v40 }
 0x25b   :  { %12036 = vmatpush3.bf16.msra.mxu1 %v13993_v43 }
 0x25c   :  { %12038 = vmatprep.subr.bf16.mxu1 %v14049_v48 }
 0x25f   :  { %12040 = vmatpush3.bf16.msra.mxu1 %v13997_v50 }
 0x260   :  { %12042 = vmatprep.subr.bf16.mxu1 %v14057_v56 }
 0x263   :  { %12044 = vmatpush3.bf16.msra.mxu1 %v14001_v57 }
 0x264   :  { %12046 = vmatprep.subr.bf16.mxu1 %v14064_v61 }
 0x267   :  { %12048 = vmatpush3.bf16.msra.mxu1 %v14005_v0 }
 0x268   :  { %12050 = vmatprep.subr.bf16.mxu1 %v14710_v11 }
 0x26a   :  { %1625 = vmatmul.mubr.f32.vlgmr.msra.gmra.mrb[40].mxu1 %v8695_v12  ;;  %v14774_v12 = vadd.f32 %v9489_v2, %v9488_v63 }
 0x26b   :  { %1629 = vmatprep.mubr.f32.mxu1 %v8698_v25  ;;  %12052 = vmatpush3.bf16.msra.mxu1 %v14710_v11  ;;  %v9535_v25 = vpop.f32.mrb[96].mxu0 }
 0x26c   :  { %12054 = vmatprep.subr.bf16.mxu1 %v14768_v59 }
 0x26e   :  { %1630 = vmatmul.mubr.f32.gmra.mrb[42].mxu1 %v8697_v27  ;;  %v9536_v27 = vpop.f32.mrb[97].mxu0 }
 0x26f   :  { %1634 = vmatprep.mubr.f32.mxu1 %v8700_v47  ;;  %12056 = vmatpush3.bf16.msra.mxu1 %v14768_v59  ;;  %v14776_v47 = vadd.f32 %v9536_v27, %v9535_v25 }
 0x272   :  { %1635 = vmatmul.mubr.f32.gmra.mrb[44].mxu1 %v8699_v49  ;;  %v9538_v49 = vpop.f32.mrb[98].mxu0 }
 0x273   :  { %1639 = vmatprep.mubr.f32.mxu1 %v8702_v7  ;;  %v9539_v7 = vpop.f32.mrb[99].mxu0 }
 0x276   :  { %1640 = vmatmul.mubr.f32.gmra.mrb[46].mxu1 %v8701_v9  ;;  %v14778_v9 = vadd.f32 %v9539_v7, %v9538_v49 }
 0x277   :  { %1644 = vmatprep.mubr.f32.mxu1 %v8704_v34  ;;  %v9541_v34 = vpop.f32.mrb[100].mxu0 }
 0x27a   :  { %1645 = vmatmul.mubr.f32.gmra.mrb[48].mxu1 %v8703_v35  ;;  %v9542_v35 = vpop.f32.mrb[101].mxu0 }
 0x27b   :  { %1649 = vmatprep.mubr.f32.mxu1 %v8706_v62  ;;  %v14780_v62 = vadd.f32 %v9542_v35, %v9541_v34 }
 0x27e   :  { %1650 = vmatmul.mubr.f32.gmra.mrb[50].mxu1 %v8705_v5  ;;  %v9544_v5 = vpop.f32.mrb[102].mxu0 }
 0x27f   :  { %1654 = vmatprep.mubr.f32.mxu1 %v8708_v21  ;;  %v9545_v21 = vpop.f32.mrb[103].mxu0 }
 0x280   :  { %v9547_v18 = vpop.f32.mrb[104].mxu0 }
 0x281   :  { %v9548_v19 = vpop.f32.mrb[105].mxu0 }
 0x282   :  { %1655 = vmatmul.mubr.f32.gmra.mrb[52].mxu1 %v8707_v58  ;;  %v8739_v58 = vld [vmem:[%s16767_s4 + $0x80] sm:$0xff]  ;;  %v14793_v28 = vadd.f32 %v9548_v19, %v9547_v18  ;;  %v9550_v6 = vpop.f32.mrb[106].mxu0 }
 0x283   :  { %1659 = vmatprep.mubr.f32.mxu1 %v8710_v38  ;;  %v8740_v38 = vld [vmem:[%s16767_s4 + $0x88] sm:$0xff]  ;;  %v9551_v51 = vpop.f32.mrb[107].mxu0 }
 0x284   :  { %v14790_v3 = vpack.c.bf16 %v8740_v38, %v8739_v58  ;;  %v14795_v63 = vadd.f32 %v9551_v51, %v9550_v6  ;;  %v9553_v2 = vpop.f32.mrb[108].mxu0 }
 0x285   :  { %v9554_v25 = vpop.f32.mrb[109].mxu0 }
 0x286   :  { %1660 = vmatmul.mubr.f32.gmra.mrb[54].mxu1 %v8709_v42  ;;  %v14788_v42 = vadd.f32 %v9545_v21, %v9544_v5  ;;  %16887 = vst [vmem:[#allocation32_spill] sm:$0xff] %v14790_v3  ;;  %12090 = vmatprep.subr.bf16.mxu1 %v14790_v3  ;;  %v14797_v27 = vadd.f32 %v9554_v25, %v9553_v2  ;;  %v9556_v49 = vpop.f32.mrb[110].mxu0 }
 0x287   :  { %v9557_v7 = vpop.f32.mrb[111].mxu0 }
 0x288   :  { %v14799_v34 = vadd.f32 %v9557_v7, %v9556_v49  ;;  %v9603_v35 = vpop.f32.mrb[112].mxu0 }
 0x289   :  { %v9604_v5 = vpop.f32.mrb[113].mxu0 }
 0x28a   :  { %v14801_v21 = vadd.f32 %v9604_v5, %v9603_v35  ;;  %v9606_v58 = vpop.f32.mrb[114].mxu0 }
 0x28b   :  { %v9607_v38 = vpop.f32.mrb[115].mxu0 }
 0x28c   :  { %v14803_v18 = vadd.f32 %v9607_v38, %v9606_v58 }
 0x2d0   :  { %v9609_v19 = vpop.f32.mrb[116].mxu0 }
 0x2d1   :  { %v9610_v59 = vpop.f32.mrb[117].mxu0 }
 0x2d2   :  { %v14805_v6 = vadd.f32 %v9610_v59, %v9609_v19 }
 0x2d8   :  { %v9612_v51 = vpop.f32.mrb[118].mxu0 }
 0x2d9   :  { %v9613_v11 = vpop.f32.mrb[119].mxu0 }
 0x2da   :  { %v14807_v2 = vadd.f32 %v9613_v11, %v9612_v51 }
 0x2dc   :  { %v9615_v25 = vpop.f32.mrb[120].mxu0 }
 0x2dd   :  { %v9616_v46 = vpop.f32.mrb[121].mxu0 }
 0x2de   :  { %v14809_v49 = vadd.f32 %v9616_v46, %v9615_v25 }
 0x2e0   :  { %v9618_v7 = vpop.f32.mrb[122].mxu0 }
 0x2e1   :  { %v9619_v60 = vpop.f32.mrb[123].mxu0 }
 0x2e2   :  { %v14811_v35 = vadd.f32 %v9619_v60, %v9618_v7 }
 0x2e5   :  { %v9621_v5 = vpop.f32.mrb[124].mxu0 }
 0x2e6   :  { %v9622_v55 = vpop.f32.mrb[125].mxu0 }
 0x2e7   :  { %v14813_v58 = vadd.f32 %v9622_v55, %v9621_v5 }
 0x2ea   :  { %v9624_v38 = vpop.f32.mrb[126].mxu0 }
 0x2eb   :  { %v9625_v30 = vpop.f32.mrb[127].mxu0 }
 0x2ec   :  { %v14815_v59 = vadd.f32 %v9625_v30, %v9624_v38 }
 0x2f0   :  { %v9671_v19 = vpop.f32.mrb[128].mxu0 }
 0x2f1   :  { %v9672_v45 = vpop.f32.mrb[129].mxu0 }
 0x2f2   :  { %v14817_v11 = vadd.f32 %v9672_v45, %v9671_v19 }
 0x2f4   :  { %v9674_v51 = vpop.f32.mrb[130].mxu0 }
 0x2f5   :  { %v9675_v17 = vpop.f32.mrb[131].mxu0 }
 0x2f6   :  { %v14819_v46 = vadd.f32 %v9675_v17, %v9674_v51 }
 0x2f8   :  { %v9677_v25 = vpop.f32.mrb[132].mxu0 }
 0x2f9   :  { %v9678_v33 = vpop.f32.mrb[133].mxu0 }
 0x2fa   :  { %v14821_v60 = vadd.f32 %v9678_v33, %v9677_v25 }
 0x2fc   :  { %v9680_v7 = vpop.f32.mrb[134].mxu0 }
 0x2fd   :  { %v9681_v4 = vpop.f32.mrb[135].mxu0 }
 0x2fe   :  { %v14823_v55 = vadd.f32 %v9681_v4, %v9680_v7 }
 0x300   :  { %v9683_v5 = vpop.f32.mrb[136].mxu0 }
 0x301   :  { %v9684_v23 = vpop.f32.mrb[137].mxu0 }
 0x302   :  { %v14825_v30 = vadd.f32 %v9684_v23, %v9683_v5  ;;  %v8741_v23 = vld [vmem:[%s16767_s4 + $0x90] sm:$0xff] }
 0x304   :  { %v9686_v38 = vpop.f32.mrb[138].mxu0 }
 0x305   :  { %v9687_v53 = vpop.f32.mrb[139].mxu0 }
 0x306   :  { %v14827_v45 = vadd.f32 %v9687_v53, %v9686_v38  ;;  %v8742_v53 = vld [vmem:[%s16767_s4 + $0x98] sm:$0xff] }
 0x307   :  { %v14840_v38 = vpack.c.bf16 %v8742_v53, %v8741_v23 }
 0x308   :  { %v9689_v19 = vpop.f32.mrb[140].mxu0 }
 0x309   :  { %v9690_v10 = vpop.f32.mrb[141].mxu0 }
 0x30a   :  { %v14829_v17 = vadd.f32 %v9690_v10, %v9689_v19 }
 0x30c   :  { %v9692_v51 = vpop.f32.mrb[142].mxu0 }
 0x30d   :  { %v9693_v41 = vpop.f32.mrb[143].mxu0 }
 0x30e   :  { %v14831_v33 = vadd.f32 %v9693_v41, %v9692_v51  ;;  %v8767_v41 = vld [vmem:[%s16767_s4 + $0xa0] sm:$0xff] }
 0x33d   :  { %v9399_v25 = vpop.f32.mrb[40].mxu1 }
 0x33e   :  { %v9400_v1 = vpop.f32.mrb[41].mxu1 }
 0x33f   :  { %v9401_v4 = vadd.f32 %v9400_v1, %v9399_v25  ;;  %v8768_v1 = vld [vmem:[%s16767_s4 + $0xa8] sm:$0xff] }
 0x341   :  { %v9402_v7 = vpop.f32.mrb[42].mxu1  ;;  %10915 = vmatprep.mubr.msk.f32.mxu1 %vm1020_vm4, %v9401_v4  ;;  %v14851_v4 = vpack.c.bf16 %v8768_v1, %v8767_v41 }
 0x342   :  { %v9403_v10 = vpop.f32.mrb[43].mxu1 }
 0x343   :  { %v9404_v5 = vadd.f32 %v9403_v10, %v9402_v7 }
 0x345   :  { %v9405_v19 = vpop.f32.mrb[44].mxu1  ;;  %10916 = vmatmul.mubr.msk.f32.vlgmr.msra.gmra.mrb[32].mxu1 %vm1020_vm4, %v9404_v5 }
 0x346   :  { %v9406_v51 = vpop.f32.mrb[45].mxu1  ;;  %12092 = vmatpush3.bf16.msra.mxu1 %v14790_v3 }
 0x347   :  { %v9407_v25 = vadd.f32 %v9406_v51, %v9405_v19  ;;  %12094 = vmatprep.subr.bf16.mxu1 %v14840_v38 }
 0x349   :  { %v9408_v23 = vpop.f32.mrb[46].mxu1  ;;  %10918 = vmatprep.mubr.msk.f32.mxu1 %vm1020_vm4, %v9407_v25 }
 0x34a   :  { %v9409_v53 = vpop.f32.mrb[47].mxu1  ;;  %12096 = vmatpush3.bf16.msra.mxu1 %v14840_v38 }
 0x34b   :  { %v9410_v7 = vadd.f32 %v9409_v53, %v9408_v23  ;;  %12130 = vmatprep.subr.bf16.mxu1 %v14851_v4 }
 0x34d   :  { %v9411_v10 = vpop.f32.mrb[48].mxu1  ;;  %10919 = vmatmul.mubr.msk.f32.gmra.mrb[34].mxu1 %vm1020_vm4, %v9410_v7  ;;  %v8769_v7 = vld [vmem:[%s16767_s4 + $0xb0] sm:$0xff] }
 0x34e   :  { %v9412_v5 = vpop.f32.mrb[49].mxu1 }
 0x34f   :  { %v9413_v26 = vadd.f32 %v9412_v5, %v9411_v10  ;;  %v8795_v10 = vld [vmem:[%s16767_s4 + $0xc0] sm:$0xff] }
 0x351   :  { %v9414_v3 = vpop.f32.mrb[50].mxu1  ;;  %10921 = vmatprep.mubr.msk.f32.mxu1 %vm1020_vm4, %v9413_v26  ;;  %v8770_v26 = vld [vmem:[%s16767_s4 + $0xb8] sm:$0xff] }
 0x352   :  { %v9415_v19 = vpop.f32.mrb[51].mxu1 }
 0x353   :  { %v9416_v41 = vadd.f32 %v9415_v19, %v9414_v3  ;;  %v14869_v3 = vpack.c.bf16 %v8770_v26, %v8769_v7  ;;  %v8866_v7 = vld [vmem:[%s16769_s6 + $0x10] sm:$0xff]  ;;  %v3150_v26 = vld [vmem:[%s16769_s6] sm:$0xff] }
 0x354   :  { %11062 = vmatprep.mubr.msk.f32.mxu0 %vm3152_vm5, %v8866_v7  ;;  %v8939_v7 = vld [vmem:[%s16769_s6 + $0x68] sm:$0xff] }
 0x355   :  { %v9417_v1 = vpop.f32.mrb[52].mxu1  ;;  %10922 = vmatmul.mubr.msk.f32.gmra.mrb[36].mxu1 %vm1020_vm4, %v9416_v41 }
 0x356   :  { %v9418_v51 = vpop.f32.mrb[53].mxu1 }
 0x357   :  { %v9419_v25 = vadd.f32 %v9418_v51, %v9417_v1 }
 0x359   :  { %v9420_v54 = vpop.f32.mrb[54].mxu1  ;;  %10924 = vmatprep.mubr.msk.f32.mxu1 %vm1020_vm4, %v9419_v25 }
 0x35a   :  { %v9421_v23 = vpop.f32.mrb[55].mxu1 }
 0x35b   :  { %v9422_v53 = vadd.f32 %v9421_v23, %v9420_v54  ;;  %v8796_v54 = vld [vmem:[%s16767_s4 + $0xc8] sm:$0xff] }
 0x35d   :  { %10925 = vmatmul.mubr.msk.f32.gmra.mrb[38].mxu1 %vm1020_vm4, %v9422_v53 }
 0x35e   :  { %10935 = vmatprep.mubr.msk.f32.mxu1 %vm1020_vm4, %v14548_v44  ;;  %v14883_v44 = vpack.c.bf16 %v8796_v54, %v8795_v10  ;;  %v8863_v10 = vld [vmem:[%s16768_s5] ss:$0 sm:$0xff] }
 0x361   :  { %10936 = vmatmul.mubr.msk.f32.vlgmr.msra.gmra.mrb[32].mxu1 %vm1020_vm4, %v14565_v39  ;;  %v8797_v39 = vld [vmem:[%s16767_s4 + $0xd0] sm:$0xff] }
 0x362   :  { %10938 = vmatprep.mubr.msk.f32.mxu1 %vm1020_vm4, %v14584_v14  ;;  %12132 = vmatpush3.bf16.msra.mxu1 %v14851_v4  ;;  %v8798_v14 = vld [vmem:[%s16767_s4 + $0xd8] sm:$0xff] }
 0x363   :  { %12134 = vmatprep.subr.bf16.mxu1 %v14869_v3 }
 0x365   :  { %10939 = vmatmul.mubr.msk.f32.gmra.mrb[34].mxu1 %vm1020_vm4, %v14595_v31  ;;  %v14905_v31 = vpack.c.bf16 %v8798_v14, %v8797_v39 }
 0x366   :  { %10941 = vmatprep.mubr.msk.f32.mxu1 %vm1020_vm4, %v14604_v20  ;;  %12136 = vmatpush3.bf16.msra.mxu1 %v14869_v3  ;;  %v8823_v20 = vld [vmem:[%s16767_s4 + $0xe0] sm:$0xff] }
 0x367   :  { %12170 = vmatprep.subr.bf16.mxu1 %v14883_v44 }
 0x369   :  { %10942 = vmatmul.mubr.msk.f32.gmra.mrb[36].mxu1 %vm1020_vm4, %v14766_v37  ;;  %v8824_v37 = vld [vmem:[%s16767_s4 + $0xe8] sm:$0xff] }
 0x36a   :  { %10944 = vmatprep.mubr.msk.f32.mxu1 %vm1020_vm4, %v14772_v52  ;;  %v14919_v52 = vpack.c.bf16 %v8824_v37, %v8823_v20 }
 0x36d   :  { %10945 = vmatmul.mubr.msk.f32.gmra.mrb[38].mxu1 %vm1020_vm4, %v14774_v12  ;;  %v8825_v12 = vld [vmem:[%s16767_s4 + $0xf0] sm:$0xff] }
 0x36e   :  { %10955 = vmatprep.mubr.msk.f32.mxu1 %vm1020_vm4, %v14776_v47  ;;  %v8826_v47 = vld [vmem:[%s16767_s4 + $0xf8] sm:$0xff] }
 0x371   :  { %10956 = vmatmul.mubr.msk.f32.vlgmr.msra.gmra.mrb[32].mxu1 %vm1020_vm4, %v14778_v9  ;;  %v14941_v9 = vpack.c.bf16 %v8826_v47, %v8825_v12 }
 0x372   :  { %10958 = vmatprep.mubr.msk.f32.mxu1 %vm1020_vm4, %v14780_v62  ;;  %12172 = vmatpush3.bf16.msra.mxu1 %v14883_v44  ;;  %v8847_v62 = vld [vmem:[%s16766_s3 + $0x460] sm:$0xff] }
 0x373   :  { %12174 = vmatprep.subr.bf16.mxu1 %v14905_v31 }
 0x375   :  { %10959 = vmatmul.mubr.msk.f32.gmra.mrb[34].mxu1 %vm1020_vm4, %v14788_v42  ;;  %v8850_v42 = vld [vmem:[%s16766_s3 + $0x478] sm:$0xff] }
 0x376   :  { %10961 = vmatprep.mubr.msk.f32.mxu1 %vm1020_vm4, %v14793_v28  ;;  %12176 = vmatpush3.bf16.msra.mxu1 %v14905_v31  ;;  %v8849_v28 = vld [vmem:[%s16766_s3 + $0x470] sm:$0xff] }
 0x377   :  { %12210 = vmatprep.subr.bf16.mxu1 %v14919_v52 }
 0x379   :  { %10962 = vmatmul.mubr.msk.f32.gmra.mrb[36].mxu1 %vm1020_vm4, %v14795_v63  ;;  %v8853_v63 = vld [vmem:[%s16767_s4 + $0x110] sm:$0xff] }
 0x37a   :  { %10964 = vmatprep.mubr.msk.f32.mxu1 %vm1020_vm4, %v14797_v27  ;;  %v8854_v27 = vld [vmem:[%s16767_s4 + $0x118] sm:$0xff] }
 0x37d   :  { %10965 = vmatmul.mubr.msk.f32.gmra.mrb[38].mxu1 %vm1020_vm4, %v14799_v34  ;;  %v15056_v34 = vpack.c.bf16 %v8854_v27, %v8853_v63 }
 0x37e   :  { %10975 = vmatprep.mubr.msk.f32.mxu1 %vm1020_vm4, %v14801_v21 }
 0x381   :  { %10976 = vmatmul.mubr.msk.f32.vlgmr.msra.gmra.mrb[32].mxu1 %vm1020_vm4, %v14803_v18 }
 0x382   :  { %12212 = vmatpush3.bf16.msra.mxu1 %v14919_v52  ;;  %10978 = vmatprep.mubr.msk.f32.mxu1 %vm1020_vm4, %v14805_v6 }
 0x383   :  { %12214 = vmatprep.subr.bf16.mxu1 %v14941_v9 }
 0x385   :  { %10979 = vmatmul.mubr.msk.f32.gmra.mrb[34].mxu1 %vm1020_vm4, %v14807_v2 }
 0x386   :  { %12216 = vmatpush3.bf16.msra.mxu1 %v14941_v9  ;;  %10981 = vmatprep.mubr.msk.f32.mxu1 %vm1020_vm4, %v14809_v49 }
 0x387   :  { %12218 = vmatprep.subr.bf16.mxu1 %v14009_v8  ;;  %v8839_v8 = vld [vmem:[%s16766_s3 + $0x420] sm:$0xff] }
 0x389   :  { %10982 = vmatmul.mubr.msk.f32.gmra.mrb[36].mxu1 %vm1020_vm4, %v14811_v35 }
 0x38a   :  { %10984 = vmatprep.mubr.msk.f32.mxu1 %vm1020_vm4, %v14813_v58 }
 0x38d   :  { %10985 = vmatmul.mubr.msk.f32.gmra.mrb[38].mxu1 %vm1020_vm4, %v14815_v59 }
 0x38e   :  { %10995 = vmatprep.mubr.msk.f32.mxu1 %vm1020_vm4, %v14817_v11 }
 0x391   :  { %10996 = vmatmul.mubr.msk.f32.vlgmr.msra.gmra.mrb[32].mxu1 %vm1020_vm4, %v14819_v46 }
 0x392   :  { %12220 = vmatpush3.bf16.msra.mxu1 %v13977_v15  ;;  %10998 = vmatprep.mubr.msk.f32.mxu1 %vm1020_vm4, %v14821_v60  ;;  %v8836_v15 = vld [vmem:[%s16766_s3 + $0x408] sm:$0xff] }
 0x393   :  { %12222 = vmatprep.subr.bf16.mxu1 %v14017_v16  ;;  %v8842_v16 = vld [vmem:[%s16766_s3 + $0x438] sm:$0xff] }
 0x395   :  { %10999 = vmatmul.mubr.msk.f32.gmra.mrb[34].mxu1 %vm1020_vm4, %v14823_v55 }
 0x396   :  { %12224 = vmatpush3.bf16.msra.mxu1 %v13981_v22  ;;  %11001 = vmatprep.mubr.msk.f32.mxu1 %vm1020_vm4, %v14825_v30  ;;  %v8851_v22 = vld [vmem:[%s16767_s4 + $0x100] sm:$0xff] }
 0x397   :  { %12226 = vmatprep.subr.bf16.mxu1 %v14025_v24  ;;  %v8841_v24 = vld [vmem:[%s16766_s3 + $0x430] sm:$0xff] }
 0x399   :  { %11002 = vmatmul.mubr.msk.f32.gmra.mrb[36].mxu1 %vm1020_vm4, %v14827_v45 }
 0x39a   :  { %12228 = vmatpush3.bf16.msra.mxu1 %v13985_v29  ;;  %11004 = vmatprep.mubr.msk.f32.mxu1 %vm1020_vm4, %v14829_v17  ;;  %v8852_v29 = vld [vmem:[%s16767_s4 + $0x108] sm:$0xff] }
 0x39b   :  { %12230 = vmatprep.subr.bf16.mxu1 %v14033_v32  ;;  %v8844_v32 = vld [vmem:[%s16766_s3 + $0x448] sm:$0xff] }
 0x39d   :  { %11005 = vmatmul.mubr.msk.f32.gmra.mrb[38].mxu1 %vm1020_vm4, %v14831_v33 }
 0x39e   :  { %12232 = vmatpush3.bf16.msra.mxu1 %v13989_v36  ;;  %2944 = vmatprep.mubr.f32.mxu1 %v8836_v15  ;;  %v15000_v36 = vpack.c.bf16 %v8852_v29, %v8851_v22 }
 0x39f   :  { %12234 = vmatprep.subr.bf16.mxu1 %v14041_v40  ;;  %v8843_v40 = vld [vmem:[%s16766_s3 + $0x440] sm:$0xff] }
 0x3a2   :  { %12236 = vmatpush3.bf16.msra.mxu1 %v13993_v43  ;;  %v8835_v43 = vld [vmem:[%s16766_s3 + $0x400] sm:$0xff] }
 0x3a3   :  { %12238 = vmatprep.subr.bf16.mxu1 %v14049_v48  ;;  %v8846_v48 = vld [vmem:[%s16766_s3 + $0x458] sm:$0xff] }
 0x3a6   :  { %12240 = vmatpush3.bf16.msra.mxu1 %v13997_v50  ;;  %v8838_v50 = vld [vmem:[%s16766_s3 + $0x418] sm:$0xff] }
 0x3a7   :  { %12242 = vmatprep.subr.bf16.mxu1 %v14057_v56  ;;  %v8845_v56 = vld [vmem:[%s16766_s3 + $0x450] sm:$0xff] }
 0x3aa   :  { %12244 = vmatpush3.bf16.msra.mxu1 %v14001_v57  ;;  %v8837_v57 = vld [vmem:[%s16766_s3 + $0x410] sm:$0xff] }
 0x3ab   :  { %12246 = vmatprep.subr.bf16.mxu1 %v14064_v61  ;;  %v8848_v61 = vld [vmem:[%s16766_s3 + $0x468] sm:$0xff] }
 0x3ae   :  { %12248 = vmatpush3.bf16.msra.mxu1 %v14005_v0  ;;  %v8840_v0 = vld [vmem:[%s16766_s3 + $0x428] sm:$0xff] }
 0x3af   :  { %12250 = vmatprep.subr.bf16.mxu1 %v15000_v36 }
 0x3b1   :  { %2945 = vmatmul.mubr.f32.vlgmr.msra.gmra.mrb[56].mxu1 %v8835_v43 }
 0x3b2   :  { %2949 = vmatprep.mubr.f32.mxu1 %v8838_v50  ;;  %12252 = vmatpush3.bf16.msra.mxu1 %v15000_v36 }
 0x3b3   :  { %12254 = vmatprep.subr.bf16.mxu1 %v15056_v34 }
 0x3b5   :  { %2950 = vmatmul.mubr.f32.gmra.mrb[58].mxu1 %v8837_v57 }
 0x3b6   :  { %2954 = vmatprep.mubr.f32.mxu1 %v8840_v0  ;;  %12256 = vmatpush3.bf16.msra.mxu1 %v15056_v34 }
 0x3b9   :  { %2955 = vmatmul.mubr.f32.gmra.mrb[60].mxu1 %v8839_v8 }
 0x3ba   :  { %2959 = vmatprep.mubr.f32.mxu1 %v8842_v16 }
 0x3bd   :  { %2960 = vmatmul.mubr.f32.gmra.mrb[62].mxu1 %v8841_v24 }
 0x3be   :  { %2964 = vmatprep.mubr.f32.mxu1 %v8844_v32 }
 0x3c1   :  { %2965 = vmatmul.mubr.f32.gmra.mrb[64].mxu1 %v8843_v40 }
 0x3c2   :  { %2969 = vmatprep.mubr.f32.mxu1 %v8846_v48 }
 0x3c5   :  { %2970 = vmatmul.mubr.f32.gmra.mrb[66].mxu1 %v8845_v56 }
 0x3c6   :  { %2974 = vmatprep.mubr.f32.mxu1 %v8848_v61 }
 0x3c9   :  { %2975 = vmatmul.mubr.f32.gmra.mrb[68].mxu1 %v8847_v62 }
 0x3ca   :  { %2979 = vmatprep.mubr.f32.mxu1 %v8850_v42 }
 0x3cd   :  { %2980 = vmatmul.mubr.f32.gmra.mrb[70].mxu1 %v8849_v28 }
 0x484   :  { %v9739_v21 = vpop.f32.mrb[56].mxu1 }
 0x485   :  { %v9740_v18 = vpop.f32.mrb[57].mxu1 }
 0x486   :  { %v9741_v6 = vadd.f32 %v9740_v18, %v9739_v21  ;;  %v8867_v18 = vld [vmem:[%s16769_s6 + $0x18] sm:$0xff] }
 0x488   :  { %v9742_v2 = vpop.f32.mrb[58].mxu1  ;;  %11015 = vmatprep.mubr.msk.f32.mxu1 %vm1020_vm4, %v9741_v6  ;;  %v3151_v6 = vld [vmem:[%s16769_s6 + $0x8] sm:$0xff] }
 0x489   :  { %v9743_v49 = vpop.f32.mrb[59].mxu1 }
 0x48a   :  { %v9744_v35 = vadd.f32 %v9743_v49, %v9742_v2  ;;  %v8882_v2 = vld [vmem:[%s16769_s6 + $0x20] sm:$0xff]  ;;  %v8883_v49 = vld [vmem:[%s16769_s6 + $0x28] sm:$0xff] }
 0x48c   :  { %11016 = vmatmul.mubr.msk.f32.vlgmr.msra.gmra.mrb[32].mxu1 %vm1020_vm4, %v9744_v35  ;;  %v9745_v58 = vpop.f32.mrb[60].mxu1  ;;  %v8870_v35 = vld [vmem:[%s16770_s7 + $0x40] sm:$0xff] }
 0x48d   :  { %v9746_v59 = vpop.f32.mrb[61].mxu1 }
 0x48e   :  { %v9747_v11 = vadd.f32 %v9746_v59, %v9745_v58  ;;  %v8871_v58 = vld [vmem:[%s16770_s7 + $0x48] sm:$0xff]  ;;  %v8872_v59 = vld [vmem:[%s16770_s7 + $0x50] sm:$0xff] }
 0x490   :  { %v9748_v46 = vpop.f32.mrb[62].mxu1  ;;  %11018 = vmatprep.mubr.msk.f32.mxu1 %vm1020_vm4, %v9747_v11  ;;  %v8896_v11 = vld [vmem:[%s16769_s6 + $0x30] sm:$0xff] }
 0x491   :  { %v9749_v60 = vpop.f32.mrb[63].mxu1 }
 0x492   :  { %v9750_v55 = vadd.f32 %v9749_v60, %v9748_v46  ;;  %v15139_v46 = vpack.c.bf16 %v8871_v58, %v8870_v35  ;;  %v8873_v60 = vld [vmem:[%s16770_s7 + $0x58] sm:$0xff]  ;;  %v13383_v35 = vld [vmem:[%s16766_s3 + $0x40] sm:$0xff] }
 0x493   :  { %v13384_v58 = vld [vmem:[%s16766_s3 + $0x58] sm:$0xff] }
 0x494   :  { %11019 = vmatmul.mubr.msk.f32.gmra.mrb[34].mxu1 %vm1020_vm4, %v9750_v55  ;;  %v9751_v30 = vpop.f32.mrb[64].mxu1  ;;  %v15144_v55 = vpack.c.bf16 %v8873_v60, %v8872_v59  ;;  %v13385_v59 = vld [vmem:[%s16766_s3 + $0x50] sm:$0xff]  ;;  %v13387_v60 = vld [vmem:[%s16766_s3 + $0x60] sm:$0xff] }
 0x495   :  { %v9752_v45 = vpop.f32.mrb[65].mxu1 }
 0x496   :  { %v9753_v17 = vadd.f32 %v9752_v45, %v9751_v30  ;;  %v8874_v30 = vld [vmem:[%s16770_s7 + $0x60] sm:$0xff]  ;;  %v8875_v45 = vld [vmem:[%s16770_s7 + $0x68] sm:$0xff] }
 0x498   :  { %v9754_v33 = vpop.f32.mrb[66].mxu1  ;;  %11021 = vmatprep.mubr.msk.f32.mxu1 %vm1020_vm4, %v9753_v17  ;;  %v15159_v17 = vpack.c.bf16 %v8875_v45, %v8874_v30  ;;  %v13388_v30 = vld [vmem:[%s16766_s3 + $0x78] sm:$0xff]  ;;  %v13389_v45 = vld [vmem:[%s16766_s3 + $0x70] sm:$0xff] }
 0x499   :  { %v9755_v5 = vpop.f32.mrb[67].mxu1 }
 0x49a   :  { %v9756_v19 = vadd.f32 %v9755_v5, %v9754_v33  ;;  %v8876_v33 = vld [vmem:[%s16770_s7 + $0x70] sm:$0xff]  ;;  %v8877_v5 = vld [vmem:[%s16770_s7 + $0x78] sm:$0xff] }
 0x49c   :  { %11022 = vmatmul.mubr.msk.f32.gmra.mrb[36].mxu1 %vm1020_vm4, %v9756_v19  ;;  %v9757_v41 = vpop.f32.mrb[68].mxu1  ;;  %v15171_v19 = vpack.c.bf16 %v8877_v5, %v8876_v33  ;;  %v3236_v33 = vld [vmem:[%s16770_s7 + $0x10] sm:$0xff]  ;;  %v3237_v5 = vld [vmem:[%s16770_s7 + $0x18] sm:$0xff] }
 0x49d   :  { %v9758_v1 = vpop.f32.mrb[69].mxu1 }
 0x49e   :  { %v9759_v51 = vadd.f32 %v9758_v1, %v9757_v41  ;;  %v8897_v41 = vld [vmem:[%s16769_s6 + $0x38] sm:$0xff]  ;;  %v8910_v1 = vld [vmem:[%s16769_s6 + $0x40] sm:$0xff] }
 0x4a0   :  { %v9760_v25 = vpop.f32.mrb[70].mxu1  ;;  %11024 = vmatprep.mubr.msk.f32.mxu1 %vm1020_vm4, %v9759_v51  ;;  %v8911_v51 = vld [vmem:[%s16769_s6 + $0x48] sm:$0xff] }
 0x4a1   :  { %v9761_v23 = vpop.f32.mrb[71].mxu1 }
 0x4a2   :  { %v9762_v53 = vadd.f32 %v9761_v23, %v9760_v25  ;;  %v8924_v25 = vld [vmem:[%s16769_s6 + $0x50] sm:$0xff]  ;;  %v8925_v23 = vld [vmem:[%s16769_s6 + $0x58] sm:$0xff] }
 0x4a4   :  { %11025 = vmatmul.mubr.msk.f32.gmra.mrb[38].mxu1 %vm1020_vm4, %v9762_v53  ;;  %v8938_v53 = vld [vmem:[%s16769_s6 + $0x60] sm:$0xff] }
 0x4a5   :  { %11043 = vmatprep.mubr.msk.f32.mxu1 %vm3152_vm5, %v3150_v26  ;;  %v8952_v26 = vld [vmem:[%s16769_s6 + $0x70] sm:$0xff] }
 0x55f   :  { %v11017_v54 = vpop.f32.mrb[32].mxu1 }
 0x560   :  { %v3135_v39 = vadd.f32 %v11017_v54, %v8863_v10  ;;  %v3080_v14 = vpop.f32.mrb[33].mxu1  ;;  %v3235_v54 = vld [vmem:[%s16770_s7 + $0x8] sm:$0xff] }
 0x561   :  { %v3134_v20 = vadd.f32 %v8863_v10, %v3080_v14  ;;  %v8953_v14 = vld [vmem:[%s16769_s6 + $0x78] sm:$0xff] }
 0x562   :  { %v3143_v37 = vmax.f32 %v3135_v39, 0.0 }
 0x563   :  { %v3142_v12 = vmax.f32 %v3134_v20, 0.0  ;;  %v8966_v20 = vld [vmem:[%s16769_s6 + $0x80] sm:$0xff] }
 0x565   :  { %v15079_v47 = vpack.c.bf16 %v3143_v37, %v3142_v12  ;;  %v8967_v37 = vld [vmem:[%s16769_s6 + $0x88] sm:$0xff] }
 0x566   :  { %v16888_v12 = vld [vmem:[#allocation9_spill] sm:$0xff] }
 0x567   :  { %v11020_v15 = vpop.f32.mrb[34].mxu1  ;;  %12258 = vmatprep.subr.bf16.mxu1 %v15079_v47  ;;  %12274 = vmatprep.subr.bf16.mxu0 %v15079_v47 }
 0x568   :  { %v3137_v22 = vadd.f32 %v11020_v15, %v8863_v10  ;;  %v3090_v29 = vpop.f32.mrb[35].mxu1  ;;  %12260 = vmatpush3.bf16.msra.mxu1 %v15079_v47  ;;  %12276 = vmatpush3.bf16.msra.mxu0 %v15079_v47  ;;  %v16889_v15 = vld [vmem:[#allocation19_spill] sm:$0xff] }
 0x569   :  { %v3136_v43 = vadd.f32 %v8863_v10, %v3090_v29  ;;  %v16891_v29 = vld [vmem:[#allocation21_spill] sm:$0xff] }
 0x56a   :  { %v3145_v50 = vmax.f32 %v3137_v22, 0.0  ;;  %v16890_v22 = vld [vmem:[#allocation10_spill] sm:$0xff] }
 0x56b   :  { %v3144_v57 = vmax.f32 %v3136_v43, 0.0  ;;  %v16892_v43 = vld [vmem:[#allocation11_spill] sm:$0xff] }
 0x56d   :  { %v15085_v0 = vpack.c.bf16 %v3145_v50, %v3144_v57  ;;  %v16893_v50 = vld [vmem:[#allocation22_spill] sm:$0xff]  ;;  %v16894_v57 = vld [vmem:[#allocation13_spill] sm:$0xff] }
 0x56f   :  { %v11023_v8 = vpop.f32.mrb[36].mxu1  ;;  %12262 = vmatprep.subr.bf16.mxu1 %v15085_v0  ;;  %12278 = vmatprep.subr.bf16.mxu0 %v15085_v0 }
 0x570   :  { %v3139_v16 = vadd.f32 %v11023_v8, %v8863_v10  ;;  %v3100_v24 = vpop.f32.mrb[37].mxu1  ;;  %12264 = vmatpush3.bf16.msra.mxu1 %v15085_v0  ;;  %12280 = vmatpush3.bf16.msra.mxu0 %v15085_v0  ;;  %v16896_v8 = vld [vmem:[#allocation14_spill] sm:$0xff] }
 0x571   :  { %v3138_v32 = vadd.f32 %v8863_v10, %v3100_v24  ;;  %v16898_v24 = vld [vmem:[#allocation16_spill] sm:$0xff] }
 0x572   :  { %v3147_v40 = vmax.f32 %v3139_v16, 0.0  ;;  %v16897_v16 = vld [vmem:[#allocation24_spill] sm:$0xff] }
 0x573   :  { %v3146_v48 = vmax.f32 %v3138_v32, 0.0  ;;  %v16899_v32 = vld [vmem:[#allocation25_spill] sm:$0xff] }
 0x575   :  { %v15091_v56 = vpack.c.bf16 %v3147_v40, %v3146_v48  ;;  %v16900_v40 = vld [vmem:[#allocation17_spill] sm:$0xff]  ;;  %v16901_v48 = vld [vmem:[#allocation26_spill] sm:$0xff] }
 0x577   :  { %v11026_v61 = vpop.f32.mrb[38].mxu1  ;;  %12266 = vmatprep.subr.bf16.mxu1 %v15091_v56  ;;  %12282 = vmatprep.subr.bf16.mxu0 %v15091_v56 }
 0x578   :  { %v3141_v62 = vadd.f32 %v11026_v61, %v8863_v10  ;;  %v3110_v42 = vpop.f32.mrb[39].mxu1  ;;  %12268 = vmatpush3.bf16.msra.mxu1 %v15091_v56  ;;  %12284 = vmatpush3.bf16.msra.mxu0 %v15091_v56  ;;  %v16903_v61 = vld [vmem:[#allocation12_spill] sm:$0xff] }
 0x579   :  { %v3140_v28 = vadd.f32 %v8863_v10, %v3110_v42  ;;  %v3234_v10 = vld [vmem:[%s16770_s7] sm:$0xff]  ;;  %v13376_v42 = vld [vmem:[%s16766_s3 + $0x18] sm:$0xff] }
 0x57a   :  { %v3149_v63 = vmax.f32 %v3141_v62, 0.0  ;;  %v15244_v39 = vpack.c.bf16 %v3235_v54, %v3234_v10  ;;  %v13375_v62 = vld [vmem:[%s16766_s3] sm:$0xff]  ;;  %v3240_v10 = vld [vmem:[%s16770_s7 + $0x30] sm:$0xff]  ;;  %v3241_v54 = vld [vmem:[%s16770_s7 + $0x38] sm:$0xff] }
 0x57b   :  { %v3148_v27 = vmax.f32 %v3140_v28, 0.0  ;;  %v16904_v28 = vld [vmem:[#allocation15_spill] sm:$0xff] }
 0x57d   :  { %v15097_v21 = vpack.c.bf16 %v3149_v63, %v3148_v27  ;;  %v13377_v63 = vld [vmem:[%s16766_s3 + $0x10] sm:$0xff]  ;;  %v13378_v27 = vld [vmem:[%s16766_s3 + $0x28] sm:$0xff] }
 0x57f   :  { %12270 = vmatprep.subr.bf16.mxu1 %v15097_v21  ;;  %12286 = vmatprep.subr.bf16.mxu0 %v15097_v21 }
 0x580   :  { %12272 = vmatpush3.bf16.msra.mxu1 %v15097_v21  ;;  %12288 = vmatpush3.bf16.msra.mxu0 %v15097_v21 }
 0x581   :  { %12322 = vmatprep.subr.bf16.mxu1 %v15079_v47  ;;  %12290 = vmatprep.subr.bf16.mxu0 %v15139_v46 }
 0x583   :  { %11063 = vmatmul.mubr.msk.f32.vlgmr.msra.gmra.mrb[144].mxu0 %vm3152_vm5, %v8867_v18  ;;  %11044 = vmatmul.mubr.msk.f32.vlgmr.msra.gmra.mrb[72].mxu1 %vm3152_vm5, %v3151_v6  ;;  %v13379_v18 = vld [vmem:[%s16766_s3 + $0x20] sm:$0xff]  ;;  %v13380_v6 = vld [vmem:[%s16766_s3 + $0x38] sm:$0xff] }
 0x584   :  { %12324 = vmatpush3.bf16.msra.mxu1 %v15079_v47  ;;  %11119 = vmatprep.mubr.msk.f32.mxu1 %vm3152_vm5, %v8882_v2  ;;  %v13381_v2 = vld [vmem:[%s16766_s3 + $0x30] sm:$0xff] }
 0x585   :  { %12326 = vmatprep.subr.bf16.mxu1 %v15085_v0  ;;  %12292 = vmatpush3.bf16.msra.mxu0 %v15139_v46 }
 0x586   :  { %12294 = vmatprep.subr.bf16.mxu0 %v15144_v55 }
 0x588   :  { %12328 = vmatpush3.bf16.msra.mxu1 %v15085_v0 }
 0x589   :  { %12330 = vmatprep.subr.bf16.mxu1 %v15091_v56  ;;  %12296 = vmatpush3.bf16.msra.mxu0 %v15144_v55 }
 0x58a   :  { %12298 = vmatprep.subr.bf16.mxu0 %v15159_v17 }
 0x58c   :  { %12332 = vmatpush3.bf16.msra.mxu1 %v15091_v56 }
 0x58d   :  { %12334 = vmatprep.subr.bf16.mxu1 %v15097_v21  ;;  %12300 = vmatpush3.bf16.msra.mxu0 %v15159_v17 }
 0x58e   :  { %12302 = vmatprep.subr.bf16.mxu0 %v15171_v19 }
 0x590   :  { %12336 = vmatpush3.bf16.msra.mxu1 %v15097_v21 }
 0x591   :  { %12354 = vmatprep.subr.bf16.mxu1 %v15079_v47  ;;  %12304 = vmatpush3.bf16.msra.mxu0 %v15171_v19 }
 0x592   :  { %12306 = vmatprep.subr.bf16.mxu0 %v15244_v39 }
 0x593   :  { %11120 = vmatmul.mubr.msk.f32.vlgmr.msra.gmra.mrb[74].mxu1 %vm3152_vm5, %v8883_v49  ;;  %v13382_v49 = vld [vmem:[%s16766_s3 + $0x48] sm:$0xff] }
 0x594   :  { %12356 = vmatpush3.bf16.msra.mxu1 %v15079_v47  ;;  %11157 = vmatprep.mubr.msk.f32.mxu1 %vm3152_vm5, %v8896_v11  ;;  %v13386_v11 = vld [vmem:[%s16766_s3 + $0x68] sm:$0xff] }
 0x595   :  { %12358 = vmatprep.subr.bf16.mxu1 %v15085_v0 }
 0x598   :  { %12360 = vmatpush3.bf16.msra.mxu1 %v15085_v0 }
 0x599   :  { %12362 = vmatprep.subr.bf16.mxu1 %v15091_v56 }
 0x59c   :  { %12364 = vmatpush3.bf16.msra.mxu1 %v15091_v56 }
 0x59d   :  { %12366 = vmatprep.subr.bf16.mxu1 %v15097_v21 }
 0x5a0   :  { %12368 = vmatpush3.bf16.msra.mxu1 %v15097_v21 }
 0x5a1   :  { %12386 = vmatprep.subr.bf16.mxu1 %v15079_v47 }
 0x5a3   :  { %11158 = vmatmul.mubr.msk.f32.vlgmr.msra.gmra.mrb[76].mxu1 %vm3152_vm5, %v8897_v41 }
 0x5a4   :  { %12388 = vmatpush3.bf16.msra.mxu1 %v15079_v47  ;;  %11195 = vmatprep.mubr.msk.f32.mxu1 %vm3152_vm5, %v8910_v1 }
 0x5a5   :  { %12390 = vmatprep.subr.bf16.mxu1 %v15085_v0 }
 0x5a8   :  { %12392 = vmatpush3.bf16.msra.mxu1 %v15085_v0 }
 0x5a9   :  { %12394 = vmatprep.subr.bf16.mxu1 %v15091_v56 }
 0x5ac   :  { %12396 = vmatpush3.bf16.msra.mxu1 %v15091_v56 }
 0x5ad   :  { %12398 = vmatprep.subr.bf16.mxu1 %v15097_v21 }
 0x5b0   :  { %12400 = vmatpush3.bf16.msra.mxu1 %v15097_v21 }
 0x5b1   :  { %12418 = vmatprep.subr.bf16.mxu1 %v15079_v47 }
 0x5b3   :  { %11196 = vmatmul.mubr.msk.f32.vlgmr.msra.gmra.mrb[78].mxu1 %vm3152_vm5, %v8911_v51 }
 0x5b4   :  { %12420 = vmatpush3.bf16.msra.mxu1 %v15079_v47  ;;  %11233 = vmatprep.mubr.msk.f32.mxu1 %vm3152_vm5, %v8924_v25  ;;  %v15347_v25 = vpack.c.bf16 %v3237_v5, %v3236_v33 }
 0x5b5   :  { %12422 = vmatprep.subr.bf16.mxu1 %v15085_v0 }
 0x5b8   :  { %12424 = vmatpush3.bf16.msra.mxu1 %v15085_v0 }
 0x5b9   :  { %12426 = vmatprep.subr.bf16.mxu1 %v15091_v56 }
 0x5bc   :  { %12428 = vmatpush3.bf16.msra.mxu1 %v15091_v56 }
 0x5bd   :  { %12430 = vmatprep.subr.bf16.mxu1 %v15097_v21 }
 0x5c0   :  { %12432 = vmatpush3.bf16.msra.mxu1 %v15097_v21 }
 0x5c1   :  { %12450 = vmatprep.subr.bf16.mxu1 %v15079_v47 }
 0x5c3   :  { %11234 = vmatmul.mubr.msk.f32.vlgmr.msra.gmra.mrb[80].mxu1 %vm3152_vm5, %v8925_v23 }
 0x5c4   :  { %12452 = vmatpush3.bf16.msra.mxu1 %v15079_v47  ;;  %11271 = vmatprep.mubr.msk.f32.mxu1 %vm3152_vm5, %v8938_v53  ;;  %v3238_v53 = vld [vmem:[%s16770_s7 + $0x20] sm:$0xff] }
 0x5c5   :  { %12454 = vmatprep.subr.bf16.mxu1 %v15085_v0 }
 0x5c8   :  { %12456 = vmatpush3.bf16.msra.mxu1 %v15085_v0 }
 0x5c9   :  { %12458 = vmatprep.subr.bf16.mxu1 %v15091_v56 }
 0x5cc   :  { %12460 = vmatpush3.bf16.msra.mxu1 %v15091_v56 }
 0x5cd   :  { %12462 = vmatprep.subr.bf16.mxu1 %v15097_v21 }
 0x5d0   :  { %12464 = vmatpush3.bf16.msra.mxu1 %v15097_v21 }
 0x5d1   :  { %12482 = vmatprep.subr.bf16.mxu1 %v15079_v47 }
 0x5d3   :  { %11272 = vmatmul.mubr.msk.f32.vlgmr.msra.gmra.mrb[82].mxu1 %vm3152_vm5, %v8939_v7  ;;  %v3239_v7 = vld [vmem:[%s16770_s7 + $0x28] sm:$0xff] }
 0x5d4   :  { %12484 = vmatpush3.bf16.msra.mxu1 %v15079_v47  ;;  %11309 = vmatprep.mubr.msk.f32.mxu1 %vm3152_vm5, %v8952_v26  ;;  %v15360_v26 = vpack.c.bf16 %v3239_v7, %v3238_v53  ;;  %v8907_v53 = vld [vmem:[%s16770_s7 + $0xf8] sm:$0xff] }
 0x5d5   :  { %12486 = vmatprep.subr.bf16.mxu1 %v15085_v0 }
 0x5d8   :  { %12488 = vmatpush3.bf16.msra.mxu1 %v15085_v0 }
 0x5d9   :  { %12490 = vmatprep.subr.bf16.mxu1 %v15091_v56 }
 0x5dc   :  { %12492 = vmatpush3.bf16.msra.mxu1 %v15091_v56 }
 0x5dd   :  { %12494 = vmatprep.subr.bf16.mxu1 %v15097_v21 }
 0x5e0   :  { %12496 = vmatpush3.bf16.msra.mxu1 %v15097_v21 }
 0x5e1   :  { %12514 = vmatprep.subr.bf16.mxu1 %v15079_v47 }
 0x5e3   :  { %11310 = vmatmul.mubr.msk.f32.vlgmr.msra.gmra.mrb[84].mxu1 %vm3152_vm5, %v8953_v14  ;;  %v15370_v14 = vpack.c.bf16 %v3241_v54, %v3240_v10  ;;  %v8914_v10 = vld [vmem:[%s16770_s7 + $0x100] sm:$0xff]  ;;  %v8915_v54 = vld [vmem:[%s16770_s7 + $0x108] sm:$0xff] }
 0x5e4   :  { %12516 = vmatpush3.bf16.msra.mxu1 %v15079_v47  ;;  %11347 = vmatprep.mubr.msk.f32.mxu1 %vm3152_vm5, %v8966_v20  ;;  %v13374_v47 = vld [vmem:[%s16766_s3 + $0x8] sm:$0xff]  ;;  %v8886_v20 = vld [vmem:[%s16770_s7 + $0x80] sm:$0xff] }
 0x5e5   :  { %12518 = vmatprep.subr.bf16.mxu1 %v15085_v0 }
 0x5e8   :  { %12520 = vmatpush3.bf16.msra.mxu1 %v15085_v0  ;;  %v16895_v0 = vld [vmem:[#allocation23_spill] sm:$0xff] }
 0x5e9   :  { %12522 = vmatprep.subr.bf16.mxu1 %v15091_v56 }
 0x5ec   :  { %12524 = vmatpush3.bf16.msra.mxu1 %v15091_v56  ;;  %v16902_v56 = vld [vmem:[#allocation18_spill] sm:$0xff] }
 0x5ed   :  { %12526 = vmatprep.subr.bf16.mxu1 %v15097_v21 }
 0x5f0   :  { %12528 = vmatpush3.bf16.msra.mxu1 %v15097_v21  ;;  %v16905_v21 = vld [vmem:[#allocation20_spill] sm:$0xff] }
 0x5f1   :  { %12546 = vmatprep.subr.bf16.mxu1 %v14444_v13 }
 0x5f3   :  { %11348 = vmatmul.mubr.msk.f32.vlgmr.msra.gmra.mrb[86].mxu1 %vm3152_vm5, %v8967_v37  ;;  %v8887_v37 = vld [vmem:[%s16770_s7 + $0x88] sm:$0xff] }
 0x5f4   :  { %12548 = vmatpush3.bf16.msra.mxu1 %v16888_v12  ;;  %4905 = vmatprep.mubr.f32.mxu1 %v13374_v47  ;;  %v15380_v47 = vpack.c.bf16 %v8887_v37, %v8886_v20  ;;  %v15464_v20 = vpack.c.bf16 %v8915_v54, %v8914_v10  ;;  %v8916_v37 = vld [vmem:[%s16770_s7 + $0x110] sm:$0xff]  ;;  %v8932_v10 = vld [vmem:[%s16770_s7 + $0x160] sm:$0xff]  ;;  %v8933_v54 = vld [vmem:[%s16770_s7 + $0x168] sm:$0xff] }
 0x5f5   :  { %12550 = vmatprep.subr.bf16.mxu1 %v16889_v15 }
 0x5f6   :  { %16912 = vst [vmem:[#allocation13_spill] sm:$0xff] %v15464_v20 }
 0x5f8   :  { %12552 = vmatpush3.bf16.msra.mxu1 %v16890_v22 }
 0x5f9   :  { %12554 = vmatprep.subr.bf16.mxu1 %v16891_v29 }
 0x5fc   :  { %12556 = vmatpush3.bf16.msra.mxu1 %v16892_v43 }
 0x5fd   :  { %12558 = vmatprep.subr.bf16.mxu1 %v16893_v50 }
 0x600   :  { %12560 = vmatpush3.bf16.msra.mxu1 %v16894_v57 }
 0x601   :  { %12562 = vmatprep.subr.bf16.mxu1 %v16895_v0 }
 0x604   :  { %12564 = vmatpush3.bf16.msra.mxu1 %v16896_v8 }
 0x605   :  { %12566 = vmatprep.subr.bf16.mxu1 %v16897_v16 }
 0x608   :  { %12568 = vmatpush3.bf16.msra.mxu1 %v16898_v24 }
 0x609   :  { %12570 = vmatprep.subr.bf16.mxu1 %v16899_v32 }
 0x60c   :  { %12572 = vmatpush3.bf16.msra.mxu1 %v16900_v40 }
 0x60d   :  { %12574 = vmatprep.subr.bf16.mxu1 %v16901_v48 }
 0x610   :  { %12576 = vmatpush3.bf16.msra.mxu1 %v16902_v56 }
 0x611   :  { %12610 = vmatprep.subr.bf16.mxu1 %v16903_v61 }
 0x613   :  { %4906 = vmatmul.mubr.f32.vlgmr.msra.gmra.mrb[88].mxu1 %v13375_v62  ;;  %v8889_v62 = vld [vmem:[%s16770_s7 + $0x98] sm:$0xff] }
 0x614   :  { %4910 = vmatprep.mubr.f32.mxu1 %v13376_v42  ;;  %12612 = vmatpush3.bf16.msra.mxu1 %v16903_v61  ;;  %v8888_v61 = vld [vmem:[%s16770_s7 + $0x90] sm:$0xff] }
 0x615   :  { %12614 = vmatprep.subr.bf16.mxu1 %v16904_v28 }
 0x617   :  { %4911 = vmatmul.mubr.f32.gmra.mrb[90].mxu1 %v13377_v63 }
 0x618   :  { %4915 = vmatprep.mubr.f32.mxu1 %v13378_v27  ;;  %12616 = vmatpush3.bf16.msra.mxu1 %v16904_v28  ;;  %v15390_v28 = vpack.c.bf16 %v8889_v62, %v8888_v61  ;;  %v8890_v27 = vld [vmem:[%s16770_s7 + $0xa0] sm:$0xff]  ;;  %v8917_v61 = vld [vmem:[%s16770_s7 + $0x118] sm:$0xff] }
 0x619   :  { %12618 = vmatprep.subr.bf16.mxu1 %v16905_v21 }
 0x61b   :  { %4916 = vmatmul.mubr.f32.gmra.mrb[92].mxu1 %v13379_v18  ;;  %v8891_v18 = vld [vmem:[%s16770_s7 + $0xa8] sm:$0xff] }
 0x61c   :  { %4920 = vmatprep.mubr.f32.mxu1 %v13380_v6  ;;  %v15402_v6 = vpack.c.bf16 %v8891_v18, %v8890_v27  ;;  %v8918_v27 = vld [vmem:[%s16770_s7 + $0x120] sm:$0xff]  ;;  %v8919_v18 = vld [vmem:[%s16770_s7 + $0x128] sm:$0xff] }
 0x61e   :  { %16906 = vst [vmem:[#allocation9_spill] sm:$0xff] %v15402_v6 }
 0x61f   :  { %4921 = vmatmul.mubr.f32.gmra.mrb[94].mxu1 %v13381_v2  ;;  %v8892_v2 = vld [vmem:[%s16770_s7 + $0xb0] sm:$0xff] }
 0x620   :  { %4925 = vmatprep.mubr.f32.mxu1 %v13382_v49  ;;  %v8893_v49 = vld [vmem:[%s16770_s7 + $0xb8] sm:$0xff] }
 0x623   :  { %4926 = vmatmul.mubr.f32.gmra.mrb[96].mxu1 %v13383_v35  ;;  %v15412_v35 = vpack.c.bf16 %v8893_v49, %v8892_v2  ;;  %v15486_v2 = vpack.c.bf16 %v8919_v18, %v8918_v27  ;;  %v8920_v49 = vld [vmem:[%s16770_s7 + $0x130] sm:$0xff]  ;;  %v8942_v27 = vld [vmem:[%s16770_s7 + $0x180] sm:$0xff]  ;;  %v8943_v18 = vld [vmem:[%s16770_s7 + $0x188] sm:$0xff] }
 0x624   :  { %4930 = vmatprep.mubr.f32.mxu1 %v13384_v58  ;;  %v8900_v58 = vld [vmem:[%s16770_s7 + $0xc0] sm:$0xff] }
 0x625   :  { %16907 = vst [vmem:[#allocation19_spill] sm:$0xff] %v15412_v35  ;;  %16914 = vst [vmem:[#allocation14_spill] sm:$0xff] %v15486_v2 }
 0x627   :  { %4931 = vmatmul.mubr.f32.gmra.mrb[98].mxu1 %v13385_v59  ;;  %v8901_v59 = vld [vmem:[%s16770_s7 + $0xc8] sm:$0xff] }
 0x628   :  { %4935 = vmatprep.mubr.f32.mxu1 %v13386_v11  ;;  %v15422_v11 = vpack.c.bf16 %v8901_v59, %v8900_v58  ;;  %v8921_v58 = vld [vmem:[%s16770_s7 + $0x138] sm:$0xff] }
 0x629   :  { %v15496_v59 = vpack.c.bf16 %v8921_v58, %v8920_v49  ;;  %v15548_v49 = vpack.c.bf16 %v8943_v18, %v8942_v27  ;;  %v8944_v58 = vld [vmem:[%s16770_s7 + $0x190] sm:$0xff]  ;;  %v8956_v27 = vld [vmem:[%s16770_s7 + $0x1c0] sm:$0xff]  ;;  %v8957_v18 = vld [vmem:[%s16770_s7 + $0x1c8] sm:$0xff] }
 0x62a   :  { %16908 = vst [vmem:[#allocation10_spill] sm:$0xff] %v15422_v11 }
 0x62b   :  { %4936 = vmatmul.mubr.f32.gmra.mrb[100].mxu1 %v13387_v60  ;;  %v8902_v60 = vld [vmem:[%s16770_s7 + $0xd0] sm:$0xff]  ;;  %16915 = vst [vmem:[#allocation24_spill] sm:$0xff] %v15496_v59  ;;  %16920 = vst [vmem:[#allocation18_spill] sm:$0xff] %v15548_v49 }
 0x62c   :  { %4940 = vmatprep.mubr.f32.mxu1 %v13388_v30  ;;  %v8903_v30 = vld [vmem:[%s16770_s7 + $0xd8] sm:$0xff] }
 0x62d   :  { %v15432_v33 = vpack.c.bf16 %v8903_v30, %v8902_v60  ;;  %v8928_v60 = vld [vmem:[%s16770_s7 + $0x140] sm:$0xff]  ;;  %v8929_v30 = vld [vmem:[%s16770_s7 + $0x148] sm:$0xff] }
 0x62f   :  { %4941 = vmatmul.mubr.f32.gmra.mrb[102].mxu1 %v13389_v45  ;;  %16909 = vst [vmem:[#allocation21_spill] sm:$0xff] %v15432_v33 }
 0x656   :  { %v11064_v41 = vpop.f32.mrb[144].mxu0  ;;  %v11045_v1 = vpop.f32.mrb[72].mxu1 }
 0x657   :  { %v3317_v51 = vpop.f32.mrb[145].mxu0  ;;  %v3225_v23 = vpop.f32.mrb[73].mxu1 }
 0x658   :  { %11081 = vmatprep.mubr.msk.f32.mxu0 %vm3152_vm5, %v3317_v51 }
 0x659   :  { %11082 = vmatmul.mubr.msk.f32.vlgmr.msra.gmra.mrb[146].mxu0 %vm3152_vm5, %v11064_v41  ;;  %v8904_v41 = vld [vmem:[%s16770_s7 + $0xe0] sm:$0xff] }
 0x65a   :  { %12308 = vmatpush3.bf16.msra.mxu0 %v15244_v39  ;;  %11100 = vmatprep.mubr.msk.f32.mxu0 %vm3152_vm5, %v3225_v23  ;;  %v8906_v23 = vld [vmem:[%s16770_s7 + $0xf0] sm:$0xff] }
 0x65b   :  { %12310 = vmatprep.subr.bf16.mxu0 %v15347_v25  ;;  %v15454_v7 = vpack.c.bf16 %v8907_v53, %v8906_v23 }
 0x65d   :  { %16911 = vst [vmem:[#allocation22_spill] sm:$0xff] %v15454_v7 }
 0x65e   :  { %12312 = vmatpush3.bf16.msra.mxu0 %v15347_v25 }
 0x65f   :  { %12314 = vmatprep.subr.bf16.mxu0 %v15360_v26 }
 0x662   :  { %12316 = vmatpush3.bf16.msra.mxu0 %v15360_v26 }
 0x663   :  { %12318 = vmatprep.subr.bf16.mxu0 %v15370_v14 }
 0x666   :  { %12320 = vmatpush3.bf16.msra.mxu0 %v15370_v14  ;;  %v11121_v42 = vpop.f32.mrb[74].mxu1 }
 0x667   :  { %12338 = vmatprep.subr.bf16.mxu0 %v15380_v47  ;;  %v3572_v63 = vpop.f32.mrb[75].mxu1 }
 0x669   :  { %11101 = vmatmul.mubr.msk.f32.vlgmr.msra.gmra.mrb[146].mxu0 %vm3152_vm5, %v11045_v1  ;;  %v8905_v1 = vld [vmem:[%s16770_s7 + $0xe8] sm:$0xff] }
 0x66a   :  { %12340 = vmatpush3.bf16.msra.mxu0 %v15380_v47  ;;  %11138 = vmatprep.mubr.msk.f32.mxu0 %vm3152_vm5, %v3572_v63  ;;  %v15444_v51 = vpack.c.bf16 %v8905_v1, %v8904_v41  ;;  %v8931_v41 = vld [vmem:[%s16770_s7 + $0x158] sm:$0xff] }
 0x66b   :  { %12342 = vmatprep.subr.bf16.mxu0 %v15390_v28 }
 0x66c   :  { %16910 = vst [vmem:[#allocation11_spill] sm:$0xff] %v15444_v51 }
 0x66e   :  { %12344 = vmatpush3.bf16.msra.mxu0 %v15390_v28 }
 0x66f   :  { %12346 = vmatprep.subr.bf16.mxu0 %v15402_v6 }
 0x672   :  { %12348 = vmatpush3.bf16.msra.mxu0 %v15402_v6 }
 0x673   :  { %12350 = vmatprep.subr.bf16.mxu0 %v15412_v35 }
 0x676   :  { %12352 = vmatpush3.bf16.msra.mxu0 %v15412_v35  ;;  %v11159_v45 = vpop.f32.mrb[76].mxu1 }
 0x677   :  { %12370 = vmatprep.subr.bf16.mxu0 %v15422_v11  ;;  %v3748_v5 = vpop.f32.mrb[77].mxu1 }
 0x679   :  { %11139 = vmatmul.mubr.msk.f32.vlgmr.msra.gmra.mrb[146].mxu0 %vm3152_vm5, %v11121_v42  ;;  %v15474_v42 = vpack.c.bf16 %v8917_v61, %v8916_v37  ;;  %v15528_v37 = vpack.c.bf16 %v8933_v54, %v8932_v10  ;;  %v8934_v61 = vld [vmem:[%s16770_s7 + $0x170] sm:$0xff]  ;;  %v8947_v10 = vld [vmem:[%s16770_s7 + $0x1a8] sm:$0xff] }
 0x67a   :  { %12372 = vmatpush3.bf16.msra.mxu0 %v15422_v11  ;;  %11176 = vmatprep.mubr.msk.f32.mxu0 %vm3152_vm5, %v3748_v5  ;;  %v8930_v5 = vld [vmem:[%s16770_s7 + $0x150] sm:$0xff] }
 0x67b   :  { %12374 = vmatprep.subr.bf16.mxu0 %v15432_v33  ;;  %16913 = vst [vmem:[#allocation23_spill] sm:$0xff] %v15474_v42  ;;  %v15516_v23 = vpack.c.bf16 %v8931_v41, %v8930_v5  ;;  %16918 = vst [vmem:[#allocation17_spill] sm:$0xff] %v15528_v37 }
 0x67d   :  { %16917 = vst [vmem:[#allocation25_spill] sm:$0xff] %v15516_v23 }
 0x67e   :  { %12376 = vmatpush3.bf16.msra.mxu0 %v15432_v33 }
 0x67f   :  { %12378 = vmatprep.subr.bf16.mxu0 %v15444_v51 }
 0x682   :  { %12380 = vmatpush3.bf16.msra.mxu0 %v15444_v51 }
 0x683   :  { %12382 = vmatprep.subr.bf16.mxu0 %v15454_v7 }
 0x686   :  { %12384 = vmatpush3.bf16.msra.mxu0 %v15454_v7  ;;  %v11197_v62 = vpop.f32.mrb[78].mxu1 }
 0x687   :  { %12402 = vmatprep.subr.bf16.mxu0 %v15464_v20  ;;  %v3924_v63 = vpop.f32.mrb[79].mxu1 }
 0x689   :  { %11177 = vmatmul.mubr.msk.f32.vlgmr.msra.gmra.mrb[146].mxu0 %vm3152_vm5, %v11159_v45  ;;  %v15506_v45 = vpack.c.bf16 %v8929_v30, %v8928_v60  ;;  %v8945_v60 = vld [vmem:[%s16770_s7 + $0x198] sm:$0xff] }
 0x68a   :  { %12404 = vmatpush3.bf16.msra.mxu0 %v15464_v20  ;;  %11214 = vmatprep.mubr.msk.f32.mxu0 %vm3152_vm5, %v3924_v63  ;;  %v8935_v63 = vld [vmem:[%s16770_s7 + $0x178] sm:$0xff]  ;;  %v15558_v5 = vpack.c.bf16 %v8945_v60, %v8944_v58  ;;  %v15590_v58 = vpack.c.bf16 %v8957_v18, %v8956_v27  ;;  %v8958_v60 = vld [vmem:[%s16770_s7 + $0x1d0] sm:$0xff]  ;;  %v8961_v27 = vld [vmem:[%s16770_s7 + $0x1e8] sm:$0xff] }
 0x68b   :  { %12406 = vmatprep.subr.bf16.mxu0 %v15474_v42  ;;  %16916 = vst [vmem:[#allocation16_spill] sm:$0xff] %v15506_v45 }
 0x68c   :  { %16921 = vst [vmem:[#allocation12_spill] sm:$0xff] %v15558_v5  ;;  %16924 = vst [vmem:[#allocation33_spill] sm:$0xff] %v15590_v58 }
 0x68e   :  { %12408 = vmatpush3.bf16.msra.mxu0 %v15474_v42 }
 0x68f   :  { %12410 = vmatprep.subr.bf16.mxu0 %v15486_v2 }
 0x692   :  { %12412 = vmatpush3.bf16.msra.mxu0 %v15486_v2  ;;  %v4761_v2 = vld [vmem:[%s16774_s11] sm:$0xff] }
 0x693   :  { %12414 = vmatprep.subr.bf16.mxu0 %v15496_v59 }
 0x696   :  { %12416 = vmatpush3.bf16.msra.mxu0 %v15496_v59  ;;  %v11235_v1 = vpop.f32.mrb[80].mxu1  ;;  %v13482_v59 = vld [vmem:[%s16766_s3 + $0x3e8] sm:$0xff] }
 0x697   :  { %12434 = vmatprep.subr.bf16.mxu0 %v15506_v45  ;;  %v4100_v53 = vpop.f32.mrb[81].mxu1 }
 0x699   :  { %11215 = vmatmul.mubr.msk.f32.vlgmr.msra.gmra.mrb[146].mxu0 %vm3152_vm5, %v11197_v62  ;;  %v15538_v62 = vpack.c.bf16 %v8935_v63, %v8934_v61  ;;  %v8948_v61 = vld [vmem:[%s16770_s7 + $0x1b0] sm:$0xff]  ;;  %v8949_v63 = vld [vmem:[%s16770_s7 + $0x1b8] sm:$0xff] }
 0x69a   :  { %12436 = vmatpush3.bf16.msra.mxu0 %v15506_v45  ;;  %11252 = vmatprep.mubr.msk.f32.mxu0 %vm3152_vm5, %v4100_v53  ;;  %v8946_v53 = vld [vmem:[%s16770_s7 + $0x1a0] sm:$0xff]  ;;  %v4762_v45 = vld [vmem:[%s16774_s11 + $0x8] sm:$0xff] }
 0x69b   :  { %12438 = vmatprep.subr.bf16.mxu0 %v15516_v23  ;;  %16919 = vst [vmem:[#allocation26_spill] sm:$0xff] %v15538_v62  ;;  %v15570_v54 = vpack.c.bf16 %v8947_v10, %v8946_v53 }
 0x69d   :  { %16922 = vst [vmem:[#allocation15_spill] sm:$0xff] %v15570_v54 }
 0x69e   :  { %12440 = vmatpush3.bf16.msra.mxu0 %v15516_v23 }
 0x69f   :  { %12442 = vmatprep.subr.bf16.mxu0 %v15528_v37 }
 0x6a2   :  { %12444 = vmatpush3.bf16.msra.mxu0 %v15528_v37  ;;  %v13481_v37 = vld [vmem:[%s16766_s3 + $0x3d0] sm:$0xff] }
 0x6a3   :  { %12446 = vmatprep.subr.bf16.mxu0 %v15538_v62 }
 0x6a6   :  { %12448 = vmatpush3.bf16.msra.mxu0 %v15538_v62  ;;  %v11273_v30 = vpop.f32.mrb[82].mxu1 }
 0x6a7   :  { %12466 = vmatprep.subr.bf16.mxu0 %v15548_v49  ;;  %v4276_v41 = vpop.f32.mrb[83].mxu1 }
 0x6a9   :  { %11253 = vmatmul.mubr.msk.f32.vlgmr.msra.gmra.mrb[146].mxu0 %vm3152_vm5, %v11235_v1  ;;  %v15580_v1 = vpack.c.bf16 %v8949_v63, %v8948_v61  ;;  %v8960_v63 = vld [vmem:[%s16770_s7 + $0x1e0] sm:$0xff] }
 0x6aa   :  { %12468 = vmatpush3.bf16.msra.mxu0 %v15548_v49  ;;  %11290 = vmatprep.mubr.msk.f32.mxu0 %vm3152_vm5, %v4276_v41  ;;  %v8959_v41 = vld [vmem:[%s16770_s7 + $0x1d8] sm:$0xff]  ;;  %v15612_v18 = vpack.c.bf16 %v8961_v27, %v8960_v63  ;;  %v8971_v63 = vld [vmem:[%s16770_s7 + $0x208] sm:$0xff] }
 0x6ab   :  { %12470 = vmatprep.subr.bf16.mxu0 %v15558_v5  ;;  %16923 = vst [vmem:[#allocation20_spill] sm:$0xff] %v15580_v1  ;;  %v15600_v10 = vpack.c.bf16 %v8959_v41, %v8958_v60  ;;  %v8962_v60 = vld [vmem:[%s16770_s7 + $0x1f0] sm:$0xff]  ;;  %v8963_v41 = vld [vmem:[%s16770_s7 + $0x1f8] sm:$0xff] }
 0x6ac   :  { %16926 = vst [vmem:[#allocation35_spill] sm:$0xff] %v15612_v18 }
 0x6ad   :  { %16925 = vst [vmem:[#allocation34_spill] sm:$0xff] %v15600_v10 }
 0x6ae   :  { %12472 = vmatpush3.bf16.msra.mxu0 %v15558_v5 }
 0x6af   :  { %12474 = vmatprep.subr.bf16.mxu0 %v15570_v54 }
 0x6b2   :  { %12476 = vmatpush3.bf16.msra.mxu0 %v15570_v54 }
 0x6b3   :  { %12478 = vmatprep.subr.bf16.mxu0 %v15580_v1 }
 0x6b6   :  { %12480 = vmatpush3.bf16.msra.mxu0 %v15580_v1  ;;  %v11311_v53 = vpop.f32.mrb[84].mxu1 }
 0x6b7   :  { %12498 = vmatprep.subr.bf16.mxu0 %v15590_v58  ;;  %v4452_v61 = vpop.f32.mrb[85].mxu1 }
 0x6b9   :  { %11291 = vmatmul.mubr.msk.f32.vlgmr.msra.gmra.mrb[146].mxu0 %vm3152_vm5, %v11273_v30  ;;  %v15622_v30 = vpack.c.bf16 %v8963_v41, %v8962_v60  ;;  %v8973_v60 = vld [vmem:[%s16770_s7 + $0x218] sm:$0xff] }
 0x6ba   :  { %12500 = vmatpush3.bf16.msra.mxu0 %v15590_v58  ;;  %11328 = vmatprep.mubr.msk.f32.mxu0 %vm3152_vm5, %v4452_v61  ;;  %v8970_v61 = vld [vmem:[%s16770_s7 + $0x200] sm:$0xff] }
 0x6bb   :  { %12502 = vmatprep.subr.bf16.mxu0 %v15600_v10  ;;  %16927 = vst [vmem:[#allocation36_spill] sm:$0xff] %v15622_v30  ;;  %v15632_v27 = vpack.c.bf16 %v8971_v63, %v8970_v61  ;;  %v8974_v61 = vld [vmem:[%s16770_s7 + $0x220] sm:$0xff]  ;;  %v8975_v63 = vld [vmem:[%s16770_s7 + $0x228] sm:$0xff] }
 0x6bd   :  { %16928 = vst [vmem:[#allocation37_spill] sm:$0xff] %v15632_v27 }
 0x6be   :  { %12504 = vmatpush3.bf16.msra.mxu0 %v15600_v10  ;;  %v8972_v10 = vld [vmem:[%s16770_s7 + $0x210] sm:$0xff] }
 0x6bf   :  { %12506 = vmatprep.subr.bf16.mxu0 %v15612_v18  ;;  %v15642_v58 = vpack.c.bf16 %v8973_v60, %v8972_v10  ;;  %v8976_v10 = vld [vmem:[%s16770_s7 + $0x230] sm:$0xff]  ;;  %v8977_v60 = vld [vmem:[%s16770_s7 + $0x238] sm:$0xff] }
 0x6c1   :  { %16929 = vst [vmem:[#allocation38_spill] sm:$0xff] %v15642_v58 }
 0x6c2   :  { %12508 = vmatpush3.bf16.msra.mxu0 %v15612_v18 }
 0x6c3   :  { %12510 = vmatprep.subr.bf16.mxu0 %v15622_v30 }
 0x6c6   :  { %12512 = vmatpush3.bf16.msra.mxu0 %v15622_v30  ;;  %v11349_v41 = vpop.f32.mrb[86].mxu1  ;;  %v15654_v30 = vpack.c.bf16 %v8975_v63, %v8974_v61  ;;  %v13392_v61 = vld [vmem:[%s16766_s3 + $0x98] sm:$0xff]  ;;  %v13393_v63 = vld [vmem:[%s16766_s3 + $0x90] sm:$0xff] }
 0x6c7   :  { %12530 = vmatprep.subr.bf16.mxu0 %v15632_v27  ;;  %v4628_v18 = vpop.f32.mrb[87].mxu1 }
 0x6c8   :  { %16930 = vst [vmem:[#allocation39_spill] sm:$0xff] %v15654_v30 }
 0x6c9   :  { %11329 = vmatmul.mubr.msk.f32.vlgmr.msra.gmra.mrb[146].mxu0 %vm3152_vm5, %v11311_v53  ;;  %v15664_v53 = vpack.c.bf16 %v8977_v60, %v8976_v10  ;;  %v13394_v10 = vld [vmem:[%s16766_s3 + $0xa8] sm:$0xff]  ;;  %v13395_v60 = vld [vmem:[%s16766_s3 + $0xa0] sm:$0xff] }
 0x6ca   :  { %12532 = vmatpush3.bf16.msra.mxu0 %v15632_v27  ;;  %11366 = vmatprep.mubr.msk.f32.mxu0 %vm3152_vm5, %v4628_v18  ;;  %v13390_v18 = vld [vmem:[%s16766_s3 + $0x88] sm:$0xff] }
 0x6cb   :  { %12534 = vmatprep.subr.bf16.mxu0 %v15642_v58  ;;  %16931 = vst [vmem:[#allocation40_spill] sm:$0xff] %v15664_v53 }
 0x6ce   :  { %12536 = vmatpush3.bf16.msra.mxu0 %v15642_v58 }
 0x6cf   :  { %12538 = vmatprep.subr.bf16.mxu0 %v15654_v30 }
 0x6d2   :  { %12540 = vmatpush3.bf16.msra.mxu0 %v15654_v30 }
 0x6d3   :  { %12542 = vmatprep.subr.bf16.mxu0 %v15664_v53 }
 0x6d6   :  { %12544 = vmatpush3.bf16.msra.mxu0 %v15664_v53  ;;  %v13445_v53 = vld [vmem:[%s16766_s3 + $0x2b0] sm:$0xff] }
 0x6d7   :  { %12578 = vmatprep.subr.bf16.mxu0 %v14444_v13 }
 0x6d9   :  { %11367 = vmatmul.mubr.msk.f32.vlgmr.msra.gmra.mrb[146].mxu0 %vm3152_vm5, %v11349_v41  ;;  %v13391_v41 = vld [vmem:[%s16766_s3 + $0x80] sm:$0xff] }
 0x6da   :  { %12580 = vmatpush3.bf16.msra.mxu0 %v16888_v12  ;;  %5010 = vmatprep.mubr.f32.mxu0 %v13390_v18  ;;  %v13396_v18 = vld [vmem:[%s16766_s3 + $0xb8] sm:$0xff] }
 0x6db   :  { %12582 = vmatprep.subr.bf16.mxu0 %v16889_v15 }
 0x6de   :  { %12584 = vmatpush3.bf16.msra.mxu0 %v16890_v22 }
 0x6df   :  { %12586 = vmatprep.subr.bf16.mxu0 %v16891_v29 }
 0x6e2   :  { %12588 = vmatpush3.bf16.msra.mxu0 %v16892_v43 }
 0x6e3   :  { %12590 = vmatprep.subr.bf16.mxu0 %v16893_v50 }
 0x6e6   :  { %12592 = vmatpush3.bf16.msra.mxu0 %v16894_v57 }
 0x6e7   :  { %12594 = vmatprep.subr.bf16.mxu0 %v16895_v0 }
 0x6ea   :  { %12596 = vmatpush3.bf16.msra.mxu0 %v16896_v8 }
 0x6eb   :  { %12598 = vmatprep.subr.bf16.mxu0 %v16897_v16 }
 0x6ee   :  { %12600 = vmatpush3.bf16.msra.mxu0 %v16898_v24 }
 0x6ef   :  { %12602 = vmatprep.subr.bf16.mxu0 %v16899_v32 }
 0x6f2   :  { %12604 = vmatpush3.bf16.msra.mxu0 %v16900_v40 }
 0x6f3   :  { %12606 = vmatprep.subr.bf16.mxu0 %v16901_v48 }
 0x6f6   :  { %12608 = vmatpush3.bf16.msra.mxu0 %v16902_v56 }
 0x6f7   :  { %12626 = vmatprep.subr.bf16.mxu0 %v14444_v13 }
 0x6f9   :  { %5011 = vmatmul.mubr.f32.vlgmr.msra.gmra.mrb[148].mxu0 %v13391_v41  ;;  %v13397_v41 = vld [vmem:[%s16766_s3 + $0xb0] sm:$0xff] }
 0x6fa   :  { %12628 = vmatpush3.bf16.msra.mxu0 %v16888_v12  ;;  %5015 = vmatprep.mubr.f32.mxu0 %v13392_v61  ;;  %v13398_v61 = vld [vmem:[%s16766_s3 + $0xc8] sm:$0xff] }
 0x6fb   :  { %12630 = vmatprep.subr.bf16.mxu0 %v16889_v15 }
 0x6fd   :  { %5016 = vmatmul.mubr.f32.gmra.mrb[150].mxu0 %v13393_v63  ;;  %v13399_v63 = vld [vmem:[%s16766_s3 + $0xc0] sm:$0xff] }
 0x6fe   :  { %12632 = vmatpush3.bf16.msra.mxu0 %v16890_v22  ;;  %5020 = vmatprep.mubr.f32.mxu0 %v13394_v10  ;;  %v13400_v10 = vld [vmem:[%s16766_s3 + $0xd8] sm:$0xff] }
 0x6ff   :  { %12634 = vmatprep.subr.bf16.mxu0 %v16891_v29 }
 0x701   :  { %5021 = vmatmul.mubr.f32.gmra.mrb[152].mxu0 %v13395_v60  ;;  %v13401_v60 = vld [vmem:[%s16766_s3 + $0xd0] sm:$0xff] }
 0x702   :  { %12636 = vmatpush3.bf16.msra.mxu0 %v16892_v43  ;;  %5025 = vmatprep.mubr.f32.mxu0 %v13396_v18  ;;  %v13402_v18 = vld [vmem:[%s16766_s3 + $0xe8] sm:$0xff] }
 0x703   :  { %12638 = vmatprep.subr.bf16.mxu0 %v16893_v50 }
 0x705   :  { %5026 = vmatmul.mubr.f32.gmra.mrb[154].mxu0 %v13397_v41  ;;  %v13403_v41 = vld [vmem:[%s16766_s3 + $0xe0] sm:$0xff] }
 0x706   :  { %12640 = vmatpush3.bf16.msra.mxu0 %v16894_v57  ;;  %5030 = vmatprep.mubr.f32.mxu0 %v13398_v61  ;;  %v13404_v61 = vld [vmem:[%s16766_s3 + $0xf8] sm:$0xff] }
 0x707   :  { %12642 = vmatprep.subr.bf16.mxu0 %v16895_v0 }
 0x709   :  { %5031 = vmatmul.mubr.f32.gmra.mrb[156].mxu0 %v13399_v63  ;;  %v13405_v63 = vld [vmem:[%s16766_s3 + $0xf0] sm:$0xff] }
 0x70a   :  { %12644 = vmatpush3.bf16.msra.mxu0 %v16896_v8  ;;  %5035 = vmatprep.mubr.f32.mxu0 %v13400_v10  ;;  %v13406_v10 = vld [vmem:[%s16766_s3 + $0x108] sm:$0xff] }
 0x70b   :  { %12646 = vmatprep.subr.bf16.mxu0 %v16897_v16 }
 0x70d   :  { %5036 = vmatmul.mubr.f32.gmra.mrb[158].mxu0 %v13401_v60  ;;  %v13407_v60 = vld [vmem:[%s16766_s3 + $0x100] sm:$0xff] }
 0x70e   :  { %12648 = vmatpush3.bf16.msra.mxu0 %v16898_v24  ;;  %5040 = vmatprep.mubr.f32.mxu0 %v13402_v18  ;;  %v13408_v18 = vld [vmem:[%s16766_s3 + $0x118] sm:$0xff] }
 0x70f   :  { %12650 = vmatprep.subr.bf16.mxu0 %v16899_v32 }
 0x711   :  { %5041 = vmatmul.mubr.f32.gmra.mrb[160].mxu0 %v13403_v41  ;;  %v13409_v41 = vld [vmem:[%s16766_s3 + $0x110] sm:$0xff] }
 0x712   :  { %12652 = vmatpush3.bf16.msra.mxu0 %v16900_v40  ;;  %5045 = vmatprep.mubr.f32.mxu0 %v13404_v61  ;;  %v13410_v61 = vld [vmem:[%s16766_s3 + $0x128] sm:$0xff] }
 0x713   :  { %12654 = vmatprep.subr.bf16.mxu0 %v16901_v48 }
 0x715   :  { %5046 = vmatmul.mubr.f32.gmra.mrb[162].mxu0 %v13405_v63  ;;  %v13411_v63 = vld [vmem:[%s16766_s3 + $0x120] sm:$0xff] }
 0x716   :  { %12656 = vmatpush3.bf16.msra.mxu0 %v16902_v56  ;;  %5373 = vmatprep.mubr.f32.mxu0 %v13406_v10  ;;  %v13412_v10 = vld [vmem:[%s16766_s3 + $0x138] sm:$0xff] }
 0x717   :  { %12666 = vmatprep.subr.bf16.mxu0 %v14444_v13 }
 0x719   :  { %5374 = vmatmul.mubr.f32.vlgmr.msra.gmra.mrb[164].mxu0 %v13407_v60  ;;  %v13413_v60 = vld [vmem:[%s16766_s3 + $0x130] sm:$0xff] }
 0x71a   :  { %12668 = vmatpush3.bf16.msra.mxu0 %v16888_v12  ;;  %5378 = vmatprep.mubr.f32.mxu0 %v13408_v18  ;;  %v13414_v18 = vld [vmem:[%s16766_s3 + $0x148] sm:$0xff] }
 0x71b   :  { %12670 = vmatprep.subr.bf16.mxu0 %v16889_v15 }
 0x71d   :  { %5379 = vmatmul.mubr.f32.gmra.mrb[166].mxu0 %v13409_v41  ;;  %v13415_v41 = vld [vmem:[%s16766_s3 + $0x140] sm:$0xff] }
 0x71e   :  { %12672 = vmatpush3.bf16.msra.mxu0 %v16890_v22  ;;  %5383 = vmatprep.mubr.f32.mxu0 %v13410_v61  ;;  %v13416_v61 = vld [vmem:[%s16766_s3 + $0x158] sm:$0xff] }
 0x71f   :  { %12674 = vmatprep.subr.bf16.mxu0 %v16891_v29 }
 0x721   :  { %5384 = vmatmul.mubr.f32.gmra.mrb[168].mxu0 %v13411_v63  ;;  %v13417_v63 = vld [vmem:[%s16766_s3 + $0x150] sm:$0xff] }
 0x722   :  { %12676 = vmatpush3.bf16.msra.mxu0 %v16892_v43  ;;  %5388 = vmatprep.mubr.f32.mxu0 %v13412_v10  ;;  %v13418_v10 = vld [vmem:[%s16766_s3 + $0x168] sm:$0xff] }
 0x723   :  { %12678 = vmatprep.subr.bf16.mxu0 %v16893_v50 }
 0x725   :  { %5389 = vmatmul.mubr.f32.gmra.mrb[170].mxu0 %v13413_v60  ;;  %v13419_v60 = vld [vmem:[%s16766_s3 + $0x160] sm:$0xff] }
 0x726   :  { %12680 = vmatpush3.bf16.msra.mxu0 %v16894_v57  ;;  %5393 = vmatprep.mubr.f32.mxu0 %v13414_v18  ;;  %v13420_v18 = vld [vmem:[%s16766_s3 + $0x178] sm:$0xff] }
 0x727   :  { %12682 = vmatprep.subr.bf16.mxu0 %v16895_v0 }
 0x729   :  { %5394 = vmatmul.mubr.f32.gmra.mrb[172].mxu0 %v13415_v41  ;;  %v13421_v41 = vld [vmem:[%s16766_s3 + $0x170] sm:$0xff] }
 0x72a   :  { %12684 = vmatpush3.bf16.msra.mxu0 %v16896_v8  ;;  %5398 = vmatprep.mubr.f32.mxu0 %v13416_v61  ;;  %v13422_v61 = vld [vmem:[%s16766_s3 + $0x188] sm:$0xff] }
 0x72b   :  { %12686 = vmatprep.subr.bf16.mxu0 %v16897_v16 }
 0x72d   :  { %5399 = vmatmul.mubr.f32.gmra.mrb[174].mxu0 %v13417_v63  ;;  %v13423_v63 = vld [vmem:[%s16766_s3 + $0x180] sm:$0xff] }
 0x72e   :  { %12688 = vmatpush3.bf16.msra.mxu0 %v16898_v24  ;;  %5403 = vmatprep.mubr.f32.mxu0 %v13418_v10  ;;  %v13424_v10 = vld [vmem:[%s16766_s3 + $0x198] sm:$0xff] }
 0x72f   :  { %12690 = vmatprep.subr.bf16.mxu0 %v16899_v32 }
 0x731   :  { %5404 = vmatmul.mubr.f32.gmra.mrb[176].mxu0 %v13419_v60  ;;  %v13425_v60 = vld [vmem:[%s16766_s3 + $0x190] sm:$0xff] }
 0x732   :  { %12692 = vmatpush3.bf16.msra.mxu0 %v16900_v40  ;;  %5408 = vmatprep.mubr.f32.mxu0 %v13420_v18  ;;  %v13426_v18 = vld [vmem:[%s16766_s3 + $0x1a8] sm:$0xff] }
 0x733   :  { %12694 = vmatprep.subr.bf16.mxu0 %v16901_v48 }
 0x735   :  { %5409 = vmatmul.mubr.f32.gmra.mrb[178].mxu0 %v13421_v41  ;;  %v13427_v41 = vld [vmem:[%s16766_s3 + $0x1a0] sm:$0xff] }
 0x736   :  { %12696 = vmatpush3.bf16.msra.mxu0 %v16902_v56  ;;  %5615 = vmatprep.mubr.f32.mxu0 %v13422_v61  ;;  %v13428_v61 = vld [vmem:[%s16766_s3 + $0x1b8] sm:$0xff] }
 0x737   :  { %12746 = vmatprep.subr.bf16.mxu0 %v14444_v13 }
 0x739   :  { %5616 = vmatmul.mubr.f32.vlgmr.msra.gmra.mrb[180].mxu0 %v13423_v63  ;;  %v13429_v63 = vld [vmem:[%s16766_s3 + $0x1b0] sm:$0xff] }
 0x73a   :  { %12748 = vmatpush3.bf16.msra.mxu0 %v16888_v12  ;;  %5620 = vmatprep.mubr.f32.mxu0 %v13424_v10  ;;  %v13430_v10 = vld [vmem:[%s16766_s3 + $0x1c8] sm:$0xff] }
 0x73b   :  { %12750 = vmatprep.subr.bf16.mxu0 %v16889_v15 }
 0x73d   :  { %5621 = vmatmul.mubr.f32.gmra.mrb[182].mxu0 %v13425_v60  ;;  %v13431_v60 = vld [vmem:[%s16766_s3 + $0x1c0] sm:$0xff] }
 0x73e   :  { %12752 = vmatpush3.bf16.msra.mxu0 %v16890_v22  ;;  %5625 = vmatprep.mubr.f32.mxu0 %v13426_v18  ;;  %v13432_v18 = vld [vmem:[%s16766_s3 + $0x1d8] sm:$0xff] }
 0x73f   :  { %12754 = vmatprep.subr.bf16.mxu0 %v16891_v29 }
 0x741   :  { %5626 = vmatmul.mubr.f32.gmra.mrb[184].mxu0 %v13427_v41  ;;  %v13433_v41 = vld [vmem:[%s16766_s3 + $0x1d0] sm:$0xff] }
 0x742   :  { %12756 = vmatpush3.bf16.msra.mxu0 %v16892_v43  ;;  %5630 = vmatprep.mubr.f32.mxu0 %v13428_v61  ;;  %v13434_v61 = vld [vmem:[%s16766_s3 + $0x1e8] sm:$0xff] }
 0x743   :  { %12758 = vmatprep.subr.bf16.mxu0 %v16893_v50 }
 0x745   :  { %5631 = vmatmul.mubr.f32.gmra.mrb[186].mxu0 %v13429_v63  ;;  %v13435_v63 = vld [vmem:[%s16766_s3 + $0x1e0] sm:$0xff] }
 0x746   :  { %12760 = vmatpush3.bf16.msra.mxu0 %v16894_v57  ;;  %5635 = vmatprep.mubr.f32.mxu0 %v13430_v10  ;;  %v13436_v10 = vld [vmem:[%s16766_s3 + $0x1f8] sm:$0xff] }
 0x747   :  { %12762 = vmatprep.subr.bf16.mxu0 %v16895_v0 }
 0x749   :  { %5636 = vmatmul.mubr.f32.gmra.mrb[188].mxu0 %v13431_v60  ;;  %v13437_v60 = vld [vmem:[%s16766_s3 + $0x1f0] sm:$0xff] }
 0x74a   :  { %12764 = vmatpush3.bf16.msra.mxu0 %v16896_v8  ;;  %5640 = vmatprep.mubr.f32.mxu0 %v13432_v18  ;;  %v13438_v18 = vld [vmem:[%s16766_s3 + $0x288] sm:$0xff] }
 0x74b   :  { %12766 = vmatprep.subr.bf16.mxu0 %v16897_v16 }
 0x74d   :  { %5641 = vmatmul.mubr.f32.gmra.mrb[190].mxu0 %v13433_v41  ;;  %v13439_v41 = vld [vmem:[%s16766_s3 + $0x280] sm:$0xff] }
 0x74e   :  { %12768 = vmatpush3.bf16.msra.mxu0 %v16898_v24  ;;  %5645 = vmatprep.mubr.f32.mxu0 %v13434_v61  ;;  %v13440_v61 = vld [vmem:[%s16766_s3 + $0x298] sm:$0xff] }
 0x74f   :  { %12770 = vmatprep.subr.bf16.mxu0 %v16899_v32 }
 0x751   :  { %5646 = vmatmul.mubr.f32.gmra.mrb[192].mxu0 %v13435_v63  ;;  %v13441_v63 = vld [vmem:[%s16766_s3 + $0x290] sm:$0xff] }
 0x752   :  { %12772 = vmatpush3.bf16.msra.mxu0 %v16900_v40  ;;  %5650 = vmatprep.mubr.f32.mxu0 %v13436_v10  ;;  %v13442_v10 = vld [vmem:[%s16766_s3 + $0x2a8] sm:$0xff] }
 0x753   :  { %12774 = vmatprep.subr.bf16.mxu0 %v16901_v48 }
 0x755   :  { %5651 = vmatmul.mubr.f32.gmra.mrb[194].mxu0 %v13437_v60  ;;  %v9987_v60 = vpop.f32.mrb[88].mxu1 }
 0x756   :  { %12776 = vmatpush3.bf16.msra.mxu0 %v16902_v56  ;;  %6099 = vmatprep.mubr.f32.mxu0 %v13438_v18  ;;  %v13443_v18 = vld [vmem:[%s16766_s3 + $0x2a0] sm:$0xff] }
 0x757   :  { %12786 = vmatprep.subr.bf16.mxu0 %v14444_v13 }
 0x759   :  { %6100 = vmatmul.mubr.f32.vlgmr.msra.gmra.mrb[196].mxu0 %v13439_v41  ;;  %v9988_v41 = vpop.f32.mrb[89].mxu1 }
 0x75a   :  { %12788 = vmatpush3.bf16.msra.mxu0 %v16888_v12  ;;  %6104 = vmatprep.mubr.f32.mxu0 %v13440_v61  ;;  %v13444_v61 = vld [vmem:[%s16766_s3 + $0x2b8] sm:$0xff] }
 0x75b   :  { %12790 = vmatprep.subr.bf16.mxu0 %v16889_v15 }
 0x75d   :  { %6105 = vmatmul.mubr.f32.gmra.mrb[198].mxu0 %v13441_v63  ;;  %v15905_v63 = vadd.f32 %v9988_v41, %v9987_v60  ;;  %v13447_v41 = vld [vmem:[%s16766_s3 + $0x2c0] sm:$0xff] }
 0x75e   :  { %12792 = vmatpush3.bf16.msra.mxu0 %v16890_v22  ;;  %6109 = vmatprep.mubr.f32.mxu0 %v13442_v10  ;;  %v9990_v10 = vpop.f32.mrb[90].mxu1 }
 0x75f   :  { %12794 = vmatprep.subr.bf16.mxu0 %v16891_v29  ;;  %v9991_v30 = vpop.f32.mrb[91].mxu1 }
 0x760   :  { %v15915_v58 = vadd.f32 %v9991_v30, %v9990_v10  ;;  %v9993_v60 = vpop.f32.mrb[92].mxu1  ;;  %v13449_v10 = vld [vmem:[%s16766_s3 + $0x2d0] sm:$0xff] }
 0x761   :  { %6110 = vmatmul.mubr.f32.gmra.mrb[200].mxu0 %v13443_v18  ;;  %v13446_v18 = vld [vmem:[%s16766_s3 + $0x2c8] sm:$0xff] }
 0x762   :  { %12796 = vmatpush3.bf16.msra.mxu0 %v16892_v43  ;;  %6114 = vmatprep.mubr.f32.mxu0 %v13444_v61  ;;  %v9994_v61 = vpop.f32.mrb[93].mxu1 }
 0x763   :  { %12798 = vmatprep.subr.bf16.mxu0 %v16893_v50  ;;  %v15925_v27 = vadd.f32 %v9994_v61, %v9993_v60  ;;  %v9996_v30 = vpop.f32.mrb[94].mxu1  ;;  %v13451_v61 = vld [vmem:[%s16766_s3 + $0x2e0] sm:$0xff] }
 0x765   :  { %6115 = vmatmul.mubr.f32.gmra.mrb[202].mxu0 %v13445_v53  ;;  %v13448_v53 = vld [vmem:[%s16766_s3 + $0x2d8] sm:$0xff] }
 0x766   :  { %12800 = vmatpush3.bf16.msra.mxu0 %v16894_v57  ;;  %6119 = vmatprep.mubr.f32.mxu0 %v13446_v18  ;;  %v9997_v18 = vpop.f32.mrb[95].mxu1 }
 0x767   :  { %12802 = vmatprep.subr.bf16.mxu0 %v16895_v0  ;;  %v15935_v1 = vadd.f32 %v9997_v18, %v9996_v30  ;;  %v9999_v60 = vpop.f32.mrb[96].mxu1 }
 0x769   :  { %6120 = vmatmul.mubr.f32.gmra.mrb[204].mxu0 %v13447_v41  ;;  %v13450_v41 = vld [vmem:[%s16766_s3 + $0x2e8] sm:$0xff] }
 0x76a   :  { %12804 = vmatpush3.bf16.msra.mxu0 %v16896_v8  ;;  %6124 = vmatprep.mubr.f32.mxu0 %v13448_v53  ;;  %v10000_v53 = vpop.f32.mrb[97].mxu1 }
 0x76b   :  { %12806 = vmatprep.subr.bf16.mxu0 %v16897_v16  ;;  %v15945_v54 = vadd.f32 %v10000_v53, %v9999_v60  ;;  %v10002_v30 = vpop.f32.mrb[98].mxu1 }
 0x76c   :  { %v10003_v18 = vpop.f32.mrb[99].mxu1 }
 0x76d   :  { %6125 = vmatmul.mubr.f32.gmra.mrb[206].mxu0 %v13449_v10  ;;  %v13452_v10 = vld [vmem:[%s16766_s3 + $0x2f8] sm:$0xff]  ;;  %v10005_v5 = vpop.f32.mrb[100].mxu1 }
 0x76e   :  { %12808 = vmatpush3.bf16.msra.mxu0 %v16898_v24  ;;  %6129 = vmatprep.mubr.f32.mxu0 %v13450_v41  ;;  %v13453_v41 = vld [vmem:[%s16766_s3 + $0x2f0] sm:$0xff]  ;;  %v10006_v60 = vpop.f32.mrb[101].mxu1 }
 0x76f   :  { %12810 = vmatprep.subr.bf16.mxu0 %v16899_v32  ;;  %v15958_v53 = vadd.f32 %v10006_v60, %v10005_v5  ;;  %v10008_v49 = vpop.f32.mrb[102].mxu1  ;;  %v13457_v5 = vld [vmem:[%s16766_s3 + $0x310] sm:$0xff] }
 0x770   :  { %v10009_v62 = vpop.f32.mrb[103].mxu1  ;;  %v13461_v60 = vld [vmem:[%s16766_s3 + $0x330] sm:$0xff] }
 0x771   :  { %6130 = vmatmul.mubr.f32.gmra.mrb[208].mxu0 %v13451_v61  ;;  %v15951_v61 = vadd.f32 %v10003_v18, %v10002_v30  ;;  %v13455_v30 = vld [vmem:[%s16766_s3 + $0x300] sm:$0xff]  ;;  %v15963_v18 = vadd.f32 %v10009_v62, %v10008_v49  ;;  %v13458_v62 = vld [vmem:[%s16766_s3 + $0x328] sm:$0xff] }
 0x772   :  { %12812 = vmatpush3.bf16.msra.mxu0 %v16900_v40  ;;  %6134 = vmatprep.mubr.f32.mxu0 %v13452_v10  ;;  %v13454_v10 = vld [vmem:[%s16766_s3 + $0x308] sm:$0xff]  ;;  %v13459_v49 = vld [vmem:[%s16766_s3 + $0x320] sm:$0xff] }
 0x773   :  { %12814 = vmatprep.subr.bf16.mxu0 %v16901_v48 }
 0x775   :  { %6135 = vmatmul.mubr.f32.gmra.mrb[210].mxu0 %v13453_v41  ;;  %v13456_v41 = vld [vmem:[%s16766_s3 + $0x318] sm:$0xff] }
 0x776   :  { %12816 = vmatpush3.bf16.msra.mxu0 %v16902_v56  ;;  %6341 = vmatprep.mubr.f32.mxu0 %v13454_v10  ;;  %v13460_v10 = vld [vmem:[%s16766_s3 + $0x338] sm:$0xff] }
 0x777   :  { %12826 = vmatprep.subr.bf16.mxu0 %v14444_v13 }
 0x779   :  { %6342 = vmatmul.mubr.f32.vlgmr.msra.gmra.mrb[212].mxu0 %v13455_v30  ;;  %v13462_v30 = vld [vmem:[%s16766_s3 + $0x348] sm:$0xff] }
 0x77a   :  { %12828 = vmatpush3.bf16.msra.mxu0 %v16888_v12  ;;  %6346 = vmatprep.mubr.f32.mxu0 %v13456_v41  ;;  %v13463_v41 = vld [vmem:[%s16766_s3 + $0x340] sm:$0xff] }
 0x77b   :  { %12830 = vmatprep.subr.bf16.mxu0 %v16889_v15 }
 0x77d   :  { %6347 = vmatmul.mubr.f32.gmra.mrb[214].mxu0 %v13457_v5  ;;  %v13464_v5 = vld [vmem:[%s16766_s3 + $0x358] sm:$0xff] }
 0x77e   :  { %12832 = vmatpush3.bf16.msra.mxu0 %v16890_v22  ;;  %6351 = vmatprep.mubr.f32.mxu0 %v13458_v62  ;;  %v13465_v62 = vld [vmem:[%s16766_s3 + $0x350] sm:$0xff] }
 0x77f   :  { %12834 = vmatprep.subr.bf16.mxu0 %v16891_v29 }
 0x781   :  { %6352 = vmatmul.mubr.f32.gmra.mrb[216].mxu0 %v13459_v49  ;;  %v13466_v49 = vld [vmem:[%s16766_s3 + $0x368] sm:$0xff] }
 0x782   :  { %12836 = vmatpush3.bf16.msra.mxu0 %v16892_v43  ;;  %6356 = vmatprep.mubr.f32.mxu0 %v13460_v10  ;;  %v13467_v10 = vld [vmem:[%s16766_s3 + $0x360] sm:$0xff] }
 0x783   :  { %12838 = vmatprep.subr.bf16.mxu0 %v16893_v50 }
 0x785   :  { %6357 = vmatmul.mubr.f32.gmra.mrb[218].mxu0 %v13461_v60  ;;  %v13468_v60 = vld [vmem:[%s16766_s3 + $0x378] sm:$0xff] }
 0x786   :  { %12840 = vmatpush3.bf16.msra.mxu0 %v16894_v57  ;;  %6361 = vmatprep.mubr.f32.mxu0 %v13462_v30  ;;  %v13469_v30 = vld [vmem:[%s16766_s3 + $0x370] sm:$0xff] }
 0x787   :  { %12842 = vmatprep.subr.bf16.mxu0 %v16895_v0 }
 0x789   :  { %6362 = vmatmul.mubr.f32.gmra.mrb[220].mxu0 %v13463_v41  ;;  %v13470_v41 = vld [vmem:[%s16766_s3 + $0x388] sm:$0xff] }
 0x78a   :  { %12844 = vmatpush3.bf16.msra.mxu0 %v16896_v8  ;;  %6366 = vmatprep.mubr.f32.mxu0 %v13464_v5  ;;  %v13471_v5 = vld [vmem:[%s16766_s3 + $0x380] sm:$0xff] }
 0x78b   :  { %12846 = vmatprep.subr.bf16.mxu0 %v16897_v16 }
 0x78d   :  { %6367 = vmatmul.mubr.f32.gmra.mrb[222].mxu0 %v13465_v62  ;;  %v13472_v62 = vld [vmem:[%s16766_s3 + $0x398] sm:$0xff] }
 0x78e   :  { %12848 = vmatpush3.bf16.msra.mxu0 %v16898_v24  ;;  %6371 = vmatprep.mubr.f32.mxu0 %v13466_v49  ;;  %v13473_v49 = vld [vmem:[%s16766_s3 + $0x390] sm:$0xff] }
 0x78f   :  { %12850 = vmatprep.subr.bf16.mxu0 %v16899_v32 }
 0x791   :  { %6372 = vmatmul.mubr.f32.gmra.mrb[224].mxu0 %v13467_v10  ;;  %v13474_v10 = vld [vmem:[%s16766_s3 + $0x3a8] sm:$0xff] }
 0x792   :  { %12852 = vmatpush3.bf16.msra.mxu0 %v16900_v40  ;;  %6376 = vmatprep.mubr.f32.mxu0 %v13468_v60  ;;  %v13475_v60 = vld [vmem:[%s16766_s3 + $0x3a0] sm:$0xff] }
 0x793   :  { %12854 = vmatprep.subr.bf16.mxu0 %v16901_v48 }
 0x795   :  { %6377 = vmatmul.mubr.f32.gmra.mrb[226].mxu0 %v13469_v30  ;;  %v13476_v30 = vld [vmem:[%s16766_s3 + $0x3b8] sm:$0xff] }
 0x796   :  { %12856 = vmatpush3.bf16.msra.mxu0 %v16902_v56  ;;  %6583 = vmatprep.mubr.f32.mxu0 %v13470_v41  ;;  %v13477_v41 = vld [vmem:[%s16766_s3 + $0x3b0] sm:$0xff] }
 0x797   :  { %12866 = vmatprep.subr.bf16.mxu0 %v14444_v13 }
 0x799   :  { %6584 = vmatmul.mubr.f32.vlgmr.msra.gmra.mrb[228].mxu0 %v13471_v5  ;;  %v13478_v5 = vld [vmem:[%s16766_s3 + $0x3c8] sm:$0xff] }
 0x79a   :  { %12868 = vmatpush3.bf16.msra.mxu0 %v16888_v12  ;;  %6588 = vmatprep.mubr.f32.mxu0 %v13472_v62  ;;  %v13479_v62 = vld [vmem:[%s16766_s3 + $0x3c0] sm:$0xff] }
 0x79b   :  { %12870 = vmatprep.subr.bf16.mxu0 %v16889_v15 }
 0x79d   :  { %6589 = vmatmul.mubr.f32.gmra.mrb[230].mxu0 %v13473_v49  ;;  %v8980_v49 = vld [vmem:[%s16771_s8] ss:$0 sm:$0xff] }
 0x79e   :  { %12872 = vmatpush3.bf16.msra.mxu0 %v16890_v22  ;;  %6593 = vmatprep.mubr.f32.mxu0 %v13474_v10  ;;  %v13480_v10 = vld [vmem:[%s16766_s3 + $0x3d8] sm:$0xff] }
 0x79f   :  { %12874 = vmatprep.subr.bf16.mxu0 %v16891_v29 }
 0x7a1   :  { %6594 = vmatmul.mubr.f32.gmra.mrb[232].mxu0 %v13475_v60 }
 0x7a2   :  { %12876 = vmatpush3.bf16.msra.mxu0 %v16892_v43  ;;  %6598 = vmatprep.mubr.f32.mxu0 %v13476_v30 }
 0x7a3   :  { %12878 = vmatprep.subr.bf16.mxu0 %v16893_v50 }
 0x7a5   :  { %6599 = vmatmul.mubr.f32.gmra.mrb[234].mxu0 %v13477_v41 }
 0x7a6   :  { %12880 = vmatpush3.bf16.msra.mxu0 %v16894_v57  ;;  %6603 = vmatprep.mubr.f32.mxu0 %v13478_v5  ;;  %v8984_v5 = vld [vmem:[%s16772_s9 + $0x18] sm:$0xff] }
 0x7a7   :  { %12882 = vmatprep.subr.bf16.mxu0 %v16895_v0 }
 0x7a9   :  { %6604 = vmatmul.mubr.f32.gmra.mrb[236].mxu0 %v13479_v62  ;;  %v4748_v62 = vld [vmem:[%s16772_s9 + $0x8] sm:$0xff] }
 0x7aa   :  { %12884 = vmatpush3.bf16.msra.mxu0 %v16896_v8  ;;  %6608 = vmatprep.mubr.f32.mxu0 %v13480_v10  ;;  %v8983_v10 = vld [vmem:[%s16772_s9 + $0x10] sm:$0xff] }
 0x7ab   :  { %12886 = vmatprep.subr.bf16.mxu0 %v16897_v16 }
 0x7ac   :  { %v11368_v60 = vpop.f32.mrb[146].mxu0 }
 0x7ad   :  { %v4737_v30 = vadd.f32 %v11368_v60, %v8980_v49  ;;  %v4718_v41 = vpop.f32.mrb[147].mxu0  ;;  %6609 = vmatmul.mubr.f32.gmra.mrb[238].mxu0 %v13481_v37  ;;  %v8986_v60 = vld [vmem:[%s16774_s11 + $0x18] sm:$0xff] }
 0x7ae   :  { %v4736_v23 = vadd.f32 %v8980_v49, %v4718_v41  ;;  %12888 = vmatpush3.bf16.msra.mxu0 %v16898_v24  ;;  %6613 = vmatprep.mubr.f32.mxu0 %v13482_v59  ;;  %v4747_v49 = vld [vmem:[%s16772_s9] sm:$0xff]  ;;  %v8985_v41 = vld [vmem:[%s16774_s11 + $0x10] sm:$0xff] }
 0x7af   :  { %v4739_v37 = vmax.f32 %v4737_v30, 0.0  ;;  %12890 = vmatprep.subr.bf16.mxu0 %v16899_v32  ;;  %v13483_v30 = vld [vmem:[%s16766_s3 + $0x3e0] sm:$0xff] }
 0x7b0   :  { %v4738_v42 = vmax.f32 %v4736_v23, 0.0  ;;  %v13484_v23 = vld [vmem:[%s16766_s3 + $0x3f8] sm:$0xff] }
 0x7b1   :  { %v4788_v20 = vmul.f32 %v8984_v5, %v4739_v37  ;;  %v4750_v7 = vmul.f32 %v4748_v62, %v4739_v37  ;;  %v4803_v51 = vmul.f32 %v8986_v60, %v4739_v37  ;;  %v4764_v59 = vmul.f32 %v4762_v45, %v4739_v37  ;;  %6614 = vmatmul.mubr.f32.gmra.mrb[240].mxu0 %v13483_v30  ;;  %v13485_v37 = vld [vmem:[%s16766_s3 + $0x3f0] sm:$0xff] }
 0x7b2   :  { %12892 = vmatpush3.bf16.msra.mxu0 %v16900_v40  ;;  %v4787_v33 = vmul.f32 %v8983_v10, %v4738_v42  ;;  %v4749_v11 = vmul.f32 %v4747_v49, %v4738_v42  ;;  %v4802_v35 = vmul.f32 %v8985_v41, %v4738_v42  ;;  %v4763_v6 = vmul.f32 %v4761_v2, %v4738_v42  ;;  %v13486_v42 = vld [vmem:[%s16766_s3 + $0x408] sm:$0xff]  ;;  %v13497_v49 = vld [vmem:[%s16766_s3 + $0x450] sm:$0xff] }
 0x7b3   :  { %12894 = vmatprep.subr.bf16.mxu0 %v16901_v48  ;;  %6618 = vmatprep.mubr.f32.mxu0 %v13484_v23  ;;  %v13498_v41 = vld [vmem:[%s16766_s3 + $0x468] sm:$0xff]  ;;  %v13499_v23 = vld [vmem:[%s16766_s3 + $0x460] sm:$0xff] }
 0x7b4   :  { %v4789_v5 = vadd.f32 %v4788_v20, %v4787_v33  ;;  %v4751_v45 = vadd.f32 %v4750_v7, %v4749_v11  ;;  %v4804_v62 = vadd.f32 %v4803_v51, %v4802_v35  ;;  %v4765_v60 = vadd.f32 %v4764_v59, %v4763_v6  ;;  %v13487_v6 = vld [vmem:[%s16766_s3 + $0x400] sm:$0xff]  ;;  %v13488_v35 = vld [vmem:[%s16766_s3 + $0x418] sm:$0xff]  ;;  %v13489_v11 = vld [vmem:[%s16766_s3 + $0x410] sm:$0xff] }
 0x7b5   :  { %6619 = vmatmul.mubr.f32.gmra.mrb[242].mxu0 %v13485_v37  ;;  %v13490_v33 = vld [vmem:[%s16766_s3 + $0x428] sm:$0xff]  ;;  %v13492_v51 = vld [vmem:[%s16766_s3 + $0x438] sm:$0xff]  ;;  %v13501_v37 = vld [vmem:[%s16766_s3 + $0x470] sm:$0xff] }
 0x7b6   :  { %12896 = vmatpush3.bf16.msra.mxu0 %v16902_v56  ;;  %4790 = vadd.xlane.f32.xlu1 %v4789_v5  ;;  %v13494_v7 = vld [vmem:[%s16766_s3 + $0x448] sm:$0xff]  ;;  %v13496_v20 = vld [vmem:[%s16766_s3 + $0x458] sm:$0xff] }
 0x7b7   :  { %4752 = vadd.xlane.f32.xlu0 %v4751_v45  ;;  %6825 = vmatprep.mubr.f32.mxu0 %v13486_v42  ;;  %v13500_v45 = vld [vmem:[%s16766_s3 + $0x478] sm:$0xff] }
 0x7b8   :  { %12938 = vmatprep.subr.bf16.mxu0 %v15139_v46 }
 0x7b9   :  { %6826 = vmatmul.mubr.f32.vlgmr.msra.gmra.mrb[244].mxu0 %v13487_v6  ;;  %v16932_v6 = vld [vmem:[#allocation27_spill] sm:$0xff] }
 0x7ba   :  { %4805 = vadd.xlane.f32.xlu1 %v4804_v62  ;;  %6830 = vmatprep.mubr.f32.mxu0 %v13488_v35 }
 0x7bb   :  { %4766 = vadd.xlane.f32.xlu0 %v4765_v60  ;;  %12940 = vmatpush3.bf16.msra.mxu0 %v15139_v46  ;;  %v13491_v46 = vld [vmem:[%s16766_s3 + $0x420] sm:$0xff] }
 0x7bc   :  { %12942 = vmatprep.subr.bf16.mxu0 %v15144_v55 }
 0x7bd   :  { %6831 = vmatmul.mubr.f32.gmra.mrb[246].mxu0 %v13489_v11 }
 0x7be   :  { %6835 = vmatprep.mubr.f32.mxu0 %v13490_v33 }
 0x7bf   :  { %12944 = vmatpush3.bf16.msra.mxu0 %v15144_v55  ;;  %v13493_v55 = vld [vmem:[%s16766_s3 + $0x430] sm:$0xff] }
 0x7c0   :  { %12946 = vmatprep.subr.bf16.mxu0 %v15159_v17 }
 0x7c1   :  { %6836 = vmatmul.mubr.f32.gmra.mrb[248].mxu0 %v13491_v46  ;;  %v16933_v46 = vld [vmem:[#allocation28_spill] sm:$0xff] }
 0x7c2   :  { %6840 = vmatprep.mubr.f32.mxu0 %v13492_v51 }
 0x7c3   :  { %12948 = vmatpush3.bf16.msra.mxu0 %v15159_v17  ;;  %v13495_v17 = vld [vmem:[%s16766_s3 + $0x440] sm:$0xff] }
 0x7c4   :  { %12950 = vmatprep.subr.bf16.mxu0 %v15171_v19 }
 0x7c5   :  { %6841 = vmatmul.mubr.f32.gmra.mrb[250].mxu0 %v13493_v55 }
 0x7c6   :  { %6845 = vmatprep.mubr.f32.mxu0 %v13494_v7 }
 0x7c7   :  { %12952 = vmatpush3.bf16.msra.mxu0 %v15171_v19 }
 0x7c8   :  { %12954 = vmatprep.subr.bf16.mxu0 %v15244_v39 }
 0x7c9   :  { %6846 = vmatmul.mubr.f32.gmra.mrb[252].mxu0 %v13495_v17 }
 0x7ca   :  { %6850 = vmatprep.mubr.f32.mxu0 %v13496_v20 }
 0x7cc   :  { %v10043_v2 = vpop.f32.mrb[148].mxu0 }
 0x7cd   :  { %v10044_v10 = vpop.f32.mrb[149].mxu0  ;;  %6851 = vmatmul.mubr.f32.gmra.mrb[254].mxu0 %v13497_v49 }
 0x7ce   :  { %v10045_v19 = vadd.f32 %v10044_v10, %v10043_v2  ;;  %6855 = vmatprep.mubr.f32.mxu0 %v13498_v41 }
 0x7d0   :  { %v10046_v59 = vpop.f32.mrb[150].mxu0  ;;  %11377 = vmatprep.mubr.msk.f32.mxu1 %vm1020_vm4, %v10045_v19 }
 0x7d1   :  { %v10047_v30 = vpop.f32.mrb[151].mxu0  ;;  %6856 = vmatmul.mubr.f32.gmra.mrb[0].mxu0 %v13499_v23 }
 0x7d2   :  { %v10048_v5 = vadd.f32 %v10047_v30, %v10046_v59  ;;  %6860 = vmatprep.mubr.f32.mxu0 %v13500_v45 }
 0x7d4   :  { %v10049_v62 = vpop.f32.mrb[152].mxu0  ;;  %11378 = vmatmul.mubr.msk.f32.vlgmr.msra.gmra.mrb[104].mxu1 %vm1020_vm4, %v10048_v5 }
 0x7d5   :  { %v10050_v60 = vpop.f32.mrb[153].mxu0  ;;  %12620 = vmatpush3.bf16.msra.mxu1 %v16905_v21  ;;  %6861 = vmatmul.mubr.f32.gmra.mrb[2].mxu0 %v13501_v37 }
 0x7d6   :  { %v10051_v42 = vadd.f32 %v10050_v60, %v10049_v62  ;;  %12622 = vmatprep.subr.bf16.mxu1 %v16932_v6  ;;  %v16934_v60 = vld [vmem:[#allocation29_spill] sm:$0xff] }
 0x7d8   :  { %v10052_v35 = vpop.f32.mrb[154].mxu0  ;;  %11380 = vmatprep.mubr.msk.f32.mxu1 %vm1020_vm4, %v10051_v42 }
 0x7d9   :  { %v10053_v11 = vpop.f32.mrb[155].mxu0  ;;  %12624 = vmatpush3.bf16.msra.mxu1 %v16932_v6 }
 0x7da   :  { %v10054_v33 = vadd.f32 %v10053_v11, %v10052_v35  ;;  %12658 = vmatprep.subr.bf16.mxu1 %v16933_v46 }
 0x7dc   :  { %v10055_v51 = vpop.f32.mrb[156].mxu0  ;;  %11381 = vmatmul.mubr.msk.f32.gmra.mrb[106].mxu1 %vm1020_vm4, %v10054_v33 }
 0x7dd   :  { %v10056_v21 = vpop.f32.mrb[157].mxu0 }
 0x7de   :  { %v10057_v55 = vadd.f32 %v10056_v21, %v10055_v51  ;;  %v16936_v51 = vld [vmem:[#allocation31_spill] sm:$0xff] }
 0x7e0   :  { %v10058_v7 = vpop.f32.mrb[158].mxu0  ;;  %11383 = vmatprep.mubr.msk.f32.mxu1 %vm1020_vm4, %v10057_v55 }
 0x7e1   :  { %v10059_v17 = vpop.f32.mrb[159].mxu0 }
 0x7e2   :  { %v10060_v20 = vadd.f32 %v10059_v17, %v10058_v7 }
 0x7e4   :  { %v10061_v2 = vpop.f32.mrb[160].mxu0  ;;  %11384 = vmatmul.mubr.msk.f32.gmra.mrb[108].mxu1 %vm1020_vm4, %v10060_v20 }
 0x7e5   :  { %v10062_v10 = vpop.f32.mrb[161].mxu0 }
 0x7e6   :  { %v10063_v49 = vadd.f32 %v10062_v10, %v10061_v2 }
 0x7e8   :  { %v10064_v19 = vpop.f32.mrb[162].mxu0  ;;  %11386 = vmatprep.mubr.msk.f32.mxu1 %vm1020_vm4, %v10063_v49 }
 0x7e9   :  { %v10065_v41 = vpop.f32.mrb[163].mxu0 }
 0x7ea   :  { %v10066_v59 = vadd.f32 %v10065_v41, %v10064_v19 }
 0x7ec   :  { %11387 = vmatmul.mubr.msk.f32.gmra.mrb[110].mxu1 %vm1020_vm4, %v10066_v59  ;;  %v10123_v30 = vpop.f32.mrb[164].mxu0 }
 0x7ed   :  { %11397 = vmatprep.mubr.msk.f32.mxu1 %vm1020_vm4, %v15905_v63  ;;  %v10124_v23 = vpop.f32.mrb[165].mxu0  ;;  %v16935_v63 = vld [vmem:[#allocation30_spill] sm:$0xff] }
 0x7ee   :  { %v10125_v5 = vadd.f32 %v10124_v23, %v10123_v30 }
 0x7f0   :  { %11398 = vmatmul.mubr.msk.f32.vlgmr.msra.gmra.mrb[104].mxu1 %vm1020_vm4, %v15915_v58  ;;  %v10126_v45 = vpop.f32.mrb[166].mxu0 }
 0x7f1   :  { %11400 = vmatprep.mubr.msk.f32.mxu1 %vm1020_vm4, %v15925_v27  ;;  %12660 = vmatpush3.bf16.msra.mxu1 %v16933_v46  ;;  %v10127_v62 = vpop.f32.mrb[167].mxu0 }
 0x7f2   :  { %12662 = vmatprep.subr.bf16.mxu1 %v16934_v60  ;;  %v10128_v37 = vadd.f32 %v10127_v62, %v10126_v45 }
 0x7f4   :  { %11401 = vmatmul.mubr.msk.f32.gmra.mrb[106].mxu1 %vm1020_vm4, %v15935_v1  ;;  %v10129_v42 = vpop.f32.mrb[168].mxu0 }
 0x7f5   :  { %11403 = vmatprep.mubr.msk.f32.mxu1 %vm1020_vm4, %v15945_v54  ;;  %12664 = vmatpush3.bf16.msra.mxu1 %v16934_v60  ;;  %v10130_v58 = vpop.f32.mrb[169].mxu0 }
 0x7f6   :  { %12698 = vmatprep.subr.bf16.mxu1 %v16935_v63  ;;  %v10131_v6 = vadd.f32 %v10130_v58, %v10129_v42 }
 0x7f8   :  { %11404 = vmatmul.mubr.msk.f32.gmra.mrb[108].mxu1 %vm1020_vm4, %v15951_v61  ;;  %v10132_v27 = vpop.f32.mrb[170].mxu0 }
 0x7f9   :  { %11406 = vmatprep.mubr.msk.f32.mxu1 %vm1020_vm4, %v15958_v53  ;;  %v10133_v35 = vpop.f32.mrb[171].mxu0 }
 0x7fa   :  { %v10134_v11 = vadd.f32 %v10133_v35, %v10132_v27  ;;  %v16937_v35 = vld [vmem:[#allocation32_spill] sm:$0xff] }
 0x7fc   :  { %11407 = vmatmul.mubr.msk.f32.gmra.mrb[110].mxu1 %vm1020_vm4, %v15963_v18  ;;  %v10135_v1 = vpop.f32.mrb[172].mxu0 }
 0x7fd   :  { %11417 = vmatprep.mubr.msk.f32.mxu1 %vm1020_vm4, %v10125_v5  ;;  %v10136_v54 = vpop.f32.mrb[173].mxu0 }
 0x7fe   :  { %v10137_v33 = vadd.f32 %v10136_v54, %v10135_v1  ;;  %v13505_v54 = vld [vmem:[%s16766_s3 + $0x210] sm:$0xff] }
 0x800   :  { %11418 = vmatmul.mubr.msk.f32.vlgmr.msra.gmra.mrb[104].mxu1 %vm1020_vm4, %v10128_v37  ;;  %v10138_v46 = vpop.f32.mrb[174].mxu0 }
 0x801   :  { %12700 = vmatpush3.bf16.msra.mxu1 %v16935_v63  ;;  %11420 = vmatprep.mubr.msk.f32.mxu1 %vm1020_vm4, %v10131_v6  ;;  %v10139_v61 = vpop.f32.mrb[175].mxu0 }
 0x802   :  { %12702 = vmatprep.subr.bf16.mxu1 %v16936_v51  ;;  %v10140_v53 = vadd.f32 %v10139_v61, %v10138_v46  ;;  %v13506_v46 = vld [vmem:[%s16766_s3 + $0x228] sm:$0xff] }
 0x804   :  { %11421 = vmatmul.mubr.msk.f32.gmra.mrb[106].mxu1 %vm1020_vm4, %v10134_v11  ;;  %v10141_v21 = vpop.f32.mrb[176].mxu0 }
 0x805   :  { %12704 = vmatpush3.bf16.msra.mxu1 %v16936_v51  ;;  %v10142_v18 = vpop.f32.mrb[177].mxu0  ;;  %11423 = vmatprep.mubr.msk.f32.mxu1 %vm1020_vm4, %v10137_v33 }
 0x806   :  { %12706 = vmatprep.subr.bf16.mxu1 %v14444_v13  ;;  %v10143_v55 = vadd.f32 %v10142_v18, %v10141_v21  ;;  %v13508_v18 = vld [vmem:[%s16766_s3 + $0x238] sm:$0xff] }
 0x808   :  { %v10144_v7 = vpop.f32.mrb[178].mxu0  ;;  %11424 = vmatmul.mubr.msk.f32.gmra.mrb[108].mxu1 %vm1020_vm4, %v10140_v53  ;;  %v13507_v53 = vld [vmem:[%s16766_s3 + $0x220] sm:$0xff] }
 0x809   :  { %v10145_v17 = vpop.f32.mrb[179].mxu0  ;;  %11426 = vmatprep.mubr.msk.f32.mxu1 %vm1020_vm4, %v10143_v55 }
 0x80a   :  { %v10146_v20 = vadd.f32 %v10145_v17, %v10144_v7 }
 0x80c   :  { %v10191_v2 = vpop.f32.mrb[180].mxu0  ;;  %11427 = vmatmul.mubr.msk.f32.gmra.mrb[110].mxu1 %vm1020_vm4, %v10146_v20  ;;  %v13510_v20 = vld [vmem:[%s16766_s3 + $0x248] sm:$0xff] }
 0x80d   :  { %v10192_v10 = vpop.f32.mrb[181].mxu0 }
 0x80e   :  { %v10193_v49 = vadd.f32 %v10192_v10, %v10191_v2 }
 0x810   :  { %v10194_v19 = vpop.f32.mrb[182].mxu0  ;;  %11437 = vmatprep.mubr.msk.f32.mxu1 %vm1020_vm4, %v10193_v49 }
 0x811   :  { %v10195_v41 = vpop.f32.mrb[183].mxu0 }
 0x812   :  { %v10196_v59 = vadd.f32 %v10195_v41, %v10194_v19  ;;  %v13511_v19 = vld [vmem:[%s16766_s3 + $0x240] sm:$0xff] }
 0x814   :  { %11438 = vmatmul.mubr.msk.f32.vlgmr.msra.gmra.mrb[104].mxu1 %vm1020_vm4, %v10196_v59  ;;  %v10197_v13 = vpop.f32.mrb[184].mxu0 }
 0x815   :  { %12708 = vmatpush3.bf16.msra.mxu1 %v16888_v12  ;;  %v10198_v30 = vpop.f32.mrb[185].mxu0 }
 0x816   :  { %12710 = vmatprep.subr.bf16.mxu1 %v16889_v15  ;;  %v10199_v23 = vadd.f32 %v10198_v30, %v10197_v13 }
 0x818   :  { %v10200_v5 = vpop.f32.mrb[186].mxu0  ;;  %11440 = vmatprep.mubr.msk.f32.mxu1 %vm1020_vm4, %v10199_v23  ;;  %v13512_v23 = vld [vmem:[%s16766_s3 + $0x258] sm:$0xff] }
 0x819   :  { %12712 = vmatpush3.bf16.msra.mxu1 %v16890_v22  ;;  %v10201_v45 = vpop.f32.mrb[187].mxu0 }
 0x81a   :  { %12714 = vmatprep.subr.bf16.mxu1 %v16891_v29  ;;  %v10202_v62 = vadd.f32 %v10201_v45, %v10200_v5 }
 0x81c   :  { %v10203_v60 = vpop.f32.mrb[188].mxu0  ;;  %11441 = vmatmul.mubr.msk.f32.gmra.mrb[106].mxu1 %vm1020_vm4, %v10202_v62 }
 0x81d   :  { %12716 = vmatpush3.bf16.msra.mxu1 %v16892_v43  ;;  %v10204_v37 = vpop.f32.mrb[189].mxu0 }
 0x81e   :  { %12718 = vmatprep.subr.bf16.mxu1 %v16893_v50  ;;  %v10205_v12 = vadd.f32 %v10204_v37, %v10203_v60 }
 0x820   :  { %v10206_v15 = vpop.f32.mrb[190].mxu0  ;;  %11443 = vmatprep.mubr.msk.f32.mxu1 %vm1020_vm4, %v10205_v12 }
 0x821   :  { %12720 = vmatpush3.bf16.msra.mxu1 %v16894_v57  ;;  %v10207_v42 = vpop.f32.mrb[191].mxu0 }
 0x822   :  { %12722 = vmatprep.subr.bf16.mxu1 %v16895_v0  ;;  %v10208_v22 = vadd.f32 %v10207_v42, %v10206_v15  ;;  %v13513_v15 = vld [vmem:[%s16766_s3 + $0x250] sm:$0xff] }
 0x824   :  { %v10209_v29 = vpop.f32.mrb[192].mxu0  ;;  %11444 = vmatmul.mubr.msk.f32.gmra.mrb[108].mxu1 %vm1020_vm4, %v10208_v22 }
 0x825   :  { %12724 = vmatpush3.bf16.msra.mxu1 %v16896_v8  ;;  %v10210_v58 = vpop.f32.mrb[193].mxu0  ;;  %v13502_v8 = vld [vmem:[%s16766_s3 + $0x208] sm:$0xff] }
 0x826   :  { %12726 = vmatprep.subr.bf16.mxu1 %v16897_v16  ;;  %v10211_v43 = vadd.f32 %v10210_v58, %v10209_v29 }
 0x828   :  { %v10212_v50 = vpop.f32.mrb[194].mxu0  ;;  %11446 = vmatprep.mubr.msk.f32.mxu1 %vm1020_vm4, %v10211_v43  ;;  %v13514_v43 = vld [vmem:[%s16766_s3 + $0x268] sm:$0xff] }
 0x829   :  { %12728 = vmatpush3.bf16.msra.mxu1 %v16898_v24  ;;  %v10213_v63 = vpop.f32.mrb[195].mxu0 }
 0x82a   :  { %12730 = vmatprep.subr.bf16.mxu1 %v16899_v32  ;;  %v10214_v57 = vadd.f32 %v10213_v63, %v10212_v50 }
 0x82c   :  { %11447 = vmatmul.mubr.msk.f32.gmra.mrb[110].mxu1 %vm1020_vm4, %v10214_v57  ;;  %v10327_v0 = vpop.f32.mrb[196].mxu0 }
 0x82d   :  { %12732 = vmatpush3.bf16.msra.mxu1 %v16900_v40  ;;  %5857 = vmatprep.mubr.f32.mxu1 %v13502_v8  ;;  %v10328_v16 = vpop.f32.mrb[197].mxu0  ;;  %v13503_v40 = vld [vmem:[%s16766_s3 + $0x200] sm:$0xff] }
 0x82e   :  { %12734 = vmatprep.subr.bf16.mxu1 %v16901_v48  ;;  %v16239_v6 = vadd.f32 %v10328_v16, %v10327_v0  ;;  %v13504_v48 = vld [vmem:[%s16766_s3 + $0x218] sm:$0xff]  ;;  %v13515_v8 = vld [vmem:[%s16766_s3 + $0x260] sm:$0xff] }
 0x830   :  { %v10330_v24 = vpop.f32.mrb[198].mxu0 }
 0x831   :  { %12736 = vmatpush3.bf16.msra.mxu1 %v16902_v56  ;;  %v10331_v32 = vpop.f32.mrb[199].mxu0 }
 0x832   :  { %v16242_v27 = vadd.f32 %v10331_v32, %v10330_v24  ;;  %12738 = vmatprep.subr.bf16.mxu1 %v16937_v35  ;;  %v13516_v32 = vld [vmem:[%s16766_s3 + $0x278] sm:$0xff] }
 0x834   :  { %5858 = vmatmul.mubr.f32.vlgmr.msra.gmra.mrb[112].mxu1 %v13503_v40  ;;  %v10333_v11 = vpop.f32.mrb[200].mxu0 }
 0x835   :  { %5862 = vmatprep.mubr.f32.mxu1 %v13504_v48  ;;  %v10334_v1 = vpop.f32.mrb[201].mxu0  ;;  %12740 = vmatpush3.bf16.msra.mxu1 %v16937_v35 }
 0x836   :  { %v16252_v56 = vadd.f32 %v10334_v1, %v10333_v11  ;;  %12742 = vmatprep.subr.bf16.mxu1 %v14840_v38  ;;  %v13517_v1 = vld [vmem:[%s16766_s3 + $0x270] sm:$0xff] }
 0x838   :  { %5863 = vmatmul.mubr.f32.gmra.mrb[114].mxu1 %v13505_v54  ;;  %v10336_v33 = vpop.f32.mrb[202].mxu0 }
 0x839   :  { %5867 = vmatprep.mubr.f32.mxu1 %v13506_v46  ;;  %v10337_v61 = vpop.f32.mrb[203].mxu0  ;;  %12744 = vmatpush3.bf16.msra.mxu1 %v14840_v38  ;;  %v13509_v38 = vld [vmem:[%s16766_s3 + $0x230] sm:$0xff]  ;;  %s8550_s3 = sshll.u32 %s13620_s22, 4  ;;  %s16714_s3 = int_to_ptr.vmem [resolvable:$true] %s8550_s3 }
 0x83a   :  { %v16262_v51 = vadd.f32 %v10337_v61, %v10336_v33  ;;  %12778 = vmatprep.subr.bf16.mxu1 %v14851_v4 }
 0x83c   :  { %5868 = vmatmul.mubr.f32.gmra.mrb[116].mxu1 %v13507_v53  ;;  %v10339_v21 = vpop.f32.mrb[204].mxu0 }
 0x83d   :  { %5872 = vmatprep.mubr.f32.mxu1 %v13508_v18  ;;  %v10340_v55 = vpop.f32.mrb[205].mxu0 }
 0x83e   :  { %v16271_v7 = vadd.f32 %v10340_v55, %v10339_v21 }
 0x840   :  { %5873 = vmatmul.mubr.f32.gmra.mrb[118].mxu1 %v13509_v38  ;;  %v10342_v17 = vpop.f32.mrb[206].mxu0 }
 0x841   :  { %5877 = vmatprep.mubr.f32.mxu1 %v13510_v20  ;;  %v10343_v2 = vpop.f32.mrb[207].mxu0 }
 0x842   :  { %v16279_v10 = vadd.f32 %v10343_v2, %v10342_v17 }
 0x843   :  { %v4791_v49 = vpop.xlane.xlu1 %4790 }
 0x844   :  { %5878 = vmatmul.mubr.f32.gmra.mrb[120].mxu1 %v13511_v19  ;;  %v4792_v41 = vrot.slane %v4791_v49, 4  ;;  %v4753_v59 = vpop.xlane.xlu0 %4752  ;;  %v10345_v13 = vpop.f32.mrb[208].mxu0 }
 0x845   :  { %v4754_v30 = vrot.slane %v4753_v59, 4  ;;  %5882 = vmatprep.mubr.f32.mxu1 %v13512_v23  ;;  %v10346_v5 = vpop.f32.mrb[209].mxu0 }
 0x846   :  { %v4793_v45 = vadd.f32 %v4792_v41, %v4791_v49  ;;  %v16287_v62 = vadd.f32 %v10346_v5, %v10345_v13 }
 0x847   :  { %v4755_v60 = vadd.f32 %v4754_v30, %v4753_v59  ;;  %v4806_v37 = vpop.xlane.xlu1 %4805 }
 0x848   :  { %v4794_v12 = vrot.slane %v4793_v45, 2  ;;  %5883 = vmatmul.mubr.f32.gmra.mrb[122].mxu1 %v13513_v15  ;;  %v4807_v42 = vrot.slane %v4806_v37, 4  ;;  %v4767_v22 = vpop.xlane.xlu0 %4766  ;;  %v10348_v18 = vpop.f32.mrb[210].mxu0 }
 0x849   :  { %v4756_v29 = vrot.slane %v4755_v60, 2  ;;  %v4768_v58 = vrot.slane %v4767_v22, 4  ;;  %5887 = vmatprep.mubr.f32.mxu1 %v13514_v43  ;;  %v10349_v55 = vpop.f32.mrb[211].mxu0 }
 0x84a   :  { %v4808_v50 = vadd.f32 %v4807_v42, %v4806_v37  ;;  %v4795_v16 = vadd.f32 %v4794_v12, %v4793_v45  ;;  %v16304_v38 = vadd.f32 %v10349_v55, %v10348_v18 }
 0x84b   :  { %v4769_v63 = vadd.f32 %v4768_v58, %v4767_v22  ;;  %v4757_v57 = vadd.f32 %v4756_v29, %v4755_v60 }
 0x84c   :  { %v4809_v0 = vrot.slane %v4808_v50, 2  ;;  %5888 = vmatmul.mubr.f32.gmra.mrb[124].mxu1 %v13515_v8  ;;  %v4796_v54 = vrot.slane %v4795_v16, 1  ;;  %v10395_v17 = vpop.f32.mrb[212].mxu0 }
 0x84d   :  { %v4770_v24 = vrot.slane %v4769_v63, 2  ;;  %5892 = vmatprep.mubr.f32.mxu1 %v13516_v32  ;;  %v4758_v35 = vrot.slane %v4757_v57, 1  ;;  %v10396_v20 = vpop.f32.mrb[213].mxu0 }
 0x84e   :  { %v4810_v40 = vadd.f32 %v4809_v0, %v4808_v50  ;;  %v4797_v21 = vadd.f32 %v4796_v54, %v4795_v16  ;;  %v16306_v2 = vadd.f32 %v10396_v20, %v10395_v17 }
 0x84f   :  { %v4759_v11 = vadd.f32 %v4758_v35, %v4757_v57  ;;  %v4771_v48 = vadd.f32 %v4770_v24, %v4769_v63 }
 0x850   :  { %5893 = vmatmul.mubr.f32.gmra.mrb[126].mxu1 %v13517_v1  ;;  %v4811_v33 = vrot.slane %v4810_v40, 1  ;;  %v10398_v49 = vpop.f32.mrb[214].mxu0 }
 0x851   :  { %13353 = vpush %v4759_v11  ;;  %v4772_v46 = vrot.slane %v4771_v48, 1  ;;  %v10399_v19 = vpop.f32.mrb[215].mxu0 }
 0x852   :  { %v4812_v53 = vadd.f32 %v4811_v33, %v4810_v40  ;;  %v16308_v41 = vadd.f32 %v10399_v19, %v10398_v49 }
 0x853   :  { %v4773_v61 = vadd.f32 %v4772_v46, %v4771_v48 }
 0x854   :  { %v10401_v59 = vpop.f32.mrb[216].mxu0 }
 0x855   :  { %13355 = vpush %v4773_v61  ;;  %v10402_v13 = vpop.f32.mrb[217].mxu0 }
 0x856   :  { %13357 = vpush %v4797_v21  ;;  %v16310_v30 = vadd.f32 %v10402_v13, %v10401_v59 }
 0x857   :  { %13359 = vpush %v4812_v53 }
 0x858   :  { %v10404_v23 = vpop.f32.mrb[218].mxu0 }
 0x859   :  { %v10405_v5 = vpop.f32.mrb[219].mxu0 }
 0x85a   :  { %v16312_v45 = vadd.f32 %v10405_v5, %v10404_v23 }
 0x85c   :  { %v10407_v60 = vpop.f32.mrb[220].mxu0 }
 0x85d   :  { %v10408_v37 = vpop.f32.mrb[221].mxu0 }
 0x85e   :  { %v16314_v12 = vadd.f32 %v10408_v37, %v10407_v60 }
 0x860   :  { %v10410_v15 = vpop.f32.mrb[222].mxu0 }
 0x861   :  { %v10411_v42 = vpop.f32.mrb[223].mxu0 }
 0x862   :  { %v16316_v22 = vadd.f32 %v10411_v42, %v10410_v15 }
 0x864   :  { %v10413_v29 = vpop.f32.mrb[224].mxu0 }
 0x865   :  { %v10414_v58 = vpop.f32.mrb[225].mxu0 }
 0x866   :  { %v16318_v43 = vadd.f32 %v10414_v58, %v10413_v29 }
 0x868   :  { %v10416_v50 = vpop.f32.mrb[226].mxu0 }
 0x869   :  { %v10417_v63 = vpop.f32.mrb[227].mxu0 }
 0x86a   :  { %v16320_v57 = vadd.f32 %v10417_v63, %v10416_v50 }
 0x86c   :  { %v10463_v0 = vpop.f32.mrb[228].mxu0 }
 0x86d   :  { %v10464_v8 = vpop.f32.mrb[229].mxu0 }
 0x86e   :  { %v16322_v16 = vadd.f32 %v10464_v8, %v10463_v0 }
 0x870   :  { %v10466_v24 = vpop.f32.mrb[230].mxu0 }
 0x871   :  { %v10467_v32 = vpop.f32.mrb[231].mxu0 }
 0x872   :  { %v16324_v35 = vadd.f32 %v10467_v32, %v10466_v24 }
 0x874   :  { %v10469_v40 = vpop.f32.mrb[232].mxu0 }
 0x875   :  { %v10470_v11 = vpop.f32.mrb[233].mxu0 }
 0x876   :  { %v16326_v48 = vadd.f32 %v10470_v11, %v10469_v40 }
 0x878   :  { %v10472_v1 = vpop.f32.mrb[234].mxu0 }
 0x879   :  { %v10473_v54 = vpop.f32.mrb[235].mxu0 }
 0x87a   :  { %v16328_v33 = vadd.f32 %v10473_v54, %v10472_v1 }
 0x87c   :  { %v10475_v46 = vpop.f32.mrb[236].mxu0 }
 0x87d   :  { %v10476_v61 = vpop.f32.mrb[237].mxu0 }
 0x87e   :  { %v16330_v53 = vadd.f32 %v10476_v61, %v10475_v46 }
 0x880   :  { %v10478_v21 = vpop.f32.mrb[238].mxu0 }
 0x881   :  { %v10479_v18 = vpop.f32.mrb[239].mxu0 }
 0x882   :  { %v16332_v55 = vadd.f32 %v10479_v18, %v10478_v21 }
 0x884   :  { %v10481_v17 = vpop.f32.mrb[240].mxu0 }
 0x885   :  { %v10482_v20 = vpop.f32.mrb[241].mxu0 }
 0x886   :  { %v16334_v49 = vadd.f32 %v10482_v20, %v10481_v17 }
 0x888   :  { %v10484_v19 = vpop.f32.mrb[242].mxu0 }
 0x889   :  { %v10485_v59 = vpop.f32.mrb[243].mxu0 }
 0x88a   :  { %v16336_v13 = vadd.f32 %v10485_v59, %v10484_v19 }
 0x88c   :  { %v10531_v23 = vpop.f32.mrb[244].mxu0 }
 0x88d   :  { %v10532_v5 = vpop.f32.mrb[245].mxu0 }
 0x88e   :  { %v16338_v60 = vadd.f32 %v10532_v5, %v10531_v23 }
 0x890   :  { %v10534_v37 = vpop.f32.mrb[246].mxu0 }
 0x891   :  { %v10535_v15 = vpop.f32.mrb[247].mxu0 }
 0x892   :  { %v16340_v42 = vadd.f32 %v10535_v15, %v10534_v37 }
 0x894   :  { %v10537_v29 = vpop.f32.mrb[248].mxu0 }
 0x895   :  { %v10538_v58 = vpop.f32.mrb[249].mxu0 }
 0x896   :  { %v16342_v50 = vadd.f32 %v10538_v58, %v10537_v29 }
 0x898   :  { %v10540_v63 = vpop.f32.mrb[250].mxu0 }
 0x899   :  { %v10541_v0 = vpop.f32.mrb[251].mxu0 }
 0x89a   :  { %v16344_v8 = vadd.f32 %v10541_v0, %v10540_v63 }
 0x89c   :  { %v10543_v24 = vpop.f32.mrb[252].mxu0 }
 0x89d   :  { %v10544_v32 = vpop.f32.mrb[253].mxu0 }
 0x89e   :  { %v16346_v40 = vadd.f32 %v10544_v32, %v10543_v24 }
 0x8a0   :  { %v10546_v11 = vpop.f32.mrb[254].mxu0 }
 0x8a1   :  { %v10547_v1 = vpop.f32.mrb[255].mxu0 }
 0x8a2   :  { %v16348_v54 = vadd.f32 %v10547_v1, %v10546_v11 }
 0x8a4   :  { %v10549_v46 = vpop.f32.mrb[0].mxu0 }
 0x8a5   :  { %v10550_v61 = vpop.f32.mrb[1].mxu0 }
 0x8a6   :  { %v16350_v21 = vadd.f32 %v10550_v61, %v10549_v46 }
 0x8a8   :  { %v10552_v18 = vpop.f32.mrb[2].mxu0 }
 0x8a9   :  { %v10553_v17 = vpop.f32.mrb[3].mxu0 }
 0x8aa   :  { %v16352_v20 = vadd.f32 %v10553_v17, %v10552_v18 }
 0x907   :  { %v10259_v19 = vpop.f32.mrb[112].mxu1 }
 0x908   :  { %v10260_v59 = vpop.f32.mrb[113].mxu1 }
 0x909   :  { %v10261_v23 = vadd.f32 %v10260_v59, %v10259_v19 }
 0x90b   :  { %v10262_v5 = vpop.f32.mrb[114].mxu1  ;;  %11457 = vmatprep.mubr.msk.f32.mxu1 %vm1020_vm4, %v10261_v23 }
 0x90c   :  { %v10263_v37 = vpop.f32.mrb[115].mxu1 }
 0x90d   :  { %v10264_v15 = vadd.f32 %v10263_v37, %v10262_v5  ;;  %v13528_v37 = vld [vmem:[%s16769_s6 + $0x48] sm:$0xff] }
 0x90f   :  { %v10265_v29 = vpop.f32.mrb[116].mxu1  ;;  %11458 = vmatmul.mubr.msk.f32.vlgmr.msra.gmra.mrb[104].mxu1 %vm1020_vm4, %v10264_v15  ;;  %v13529_v15 = vld [vmem:[%s16769_s6 + $0x50] sm:$0xff] }
 0x910   :  { %v10266_v58 = vpop.f32.mrb[117].mxu1  ;;  %12780 = vmatpush3.bf16.msra.mxu1 %v14851_v4 }
 0x911   :  { %v10267_v63 = vadd.f32 %v10266_v58, %v10265_v29  ;;  %12782 = vmatprep.subr.bf16.mxu1 %v14869_v3  ;;  %v13530_v29 = vld [vmem:[%s16769_s6 + $0x58] sm:$0xff]  ;;  %v13531_v58 = vld [vmem:[%s16769_s6 + $0x60] sm:$0xff] }
 0x913   :  { %v10268_v0 = vpop.f32.mrb[118].mxu1  ;;  %11460 = vmatprep.mubr.msk.f32.mxu1 %vm1020_vm4, %v10267_v63  ;;  %v13532_v63 = vld [vmem:[%s16769_s6 + $0x68] sm:$0xff] }
 0x914   :  { %v10269_v24 = vpop.f32.mrb[119].mxu1  ;;  %12784 = vmatpush3.bf16.msra.mxu1 %v14869_v3 }
 0x915   :  { %v10270_v32 = vadd.f32 %v10269_v24, %v10268_v0  ;;  %12818 = vmatprep.subr.bf16.mxu1 %v14883_v44  ;;  %v13533_v0 = vld [vmem:[%s16769_s6 + $0x70] sm:$0xff]  ;;  %v13534_v24 = vld [vmem:[%s16769_s6 + $0x78] sm:$0xff] }
 0x917   :  { %v10271_v11 = vpop.f32.mrb[120].mxu1  ;;  %11461 = vmatmul.mubr.msk.f32.gmra.mrb[106].mxu1 %vm1020_vm4, %v10270_v32  ;;  %v13535_v32 = vld [vmem:[%s16769_s6 + $0x80] sm:$0xff] }
 0x918   :  { %v10272_v1 = vpop.f32.mrb[121].mxu1 }
 0x919   :  { %v10273_v46 = vadd.f32 %v10272_v1, %v10271_v11  ;;  %v13536_v11 = vld [vmem:[%s16769_s6 + $0x88] sm:$0xff] }
 0x91b   :  { %v10274_v61 = vpop.f32.mrb[122].mxu1  ;;  %11463 = vmatprep.mubr.msk.f32.mxu1 %vm1020_vm4, %v10273_v46 }
 0x91c   :  { %v10275_v4 = vpop.f32.mrb[123].mxu1 }
 0x91d   :  { %v10276_v18 = vadd.f32 %v10275_v4, %v10274_v61 }
 0x91f   :  { %v10277_v17 = vpop.f32.mrb[124].mxu1  ;;  %11464 = vmatmul.mubr.msk.f32.gmra.mrb[108].mxu1 %vm1020_vm4, %v10276_v18 }
 0x920   :  { %v10278_v19 = vpop.f32.mrb[125].mxu1 }
 0x921   :  { %v10279_v59 = vadd.f32 %v10278_v19, %v10277_v17 }
 0x923   :  { %v10280_v23 = vpop.f32.mrb[126].mxu1  ;;  %11466 = vmatprep.mubr.msk.f32.mxu1 %vm1020_vm4, %v10279_v59  ;;  %v16943_v59 = vld [vmem:[#allocation22_spill] sm:$0xff] }
 0x924   :  { %v10281_v3 = vpop.f32.mrb[127].mxu1 }
 0x925   :  { %v10282_v5 = vadd.f32 %v10281_v3, %v10280_v23  ;;  %v16944_v3 = vld [vmem:[#allocation13_spill] sm:$0xff] }
 0x927   :  { %11467 = vmatmul.mubr.msk.f32.gmra.mrb[110].mxu1 %vm1020_vm4, %v10282_v5 }
 0x928   :  { %11477 = vmatprep.mubr.msk.f32.mxu1 %vm1020_vm4, %v16239_v6 }
 0x92b   :  { %11478 = vmatmul.mubr.msk.f32.vlgmr.msra.gmra.mrb[104].mxu1 %vm1020_vm4, %v16242_v27 }
 0x92c   :  { %11480 = vmatprep.mubr.msk.f32.mxu1 %vm1020_vm4, %v16252_v56  ;;  %12820 = vmatpush3.bf16.msra.mxu1 %v14883_v44  ;;  %v13518_v44 = vld [vmem:[%s16769_s6] sm:$0xff] }
 0x92d   :  { %12822 = vmatprep.subr.bf16.mxu1 %v14905_v31 }
 0x92f   :  { %11481 = vmatmul.mubr.msk.f32.gmra.mrb[106].mxu1 %vm1020_vm4, %v16262_v51 }
 0x930   :  { %11483 = vmatprep.mubr.msk.f32.mxu1 %vm1020_vm4, %v16271_v7  ;;  %12824 = vmatpush3.bf16.msra.mxu1 %v14905_v31 }
 0x931   :  { %12858 = vmatprep.subr.bf16.mxu1 %v14919_v52 }
 0x933   :  { %11484 = vmatmul.mubr.msk.f32.gmra.mrb[108].mxu1 %vm1020_vm4, %v16279_v10 }
 0x934   :  { %11486 = vmatprep.mubr.msk.f32.mxu1 %vm1020_vm4, %v16287_v62 }
 0x937   :  { %11487 = vmatmul.mubr.msk.f32.gmra.mrb[110].mxu1 %vm1020_vm4, %v16304_v38 }
 0x938   :  { %11497 = vmatprep.mubr.msk.f32.mxu1 %vm1020_vm4, %v16306_v2 }
 0x93b   :  { %11498 = vmatmul.mubr.msk.f32.vlgmr.msra.gmra.mrb[104].mxu1 %vm1020_vm4, %v16308_v41 }
 0x93c   :  { %11500 = vmatprep.mubr.msk.f32.mxu1 %vm1020_vm4, %v16310_v30  ;;  %12860 = vmatpush3.bf16.msra.mxu1 %v14919_v52  ;;  %v13519_v52 = vld [vmem:[%s16768_s5] ss:$0 sm:$0xff] }
 0x93d   :  { %12862 = vmatprep.subr.bf16.mxu1 %v14941_v9 }
 0x93f   :  { %11501 = vmatmul.mubr.msk.f32.gmra.mrb[106].mxu1 %vm1020_vm4, %v16312_v45 }
 0x940   :  { %11503 = vmatprep.mubr.msk.f32.mxu1 %vm1020_vm4, %v16314_v12  ;;  %12864 = vmatpush3.bf16.msra.mxu1 %v14941_v9 }
 0x941   :  { %12898 = vmatprep.subr.bf16.mxu1 %v15000_v36 }
 0x943   :  { %11504 = vmatmul.mubr.msk.f32.gmra.mrb[108].mxu1 %vm1020_vm4, %v16316_v22 }
 0x944   :  { %11506 = vmatprep.mubr.msk.f32.mxu1 %vm1020_vm4, %v16318_v43 }
 0x947   :  { %11507 = vmatmul.mubr.msk.f32.gmra.mrb[110].mxu1 %vm1020_vm4, %v16320_v57 }
 0x948   :  { %11517 = vmatprep.mubr.msk.f32.mxu1 %vm1020_vm4, %v16322_v16 }
 0x94b   :  { %11518 = vmatmul.mubr.msk.f32.vlgmr.msra.gmra.mrb[104].mxu1 %vm1020_vm4, %v16324_v35 }
 0x94c   :  { %11520 = vmatprep.mubr.msk.f32.mxu1 %vm1020_vm4, %v16326_v48  ;;  %12900 = vmatpush3.bf16.msra.mxu1 %v15000_v36 }
 0x94d   :  { %12902 = vmatprep.subr.bf16.mxu1 %v15056_v34 }
 0x94f   :  { %11521 = vmatmul.mubr.msk.f32.gmra.mrb[106].mxu1 %vm1020_vm4, %v16328_v33 }
 0x950   :  { %11523 = vmatprep.mubr.msk.f32.mxu1 %vm1020_vm4, %v16330_v53  ;;  %12904 = vmatpush3.bf16.msra.mxu1 %v15056_v34 }
 0x953   :  { %11524 = vmatmul.mubr.msk.f32.gmra.mrb[108].mxu1 %vm1020_vm4, %v16332_v55 }
 0x954   :  { %11526 = vmatprep.mubr.msk.f32.mxu1 %vm1020_vm4, %v16334_v49 }
 0x957   :  { %11527 = vmatmul.mubr.msk.f32.gmra.mrb[110].mxu1 %vm1020_vm4, %v16336_v13 }
 0x958   :  { %11537 = vmatprep.mubr.msk.f32.mxu1 %vm1020_vm4, %v16338_v60  ;;  %v13520_v60 = vld [vmem:[%s16769_s6 + $0x8] sm:$0xff] }
 0x95b   :  { %11538 = vmatmul.mubr.msk.f32.vlgmr.msra.gmra.mrb[104].mxu1 %vm1020_vm4, %v16340_v42  ;;  %v13521_v42 = vld [vmem:[%s16769_s6 + $0x10] sm:$0xff] }
 0x95c   :  { %11540 = vmatprep.mubr.msk.f32.mxu1 %vm1020_vm4, %v16342_v50  ;;  %v13522_v50 = vld [vmem:[%s16769_s6 + $0x18] sm:$0xff] }
 0x95f   :  { %11541 = vmatmul.mubr.msk.f32.gmra.mrb[106].mxu1 %vm1020_vm4, %v16344_v8  ;;  %v13523_v8 = vld [vmem:[%s16769_s6 + $0x20] sm:$0xff] }
 0x960   :  { %11543 = vmatprep.mubr.msk.f32.mxu1 %vm1020_vm4, %v16346_v40  ;;  %v13524_v40 = vld [vmem:[%s16769_s6 + $0x28] sm:$0xff] }
 0x963   :  { %11544 = vmatmul.mubr.msk.f32.gmra.mrb[108].mxu1 %vm1020_vm4, %v16348_v54  ;;  %v13525_v54 = vld [vmem:[%s16769_s6 + $0x30] sm:$0xff] }
 0x964   :  { %11546 = vmatprep.mubr.msk.f32.mxu1 %vm1020_vm4, %v16350_v21  ;;  %v13526_v21 = vld [vmem:[%s16769_s6 + $0x38] sm:$0xff] }
 0x967   :  { %11547 = vmatmul.mubr.msk.f32.gmra.mrb[110].mxu1 %vm1020_vm4, %v16352_v20  ;;  %v13527_v20 = vld [vmem:[%s16769_s6 + $0x40] sm:$0xff] }
 0x968   :  { %11565 = vmatprep.mubr.msk.f32.mxu1 %vm3152_vm5, %v13518_v44  ;;  %v16945_v44 = vld [vmem:[#allocation23_spill] sm:$0xff] }
 0xa2e   :  { %v11539_v31 = vpop.f32.mrb[104].mxu1 }
 0xa2f   :  { %v7004_v9 = vadd.f32 %v13519_v52, %v11539_v31  ;;  %v6956_v36 = vpop.f32.mrb[105].mxu1  ;;  %v16946_v31 = vld [vmem:[#allocation14_spill] sm:$0xff] }
 0xa30   :  { %v7003_v34 = vadd.f32 %v13519_v52, %v6956_v36  ;;  %v16948_v36 = vld [vmem:[#allocation16_spill] sm:$0xff] }
 0xa31   :  { %v7012_v6 = vmax.f32 %v7004_v9, 0.0 }
 0xa32   :  { %v7011_v27 = vmax.f32 %v7003_v34, 0.0  ;;  %v11542_v56 = vpop.f32.mrb[106].mxu1 }
 0xa33   :  { %v7006_v51 = vadd.f32 %v13519_v52, %v11542_v56  ;;  %v6966_v7 = vpop.f32.mrb[107].mxu1  ;;  %v16951_v56 = vld [vmem:[#allocation26_spill] sm:$0xff] }
 0xa34   :  { %v16448_v10 = vpack.c.bf16 %v7012_v6, %v7011_v27  ;;  %v7005_v62 = vadd.f32 %v13519_v52, %v6966_v7  ;;  %v16949_v6 = vld [vmem:[#allocation25_spill] sm:$0xff]  ;;  %v16952_v7 = vld [vmem:[#allocation18_spill] sm:$0xff] }
 0xa35   :  { %v7014_v38 = vmax.f32 %v7006_v51, 0.0  ;;  %v16950_v27 = vld [vmem:[#allocation17_spill] sm:$0xff] }
 0xa36   :  { %v7013_v2 = vmax.f32 %v7005_v62, 0.0  ;;  %v11545_v41 = vpop.f32.mrb[108].mxu1  ;;  %12906 = vmatprep.subr.bf16.mxu1 %v16448_v10  ;;  %v16953_v62 = vld [vmem:[#allocation12_spill] sm:$0xff] }
 0xa37   :  { %v7008_v30 = vadd.f32 %v13519_v52, %v11545_v41  ;;  %v6976_v45 = vpop.f32.mrb[109].mxu1  ;;  %12908 = vmatpush3.bf16.msra.mxu1 %v16448_v10 }
 0xa38   :  { %v16452_v12 = vpack.c.bf16 %v7014_v38, %v7013_v2  ;;  %v7007_v22 = vadd.f32 %v13519_v52, %v6976_v45  ;;  %v16954_v38 = vld [vmem:[#allocation15_spill] sm:$0xff]  ;;  %v16955_v2 = vld [vmem:[#allocation20_spill] sm:$0xff] }
 0xa39   :  { %v7016_v43 = vmax.f32 %v7008_v30, 0.0  ;;  %v16956_v30 = vld [vmem:[#allocation33_spill] sm:$0xff] }
 0xa3a   :  { %v7015_v57 = vmax.f32 %v7007_v22, 0.0  ;;  %v11548_v16 = vpop.f32.mrb[110].mxu1  ;;  %12910 = vmatprep.subr.bf16.mxu1 %v16452_v12  ;;  %v16958_v22 = vld [vmem:[#allocation35_spill] sm:$0xff] }
 0xa3b   :  { %v7010_v35 = vadd.f32 %v13519_v52, %v11548_v16  ;;  %v6986_v48 = vpop.f32.mrb[111].mxu1  ;;  %12912 = vmatpush3.bf16.msra.mxu1 %v16452_v12  ;;  %v16960_v16 = vld [vmem:[#allocation37_spill] sm:$0xff] }
 0xa3c   :  { %v16456_v33 = vpack.c.bf16 %v7016_v43, %v7015_v57  ;;  %v7009_v53 = vadd.f32 %v13519_v52, %v6986_v48  ;;  %v16947_v52 = vld [vmem:[#allocation24_spill] sm:$0xff]  ;;  %v16961_v48 = vld [vmem:[#allocation38_spill] sm:$0xff] }
 0xa3d   :  { %v7018_v55 = vmax.f32 %v7010_v35, 0.0  ;;  %v16959_v43 = vld [vmem:[#allocation36_spill] sm:$0xff] }
 0xa3e   :  { %v7017_v49 = vmax.f32 %v7009_v53, 0.0  ;;  %12914 = vmatprep.subr.bf16.mxu1 %v16456_v33  ;;  %v16963_v53 = vld [vmem:[#allocation40_spill] sm:$0xff] }
 0xa3f   :  { %12916 = vmatpush3.bf16.msra.mxu1 %v16456_v33 }
 0xa40   :  { %v16460_v13 = vpack.c.bf16 %v7018_v55, %v7017_v49  ;;  %v13537_v49 = vld [vmem:[%s16771_s8] ss:$0 sm:$0xff] }
 0xa42   :  { %12918 = vmatprep.subr.bf16.mxu1 %v16460_v13 }
 0xa43   :  { %12920 = vmatpush3.bf16.msra.mxu1 %v16460_v13 }
 0xa44   :  { %12922 = vmatprep.subr.bf16.mxu1 %v16448_v10 }
 0xa46   :  { %11566 = vmatmul.mubr.msk.f32.vlgmr.msra.gmra.mrb[128].mxu1 %vm3152_vm5, %v13520_v60 }
 0xa47   :  { %12924 = vmatpush3.bf16.msra.mxu1 %v16448_v10  ;;  %11584 = vmatprep.mubr.msk.f32.mxu1 %vm3152_vm5, %v13521_v42 }
 0xa48   :  { %12926 = vmatprep.subr.bf16.mxu1 %v16452_v12 }
 0xa4b   :  { %12928 = vmatpush3.bf16.msra.mxu1 %v16452_v12 }
 0xa4c   :  { %12930 = vmatprep.subr.bf16.mxu1 %v16456_v33 }
 0xa4f   :  { %12932 = vmatpush3.bf16.msra.mxu1 %v16456_v33 }
 0xa50   :  { %12934 = vmatprep.subr.bf16.mxu1 %v16460_v13 }
 0xa53   :  { %12936 = vmatpush3.bf16.msra.mxu1 %v16460_v13 }
 0xa54   :  { %12970 = vmatprep.subr.bf16.mxu1 %v16448_v10 }
 0xa56   :  { %11585 = vmatmul.mubr.msk.f32.vlgmr.msra.gmra.mrb[130].mxu1 %vm3152_vm5, %v13522_v50 }
 0xa57   :  { %12972 = vmatpush3.bf16.msra.mxu1 %v16448_v10  ;;  %11641 = vmatprep.mubr.msk.f32.mxu1 %vm3152_vm5, %v13523_v8 }
 0xa58   :  { %12974 = vmatprep.subr.bf16.mxu1 %v16452_v12 }
 0xa5b   :  { %12976 = vmatpush3.bf16.msra.mxu1 %v16452_v12 }
 0xa5c   :  { %12978 = vmatprep.subr.bf16.mxu1 %v16456_v33 }
 0xa5f   :  { %12980 = vmatpush3.bf16.msra.mxu1 %v16456_v33 }
 0xa60   :  { %12982 = vmatprep.subr.bf16.mxu1 %v16460_v13 }
 0xa63   :  { %12984 = vmatpush3.bf16.msra.mxu1 %v16460_v13 }
 0xa64   :  { %13002 = vmatprep.subr.bf16.mxu1 %v16448_v10 }
 0xa66   :  { %11642 = vmatmul.mubr.msk.f32.vlgmr.msra.gmra.mrb[132].mxu1 %vm3152_vm5, %v13524_v40  ;;  %v13538_v40 = vld [vmem:[%s16774_s11 + $0x8] sm:$0xff] }
 0xa67   :  { %13004 = vmatpush3.bf16.msra.mxu1 %v16448_v10  ;;  %11679 = vmatprep.mubr.msk.f32.mxu1 %vm3152_vm5, %v13525_v54 }
 0xa68   :  { %13006 = vmatprep.subr.bf16.mxu1 %v16452_v12 }
 0xa6b   :  { %13008 = vmatpush3.bf16.msra.mxu1 %v16452_v12 }
 0xa6c   :  { %13010 = vmatprep.subr.bf16.mxu1 %v16456_v33 }
 0xa6f   :  { %13012 = vmatpush3.bf16.msra.mxu1 %v16456_v33 }
 0xa70   :  { %13014 = vmatprep.subr.bf16.mxu1 %v16460_v13 }
 0xa73   :  { %13016 = vmatpush3.bf16.msra.mxu1 %v16460_v13 }
 0xa74   :  { %13034 = vmatprep.subr.bf16.mxu1 %v16448_v10 }
 0xa76   :  { %11680 = vmatmul.mubr.msk.f32.vlgmr.msra.gmra.mrb[134].mxu1 %vm3152_vm5, %v13526_v21  ;;  %v13539_v21 = vld [vmem:[%s16772_s9 + $0x8] sm:$0xff] }
 0xa77   :  { %13036 = vmatpush3.bf16.msra.mxu1 %v16448_v10  ;;  %11717 = vmatprep.mubr.msk.f32.mxu1 %vm3152_vm5, %v13527_v20 }
 0xa78   :  { %13038 = vmatprep.subr.bf16.mxu1 %v16452_v12 }
 0xa7b   :  { %13040 = vmatpush3.bf16.msra.mxu1 %v16452_v12 }
 0xa7c   :  { %13042 = vmatprep.subr.bf16.mxu1 %v16456_v33 }
 0xa7f   :  { %13044 = vmatpush3.bf16.msra.mxu1 %v16456_v33 }
 0xa80   :  { %13046 = vmatprep.subr.bf16.mxu1 %v16460_v13 }
 0xa83   :  { %13048 = vmatpush3.bf16.msra.mxu1 %v16460_v13 }
 0xa84   :  { %13066 = vmatprep.subr.bf16.mxu1 %v16448_v10 }
 0xa86   :  { %11718 = vmatmul.mubr.msk.f32.vlgmr.msra.gmra.mrb[136].mxu1 %vm3152_vm5, %v13528_v37  ;;  %v13540_v37 = vld [vmem:[%s16774_s11 + $0x18] sm:$0xff] }
 0xa87   :  { %13068 = vmatpush3.bf16.msra.mxu1 %v16448_v10  ;;  %11755 = vmatprep.mubr.msk.f32.mxu1 %vm3152_vm5, %v13529_v15 }
 0xa88   :  { %13070 = vmatprep.subr.bf16.mxu1 %v16452_v12 }
 0xa8b   :  { %13072 = vmatpush3.bf16.msra.mxu1 %v16452_v12 }
 0xa8c   :  { %13074 = vmatprep.subr.bf16.mxu1 %v16456_v33 }
 0xa8f   :  { %13076 = vmatpush3.bf16.msra.mxu1 %v16456_v33 }
 0xa90   :  { %13078 = vmatprep.subr.bf16.mxu1 %v16460_v13 }
 0xa93   :  { %13080 = vmatpush3.bf16.msra.mxu1 %v16460_v13 }
 0xa94   :  { %13098 = vmatprep.subr.bf16.mxu1 %v16448_v10 }
 0xa96   :  { %11756 = vmatmul.mubr.msk.f32.vlgmr.msra.gmra.mrb[138].mxu1 %vm3152_vm5, %v13530_v29  ;;  %v13541_v29 = vld [vmem:[%s16772_s9 + $0x18] sm:$0xff] }
 0xa97   :  { %13100 = vmatpush3.bf16.msra.mxu1 %v16448_v10  ;;  %11793 = vmatprep.mubr.msk.f32.mxu1 %vm3152_vm5, %v13531_v58 }
 0xa98   :  { %13102 = vmatprep.subr.bf16.mxu1 %v16452_v12 }
 0xa9b   :  { %13104 = vmatpush3.bf16.msra.mxu1 %v16452_v12 }
 0xa9c   :  { %13106 = vmatprep.subr.bf16.mxu1 %v16456_v33 }
 0xa9f   :  { %13108 = vmatpush3.bf16.msra.mxu1 %v16456_v33 }
 0xaa0   :  { %13110 = vmatprep.subr.bf16.mxu1 %v16460_v13 }
 0xaa3   :  { %13112 = vmatpush3.bf16.msra.mxu1 %v16460_v13 }
 0xaa4   :  { %13130 = vmatprep.subr.bf16.mxu1 %v16448_v10 }
 0xaa6   :  { %11794 = vmatmul.mubr.msk.f32.vlgmr.msra.gmra.mrb[140].mxu1 %vm3152_vm5, %v13532_v63  ;;  %v13542_v63 = vld [vmem:[%s16774_s11] sm:$0xff] }
 0xaa7   :  { %13132 = vmatpush3.bf16.msra.mxu1 %v16448_v10  ;;  %11831 = vmatprep.mubr.msk.f32.mxu1 %vm3152_vm5, %v13533_v0 }
 0xaa8   :  { %13134 = vmatprep.subr.bf16.mxu1 %v16452_v12 }
 0xaab   :  { %13136 = vmatpush3.bf16.msra.mxu1 %v16452_v12 }
 0xaac   :  { %13138 = vmatprep.subr.bf16.mxu1 %v16456_v33 }
 0xaaf   :  { %13140 = vmatpush3.bf16.msra.mxu1 %v16456_v33 }
 0xab0   :  { %13142 = vmatprep.subr.bf16.mxu1 %v16460_v13 }
 0xab3   :  { %13144 = vmatpush3.bf16.msra.mxu1 %v16460_v13 }
 0xab4   :  { %13162 = vmatprep.subr.bf16.mxu1 %v16448_v10 }
 0xab6   :  { %11832 = vmatmul.mubr.msk.f32.vlgmr.msra.gmra.mrb[142].mxu1 %vm3152_vm5, %v13534_v24  ;;  %v13543_v24 = vld [vmem:[%s16772_s9] sm:$0xff] }
 0xab7   :  { %13164 = vmatpush3.bf16.msra.mxu1 %v16448_v10  ;;  %11869 = vmatprep.mubr.msk.f32.mxu1 %vm3152_vm5, %v13535_v32 }
 0xab8   :  { %13166 = vmatprep.subr.bf16.mxu1 %v16452_v12 }
 0xabb   :  { %13168 = vmatpush3.bf16.msra.mxu1 %v16452_v12  ;;  %v16957_v12 = vld [vmem:[#allocation34_spill] sm:$0xff] }
 0xabc   :  { %13170 = vmatprep.subr.bf16.mxu1 %v16456_v33 }
 0xabf   :  { %13172 = vmatpush3.bf16.msra.mxu1 %v16456_v33  ;;  %v16962_v33 = vld [vmem:[#allocation39_spill] sm:$0xff] }
 0xac0   :  { %13174 = vmatprep.subr.bf16.mxu1 %v16460_v13 }
 0xac3   :  { %13176 = vmatpush3.bf16.msra.mxu1 %v16460_v13 }
 0xac6   :  { %11870 = vmatmul.mubr.msk.f32.vlgmr.msra.gmra.mrb[144].mxu1 %vm3152_vm5, %v13536_v11  ;;  %v13544_v11 = vld [vmem:[%s16774_s11 + $0x10] sm:$0xff] }
 0xb19   :  { %v11567_v1 = vpop.f32.mrb[128].mxu1 }
 0xb1a   :  { %v7085_v46 = vpop.f32.mrb[129].mxu1 }
 0xb29   :  { %v11586_v61 = vpop.f32.mrb[130].mxu1 }
 0xb2a   :  { %v7160_v4 = vpop.f32.mrb[131].mxu1 }
 0xb2b   :  { %11603 = vmatprep.mubr.msk.f32.mxu0 %vm3152_vm5, %v7160_v4 }
 0xb2c   :  { %11604 = vmatmul.mubr.msk.f32.vlgmr.msra.gmra.mrb[4].mxu0 %vm3152_vm5, %v11586_v61 }
 0xb2d   :  { %12956 = vmatpush3.bf16.msra.mxu0 %v15244_v39  ;;  %11622 = vmatprep.mubr.msk.f32.mxu0 %vm3152_vm5, %v7085_v46  ;;  %v16938_v39 = vld [vmem:[#allocation9_spill] sm:$0xff]  ;;  %v13545_v46 = vld [vmem:[%s16772_s9 + $0x10] sm:$0xff]  ;;  %s13354_s9 = spop %13353 }
 0xb2e   :  { %12958 = vmatprep.subr.bf16.mxu0 %v15347_v25  ;;  %s13356_s11 = spop %13355 }
 0xb2f   :  { %s13358_s2 = spop %13357 }
 0xb30   :  { %s13360_s1 = spop %13359 }
 0xb31   :  { %12960 = vmatpush3.bf16.msra.mxu0 %v15347_v25  ;;  %v16939_v25 = vld [vmem:[#allocation19_spill] sm:$0xff] }
 0xb32   :  { %12962 = vmatprep.subr.bf16.mxu0 %v15360_v26 }
 0xb35   :  { %12964 = vmatpush3.bf16.msra.mxu0 %v15360_v26 }
 0xb36   :  { %12966 = vmatprep.subr.bf16.mxu0 %v15370_v14 }
 0xb39   :  { %12968 = vmatpush3.bf16.msra.mxu0 %v15370_v14  ;;  %v11643_v18 = vpop.f32.mrb[132].mxu1  ;;  %v16940_v14 = vld [vmem:[#allocation10_spill] sm:$0xff] }
 0xb3a   :  { %12986 = vmatprep.subr.bf16.mxu0 %v15380_v47  ;;  %v7397_v17 = vpop.f32.mrb[133].mxu1 }
 0xb3c   :  { %11623 = vmatmul.mubr.msk.f32.vlgmr.msra.gmra.mrb[4].mxu0 %vm3152_vm5, %v11567_v1 }
 0xb3d   :  { %12988 = vmatpush3.bf16.msra.mxu0 %v15380_v47  ;;  %11660 = vmatprep.mubr.msk.f32.mxu0 %vm3152_vm5, %v7397_v17  ;;  %v16941_v47 = vld [vmem:[#allocation21_spill] sm:$0xff] }
 0xb3e   :  { %12990 = vmatprep.subr.bf16.mxu0 %v15390_v28 }
 0xb41   :  { %12992 = vmatpush3.bf16.msra.mxu0 %v15390_v28  ;;  %v16942_v28 = vld [vmem:[#allocation11_spill] sm:$0xff] }
 0xb42   :  { %12994 = vmatprep.subr.bf16.mxu0 %v16938_v39 }
 0xb45   :  { %12996 = vmatpush3.bf16.msra.mxu0 %v16938_v39 }
 0xb46   :  { %12998 = vmatprep.subr.bf16.mxu0 %v16939_v25 }
 0xb49   :  { %13000 = vmatpush3.bf16.msra.mxu0 %v16939_v25  ;;  %v11681_v26 = vpop.f32.mrb[134].mxu1 }
 0xb4a   :  { %13018 = vmatprep.subr.bf16.mxu0 %v16940_v14  ;;  %v7555_v19 = vpop.f32.mrb[135].mxu1 }
 0xb4c   :  { %11661 = vmatmul.mubr.msk.f32.vlgmr.msra.gmra.mrb[4].mxu0 %vm3152_vm5, %v11643_v18 }
 0xb4d   :  { %13020 = vmatpush3.bf16.msra.mxu0 %v16940_v14  ;;  %11698 = vmatprep.mubr.msk.f32.mxu0 %vm3152_vm5, %v7555_v19 }
 0xb4e   :  { %13022 = vmatprep.subr.bf16.mxu0 %v16941_v47 }
 0xb51   :  { %13024 = vmatpush3.bf16.msra.mxu0 %v16941_v47 }
 0xb52   :  { %13026 = vmatprep.subr.bf16.mxu0 %v16942_v28 }
 0xb55   :  { %13028 = vmatpush3.bf16.msra.mxu0 %v16942_v28 }
 0xb56   :  { %13030 = vmatprep.subr.bf16.mxu0 %v16943_v59 }
 0xb59   :  { %13032 = vmatpush3.bf16.msra.mxu0 %v16943_v59  ;;  %v11719_v23 = vpop.f32.mrb[136].mxu1 }
 0xb5a   :  { %13050 = vmatprep.subr.bf16.mxu0 %v16944_v3  ;;  %v7713_v5 = vpop.f32.mrb[137].mxu1 }
 0xb5c   :  { %11699 = vmatmul.mubr.msk.f32.vlgmr.msra.gmra.mrb[4].mxu0 %vm3152_vm5, %v11681_v26 }
 0xb5d   :  { %13052 = vmatpush3.bf16.msra.mxu0 %v16944_v3  ;;  %11736 = vmatprep.mubr.msk.f32.mxu0 %vm3152_vm5, %v7713_v5 }
 0xb5e   :  { %13054 = vmatprep.subr.bf16.mxu0 %v16945_v44 }
 0xb61   :  { %13056 = vmatpush3.bf16.msra.mxu0 %v16945_v44 }
 0xb62   :  { %13058 = vmatprep.subr.bf16.mxu0 %v16946_v31 }
 0xb65   :  { %13060 = vmatpush3.bf16.msra.mxu0 %v16946_v31 }
 0xb66   :  { %13062 = vmatprep.subr.bf16.mxu0 %v16947_v52 }
 0xb69   :  { %13064 = vmatpush3.bf16.msra.mxu0 %v16947_v52  ;;  %v11757_v9 = vpop.f32.mrb[138].mxu1 }
 0xb6a   :  { %13082 = vmatprep.subr.bf16.mxu0 %v16948_v36  ;;  %v7871_v34 = vpop.f32.mrb[139].mxu1 }
 0xb6c   :  { %11737 = vmatmul.mubr.msk.f32.vlgmr.msra.gmra.mrb[4].mxu0 %vm3152_vm5, %v11719_v23 }
 0xb6d   :  { %13084 = vmatpush3.bf16.msra.mxu0 %v16948_v36  ;;  %11774 = vmatprep.mubr.msk.f32.mxu0 %vm3152_vm5, %v7871_v34 }
 0xb6e   :  { %13086 = vmatprep.subr.bf16.mxu0 %v16949_v6 }
 0xb71   :  { %13088 = vmatpush3.bf16.msra.mxu0 %v16949_v6 }
 0xb72   :  { %13090 = vmatprep.subr.bf16.mxu0 %v16950_v27 }
 0xb75   :  { %13092 = vmatpush3.bf16.msra.mxu0 %v16950_v27 }
 0xb76   :  { %13094 = vmatprep.subr.bf16.mxu0 %v16951_v56 }
 0xb79   :  { %13096 = vmatpush3.bf16.msra.mxu0 %v16951_v56  ;;  %v11795_v51 = vpop.f32.mrb[140].mxu1 }
 0xb7a   :  { %13114 = vmatprep.subr.bf16.mxu0 %v16952_v7  ;;  %v8029_v10 = vpop.f32.mrb[141].mxu1 }
 0xb7c   :  { %11775 = vmatmul.mubr.msk.f32.vlgmr.msra.gmra.mrb[4].mxu0 %vm3152_vm5, %v11757_v9 }
 0xb7d   :  { %13116 = vmatpush3.bf16.msra.mxu0 %v16952_v7  ;;  %11812 = vmatprep.mubr.msk.f32.mxu0 %vm3152_vm5, %v8029_v10 }
 0xb7e   :  { %13118 = vmatprep.subr.bf16.mxu0 %v16953_v62 }
 0xb81   :  { %13120 = vmatpush3.bf16.msra.mxu0 %v16953_v62 }
 0xb82   :  { %13122 = vmatprep.subr.bf16.mxu0 %v16954_v38 }
 0xb85   :  { %13124 = vmatpush3.bf16.msra.mxu0 %v16954_v38 }
 0xb86   :  { %13126 = vmatprep.subr.bf16.mxu0 %v16955_v2 }
 0xb89   :  { %13128 = vmatpush3.bf16.msra.mxu0 %v16955_v2  ;;  %v11833_v41 = vpop.f32.mrb[142].mxu1 }
 0xb8a   :  { %13146 = vmatprep.subr.bf16.mxu0 %v16956_v30  ;;  %v8187_v45 = vpop.f32.mrb[143].mxu1 }
 0xb8c   :  { %11813 = vmatmul.mubr.msk.f32.vlgmr.msra.gmra.mrb[4].mxu0 %vm3152_vm5, %v11795_v51 }
 0xb8d   :  { %13148 = vmatpush3.bf16.msra.mxu0 %v16956_v30  ;;  %11850 = vmatprep.mubr.msk.f32.mxu0 %vm3152_vm5, %v8187_v45 }
 0xb8e   :  { %13150 = vmatprep.subr.bf16.mxu0 %v16957_v12 }
 0xb91   :  { %13152 = vmatpush3.bf16.msra.mxu0 %v16957_v12  ;;  %v4742_v12 = vlaneseq }
 0xb92   :  { %13154 = vmatprep.subr.bf16.mxu0 %v16958_v22 }
 0xb95   :  { %13156 = vmatpush3.bf16.msra.mxu0 %v16958_v22  ;;  %v4743_v22 = vand.u32 127, %v4742_v12 }
 0xb96   :  { %13158 = vmatprep.subr.bf16.mxu0 %v16959_v43 }
 0xb97   :  { %vm4744_vm6 = vcmp.eq.s32.totalorder %v4743_v22, 0  ;;  %vm4781_vm7 = vcmp.eq.s32.totalorder %v4743_v22, 1 }
 0xb99   :  { %13160 = vmatpush3.bf16.msra.mxu0 %v16959_v43  ;;  %v11871_v57 = vpop.f32.mrb[144].mxu1  ;;  %v4778_v43 = vstv %s13356_s11 }
 0xb9a   :  { %13178 = vmatprep.subr.bf16.mxu0 %v16960_v16  ;;  %v8345_v35 = vpop.f32.mrb[145].mxu1 }
 0xb9c   :  { %11851 = vmatmul.mubr.msk.f32.vlgmr.msra.gmra.mrb[4].mxu0 %vm3152_vm5, %v11833_v41 }
 0xb9d   :  { %13180 = vmatpush3.bf16.msra.mxu0 %v16960_v16  ;;  %11888 = vmatprep.mubr.msk.f32.mxu0 %vm3152_vm5, %v8345_v35  ;;  %v4775_v35 = vstv %s13354_s9 }
 0xb9e   :  { %13182 = vmatprep.subr.bf16.mxu0 %v16961_v48 }
 0xba1   :  { %13184 = vmatpush3.bf16.msra.mxu0 %v16961_v48 }
 0xba2   :  { %13186 = vmatprep.subr.bf16.mxu0 %v16962_v33 }
 0xba5   :  { %13188 = vmatpush3.bf16.msra.mxu0 %v16962_v33 }
 0xba6   :  { %13190 = vmatprep.subr.bf16.mxu0 %v16963_v53 }
 0xba9   :  { %13192 = vmatpush3.bf16.msra.mxu0 %v16963_v53  ;;  %v4814_v53 = vstv %s13358_s2 }
 0xbac   :  { %11889 = vmatmul.mubr.msk.f32.vlgmr.msra.gmra.mrb[4].mxu0 %vm3152_vm5, %v11871_v57  ;;  %v13617_v57 = vmov 0.0  }
 0xbad   :  { %v8981_v16 = vsel %vm4744_vm6, 1.0, %v13617_v57  ;;  %v8982_v33 = vsel %vm4781_vm7, 1.0, %v13617_v57 }
 0xbae   :  { %v4779_v48 = vmul.f32 %v8981_v16, %v4778_v43 }
 0xc7f   :  { %v11890_v55 = vpop.f32.mrb[4].mxu0 }
 0xc80   :  { %v8438_v13 = vadd.f32 %v13537_v49, %v11890_v55  ;;  %v8426_v60 = vpop.f32.mrb[5].mxu0  ;;  %v4776_v55 = vmul.f32 %v8981_v16, %v4775_v35 }
 0xc81   :  { %v8437_v42 = vadd.f32 %v13537_v49, %v8426_v60  ;;  %v4741_v49 = vld [vmem:[%s16775_s12] sm:$0x1]  ;;  %v4821_v60 = vshrl.u32 %v4742_v12, 7 }
 0xc82   :  { %v8440_v50 = vmax.f32 %v8438_v13, 0.0  ;;  %v4740_v13 = vld [vmem:[%s16773_s10] sm:$0x1]  ;;  %s13618_s10 = smov [#allocation4]  }
 0xc83   :  { %v8439_v8 = vmax.f32 %v8437_v42, 0.0  ;;  %v4815_v42 = vmul.f32 %v8982_v33, %v4814_v53  ;;  %vm4822_vm8 = vcmp.eq.s32.totalorder %v4821_v60, 0  ;;  %vm8501_vm9 = vcmp.eq.s32.totalorder %v4821_v60, 1  ;;  %s8540_s19 = sshll.u32 %s13618_s10, 4  ;;  %s8541_s19 = int_to_ptr.vmem [resolvable:$true] %s8540_s19 }
 0xc84   :  { %v8454_v54 = vmul.f32 %v13538_v40, %v8440_v50  ;;  %v8442_v20 = vmul.f32 %v13539_v21, %v8440_v50  ;;  %v8484_v15 = vmul.f32 %v13540_v37, %v8440_v50  ;;  %v8472_v58 = vmul.f32 %v13541_v29, %v8440_v50  ;;  %s13546_s8 = scalar_lea.vmem %s8541_s19, 32  ;;  %p13551_p1 = scmp.lt.s32.totalorder %s8541_s19, %s8541_s19 }
 0xc85   :  { %v8453_v0 = vmul.f32 %v13542_v63, %v8439_v8  ;;  %v8441_v32 = vmul.f32 %v13543_v24, %v8439_v8  ;;  %v8483_v1 = vmul.f32 %v13544_v11, %v8439_v8  ;;  %v8471_v61 = vmul.f32 %v13545_v46, %v8439_v8  ;;  %p13547_p0 = scmp.ne.s32.totalorder %s8541_s19, %s13546_s8  ;;  %p13552_p2 = scmp.lt.s32.totalorder %s13546_s8, %s13546_s8 }
 0xc86   :  { %v4817_v50 = vstv %s13360_s1  ;;  %v4780_v8 = vadd.f32 %v4779_v48, %v4741_v49 }
 0xc87   :  { %v8455_v4 = vadd.f32 %v8454_v54, %v8453_v0  ;;  %v8443_v18 = vadd.f32 %v8442_v20, %v8441_v32  ;;  %v8485_v17 = vadd.f32 %v8484_v15, %v8483_v1  ;;  %v8473_v39 = vadd.f32 %v8472_v58, %v8471_v61  ;;  %p13553_p3 = por %p13552_p2, %p13551_p1 }
 0xc88   :  { %v4777_v54 = vadd.f32 %v4776_v55, %v4740_v13  ;;  %v4818_v37 = vmul.f32 %v8982_v33, %v4817_v50  ;;  %v4828_v58 = vsub.s32 0, %v4821_v60 }
 0xc89   :  { %8456 = vadd.xlane.f32.xlu1 %v8455_v4  ;;  %8444 = vadd.xlane.f32.xlu0 %v8443_v18  ;;  %p13554_p4 = pnand %p13553_p3, %p13547_p0 }
 0xc8a   :  { %v4816_v29 = vadd.f32 %v4815_v42, %v4777_v54  ;;  %v4819_v63 = vadd.f32 %v4818_v37, %v4780_v8 }
 0xc8c   :  { %v4829_v61 = vrot.slane %v4816_v29, %v4828_v58  ;;  %v4837_v18 = vrot.slane %v4819_v63, %v4828_v58 }
 0xc8d   :  { %8486 = vadd.xlane.f32.xlu1 %v8485_v17  ;;  %8474 = vadd.xlane.f32.xlu0 %v8473_v39  ;;  %v8987_v39 = vsel %vm4822_vm8, 1.0, %v13617_v57 }
 0xd16   :  { %v8457_v25 = vpop.xlane.xlu1 %8456  ;;  %v8445_v26 = vpop.xlane.xlu0 %8444 }
 0xd17   :  { %v8458_v14 = vrot.slane %v8457_v25, 4  ;;  %v8446_v19 = vrot.slane %v8445_v26, 4 }
 0xd19   :  { %v8459_v47 = vadd.f32 %v8458_v14, %v8457_v25  ;;  %v8447_v28 = vadd.f32 %v8446_v19, %v8445_v26  ;;  %v9096_v25 = vsel %vm8501_vm9, 1.0, %v13617_v57  ;;  %v4831_v19 = vmul.f32 %v8987_v39, %v4829_v61 }
 0xd1a   :  { %v8487_v59 = vpop.xlane.xlu1 %8486  ;;  %v8475_v23 = vpop.xlane.xlu0 %8474 }
 0xd1b   :  { %v8460_v3 = vrot.slane %v8459_v47, 2  ;;  %v8448_v5 = vrot.slane %v8447_v28, 2  ;;  %v8488_v44 = vrot.slane %v8487_v59, 4  ;;  %v8476_v31 = vrot.slane %v8475_v23, 4 }
 0xd1d   :  { %v8489_v52 = vadd.f32 %v8488_v44, %v8487_v59  ;;  %v8477_v9 = vadd.f32 %v8476_v31, %v8475_v23  ;;  %v8449_v36 = vadd.f32 %v8448_v5, %v8447_v28  ;;  %v8461_v34 = vadd.f32 %v8460_v3, %v8459_v47 }
 0xd1e   :  { %v4839_v28 = vmul.f32 %v8987_v39, %v4837_v18 }
 0xd1f   :  { %v8490_v6 = vrot.slane %v8489_v52, 2  ;;  %v8478_v27 = vrot.slane %v8477_v9, 2  ;;  %v8450_v56 = vrot.slane %v8449_v36, 1  ;;  %v8462_v51 = vrot.slane %v8461_v34, 1 }
 0xd21   :  { %v8491_v7 = vadd.f32 %v8490_v6, %v8489_v52  ;;  %v8479_v10 = vadd.f32 %v8478_v27, %v8477_v9  ;;  %v8451_v62 = vadd.f32 %v8450_v56, %v8449_v36  ;;  %v8463_v38 = vadd.f32 %v8462_v51, %v8461_v34 }
 0xd23   :  { %13361 = vpush %v8451_v62  ;;  %v8480_v2 = vrot.slane %v8479_v10, 1  ;;  %v8492_v41 = vrot.slane %v8491_v7, 1 }
 0xd24   :  { %13363 = vpush %v8463_v38 }
 0xd25   :  { %v8481_v30 = vadd.f32 %v8480_v2, %v8479_v10  ;;  %v8493_v45 = vadd.f32 %v8492_v41, %v8491_v7 }
 0xd27   :  { %13365 = vpush %v8481_v30 }
 0xd28   :  { %13367 = vpush %v8493_v45 }
 0xd54   :  { %s13362_s6 = spop %13361 }
 0xd55   :  { %v8465_v40 = vstv %s13362_s6  ;;  %s13364_s17 = spop %13363 }
 0xd56   :  { %v8466_v21 = vmul.f32 %v8981_v16, %v8465_v40  ;;  %v8468_v20 = vstv %s13364_s17 }
 0xd57   :  { %v8469_v15 = vmul.f32 %v8981_v16, %v8468_v20 }
 0xd58   :  { %s13366_s18 = spop %13365  ;;  %v8467_v24 = vadd.f32 %v8466_v21, %v4740_v13 }
 0xd59   :  { %v8495_v0 = vstv %s13366_s18  ;;  %s13368_s12 = spop %13367  ;;  %v8470_v1 = vadd.f32 %v8469_v15, %v4741_v49 }
 0xd5a   :  { %v8496_v32 = vmul.f32 %v8982_v33, %v8495_v0  ;;  %v8498_v11 = vstv %s13368_s12 }
 0xd5b   :  { %v8499_v46 = vmul.f32 %v8982_v33, %v8498_v11 }
 0xd5c   :  { %v8497_v4 = vadd.f32 %v8496_v32, %v8467_v24 }
 0xd5d   :  { %v8500_v17 = vadd.f32 %v8499_v46, %v8470_v1 }
 0xd5e   :  { %v8508_v26 = vrot.slane %v8497_v4, %v4828_v58 }
 0xd5f   :  { %v8516_v14 = vrot.slane %v8500_v17, %v4828_v58 }
 0xd60   :  { %v8510_v47 = vmul.f32 %v9096_v25, %v8508_v26 }
 0xd61   :  { %v8518_v59 = vmul.f32 %v9096_v25, %v8516_v14 }
 0xd62   :  { %v8511_v23 = vadd.f32 %v8510_v47, %v4831_v19 }
 0xd63   :  { %v8519_v3 = vadd.f32 %v8518_v59, %v4839_v28 }
 0xd64   :  { %8522 = vst.msk [vmem:[#allocation4] sm:$0x3] %vm8520_vm10, %v8511_v23  ;;  %8521 = vst.msk [vmem:[#allocation2] sm:$0x3] %vm8520_vm10, %v8511_v23 }
 0xd65   :  { %13557 = shalt.err (!%p13554_p4)
}
 0xd66   :  { %s13558_s24 = scalar_lea.hbm %s16777_s14, 32 }
 0xd67   :  { %p13559_p5 = scmp.ne.s32.totalorder %s16777_s14, %s13558_s24  ;;  %p13562_p6 = scmp.lt.u32.totalorder %s13558_s24, %s16777_s14 }
 0xd69   :  { %p13564_p7 = pnand %p13562_p6, %p13559_p5 }
 0xd6b   :  { %13567 = shalt.err (!%p13564_p7)
}
 0xd6c   :  { %8543 = dma.vmem_to_hbm [thread:$0]  %s8541_s19, 32, %s16777_s14, [#allocation5]   ;;  %8523 = vst.msk [vmem:[#allocation6] sm:$0x3] %vm8520_vm10, %v8519_v3 }
 0xd6d   :  { %s13568_s9 = scalar_lea.vmem %s16710_s21, 32  ;;  %p13573_p9 = scmp.lt.s32.totalorder %s16710_s21, %s16710_s21 }
 0xd6e   :  { %p13569_p8 = scmp.ne.s32.totalorder %s16710_s21, %s13568_s9  ;;  %p13574_p10 = scmp.lt.s32.totalorder %s13568_s9, %s13568_s9 }
 0xd70   :  { %p13575_p11 = por %p13574_p10, %p13573_p9 }
 0xd72   :  { %p13576_p12 = pnand %p13575_p11, %p13569_p8 }
 0xd74   :  { %13579 = shalt.err (!%p13576_p12)
}
 0xd75   :  { %s13580_s1 = scalar_lea.hbm %s16776_s13, 32 }
 0xd76   :  { %p13581_p13 = scmp.ne.s32.totalorder %s16776_s13, %s13580_s1  ;;  %p13584_p0 = scmp.lt.u32.totalorder %s13580_s1, %s16776_s13 }
 0xd78   :  { %p13586_p1 = pnand %p13584_p0, %p13581_p13 }
 0xd7a   :  { %13589 = shalt.err (!%p13586_p1)
}
 0xd7b   :  { %8533 = dma.vmem_to_hbm [thread:$0]  %s16710_s21, 32, %s16776_s13, [#allocation3]  }
 0xd7c   :  { %s13590_s17 = scalar_lea.vmem %s16714_s3, 32  ;;  %p13595_p3 = scmp.lt.s32.totalorder %s16714_s3, %s16714_s3 }
 0xd7d   :  { %p13591_p2 = scmp.ne.s32.totalorder %s16714_s3, %s13590_s17  ;;  %p13596_p4 = scmp.lt.s32.totalorder %s13590_s17, %s13590_s17 }
 0xd7f   :  { %p13597_p5 = por %p13596_p4, %p13595_p3 }
 0xd81   :  { %p13598_p6 = pnand %p13597_p5, %p13591_p2 }
 0xd83   :  { %13601 = shalt.err (!%p13598_p6)
}
 0xd84   :  { %s13602_s10 = scalar_lea.hbm %s16778_s15, 32 }
 0xd85   :  { %p13603_p7 = scmp.ne.s32.totalorder %s16778_s15, %s13602_s10  ;;  %p13606_p8 = scmp.lt.u32.totalorder %s13602_s10, %s16778_s15 }
 0xd87   :  { %p13608_p9 = pnand %p13606_p8, %p13603_p7 }
 0xd89   :  { %13611 = shalt.err (!%p13608_p9)
}
 0xd8a   :  { %8553 = dma.vmem_to_hbm [thread:$0]  %s16714_s3, 32, %s16778_s15, [#allocation5]  }
 0xd8b   :  { %13612 = dma.done.wait [#allocation3], 32  }
 0xd8c   :  { %13613 = vsyncadd [#allocation3], 4294967264 }
 0xd8d   :  { %13614 = dma.done.wait [#allocation5], 64  }
 0xd8e   :  { %13615 = vsyncadd [#allocation5], 4294967232 }
 0xd8f   :  { %8563 = vsyncpa [#allocation3], 1 }
 0xd90   :  { %8564 = vsyncpa [#allocation5], 1 }

</bundles_post_ra>
